<compile_context>
chip_gen: v7x
topology: tpu7x:2x2x1
jax: 0.10.0
libtpu: 0.0.40
codegen_flags: <defaults>
</compile_context>

<pallas_src>
import functools

import jax
import jax.numpy as jnp
from jax import lax
from jax.experimental import pallas as pl
from jax.experimental.pallas import tpu as pltpu

VOCAB = 'abcdefghijklmnopqrstuvwxyz- '
VOCAB_SIZE = len(VOCAB)  # 28
EPS = 1e-5
LANE = 128
USE_BF16_MATMUL = True   # bf16 MXU operands, f32 accumulation / elementwise math


def _round_up(x, m):
    return (x + m - 1) // m * m


def _pick_tile(m, cap=512):
    """Largest multiple of 8 that divides m and is <= cap (falls back to m)."""
    if m % 8 != 0:
        return m
    best = 8
    t = 8
    while t <= min(cap, m):
        if m % t == 0:
            best = t
        t += 8
    return best


def _mm_dtype():
    return jnp.bfloat16 if USE_BF16_MATMUL else jnp.float32


# ---------------------------------------------------------------------------
# Kernel 1a: tiled conv matmul that also emits per-tile BN statistics
# ---------------------------------------------------------------------------
def _conv_mm_stats_kernel(x_ref, w_ref, y_ref, s_ref):
    y = jnp.dot(x_ref[...], w_ref[...], preferred_element_type=jnp.float32)
    y_ref[...] = y
    s0 = jnp.sum(y, axis=0, keepdims=True)        # per-channel sum
    s1 = jnp.sum(y * y, axis=0, keepdims=True)    # per-channel sum of squares
    s_ref[0] = jnp.concatenate([s0, s1], axis=0)


def conv_matmul_stats(xcol, wk, tile_cap=512):
    M, K = xcol.shape
    N = wk.shape[1]
    tm = _pick_tile(M, tile_cap)
    nt = M // tm
    return pl.pallas_call(
        _conv_mm_stats_kernel,
        out_shape=(jax.ShapeDtypeStruct((M, N), jnp.float32),
                   jax.ShapeDtypeStruct((nt, 2, N), jnp.float32)),
        grid=(nt,),
        in_specs=[
            pl.BlockSpec((tm, K), lambda i: (i, 0)),
            pl.BlockSpec((K, N), lambda i: (0, 0)),
        ],
        out_specs=(pl.BlockSpec((tm, N), lambda i: (i, 0)),
                   pl.BlockSpec((1, 2, N), lambda i: (i, 0, 0))),
        compiler_params=pltpu.CompilerParams(dimension_semantics=("parallel",)),
    )(xcol, wk)


# ---------------------------------------------------------------------------
# Kernel 1b: tiled per-channel scale/shift (folded BatchNorm) + ReLU
# ---------------------------------------------------------------------------
def _scale_shift_relu_kernel(y_ref, sc_ref, sh_ref, o_ref):
    o_ref[...] = jnp.maximum(y_ref[...] * sc_ref[...] + sh_ref[...], 0.0)


def scale_shift_relu(y, scale, shift, tile_cap=1024):
    M, N = y.shape
    tm = _pick_tile(M, tile_cap)
    nt = M // tm
    return pl.pallas_call(
        _scale_shift_relu_kernel,
        out_shape=jax.ShapeDtypeStruct((M, N), jnp.float32),
        grid=(nt,),
        in_specs=[
            pl.BlockSpec((tm, N), lambda i: (i, 0)),
            pl.BlockSpec((1, N), lambda i: (0, 0)),
            pl.BlockSpec((1, N), lambda i: (0, 0)),
        ],
        out_specs=pl.BlockSpec((tm, N), lambda i: (i, 0)),
        compiler_params=pltpu.CompilerParams(dimension_semantics=("parallel",)),
    )(y, scale, shift)


def conv3d_bn_relu(x, w, b, gamma, beta):
    """x: (B, F, H, W, Cin) channels-last.  w: (Cout, Cin, 3, 3, 3) PyTorch layout.
    Returns (B, F, H, W, Cout).  Uses train-mode (batch) BatchNorm statistics."""
    # Conv3d bias is cancelled exactly by train-mode BatchNorm (it shifts the
    # batch mean by itself and leaves the variance unchanged), so skip it.
    del b
    B, F, H, W, Cin = x.shape
    Cout = w.shape[0]
    K = 27 * Cin
    Kp = _round_up(K, LANE)
    Np = _round_up(Cout, LANE)
    M = B * F * H * W

    # im2col glue, K ordered (kd, kh, kw, Cin); channels-last avoids transposes
    # between conv layers.
    # TODO(synk): replace materialized im2col with an in-kernel 27-tap shifted
    # accumulation to cut HBM traffic at large H/W (not worth it at these sizes).
    xp = jnp.pad(x, ((0, 0), (1, 1), (1, 1), (1, 1), (0, 0)))
    cols = [xp[:, kd:kd + F, kh:kh + H, kw:kw + W, :]
            for kd in range(3) for kh in range(3) for kw in range(3)]
    xcol = jnp.concatenate(cols, axis=-1).reshape(M, K)
    xcol = jnp.pad(xcol, ((0, 0), (0, Kp - K))).astype(_mm_dtype())

    wk = w.transpose(2, 3, 4, 1, 0).reshape(K, Cout)          # same K ordering
    wk = jnp.pad(wk, ((0, Kp - K), (0, Np - Cout))).astype(_mm_dtype())
    gp = jnp.pad(gamma, (0, Np - Cout)).astype(jnp.float32)
    bep = jnp.pad(beta, (0, Np - Cout)).astype(jnp.float32)

    y, stats = conv_matmul_stats(xcol, wk)
    mu = jnp.sum(stats[:, 0, :], axis=0) / M
    var = jnp.maximum(jnp.sum(stats[:, 1, :], axis=0) / M - mu * mu, 0.0)
    # Fold BN affine into a single per-channel FMA: out = y*scale + shift.
    scale = gp * lax.rsqrt(var + EPS)
    shift = bep - mu * scale
    out = scale_shift_relu(y, scale.reshape(1, Np), shift.reshape(1, Np))
    return out[:, :Cout].reshape(B, F, H, W, Cout)


def maxpool_hw(x):
    """MaxPool3d(kernel=(1,2,2), stride=(1,2,2)) on channels-last (B,F,H,W,C)."""
    B, F, H, W, C = x.shape
    return x.reshape(B, F, H // 2, 2, W // 2, 2, C).max(axis=(3, 5))


# ---------------------------------------------------------------------------
# Kernel 2a: generic tiled matmul + bias (hoisted input-to-hidden projection)
# ---------------------------------------------------------------------------
def _mm_bias_kernel(x_ref, w_ref, b_ref, o_ref):
    o_ref[...] = jnp.dot(x_ref[...], w_ref[...],
                         preferred_element_type=jnp.float32) + b_ref[...]


def matmul_bias(x, w, b, tile_cap=512):
    M, K = x.shape
    N = w.shape[1]
    tm = _pick_tile(M, tile_cap)
    nt = M // tm
    return pl.pallas_call(
        _mm_bias_kernel,
        out_shape=jax.ShapeDtypeStruct((M, N), jnp.float32),
        grid=(nt,),
        in_specs=[
            pl.BlockSpec((tm, K), lambda i: (i, 0)),
            pl.BlockSpec((K, N), lambda i: (0, 0)),
            pl.BlockSpec((1, N), lambda i: (0, 0)),
        ],
        out_specs=pl.BlockSpec((tm, N), lambda i: (i, 0)),
        compiler_params=pltpu.CompilerParams(dimension_semantics=("parallel",)),
    )(x, w, b)


# ---------------------------------------------------------------------------
# Kernel 2b: fused bidirectional recurrence, grid over frames, state in VMEM
# ---------------------------------------------------------------------------
def _make_lstm_step_kernel(H):
    def kernel(zx_ref, wh_ref, g_ref, be_ref, h_ref, cell_sc, hprev_sc):
        t = pl.program_id(0)

        @pl.when(t == 0)
        def _():
            cell_sc[...] = jnp.zeros_like(cell_sc)
            hprev_sc[...] = jnp.zeros_like(hprev_sc)

        # zx already contains x_t @ Wx + gate bias; only the (2B,H)x(H,4H)
        # recurrent matmul remains inside the sequential loop.
        z = zx_ref[0] + jnp.dot(hprev_sc[...].astype(wh_ref.dtype), wh_ref[...],
                                preferred_element_type=jnp.float32)
        fg = jax.nn.sigmoid(z[:, 0:H])
        ig = jax.nn.sigmoid(z[:, H:2 * H])
        cg = jnp.tanh(z[:, 2 * H:3 * H])
        op = z[:, 3 * H:4 * H]
        mu = jnp.mean(op, axis=1, keepdims=True)          # LayerNorm on output gate
        var = jnp.mean((op - mu) ** 2, axis=1, keepdims=True)
        og = jax.nn.sigmoid((op - mu) * lax.rsqrt(var + EPS) * g_ref[...] + be_ref[...])
        new_cell = jnp.clip(fg * cell_sc[...] + ig * cg, -10.0, 10.0)
        new_h = og * jnp.tanh(new_cell)
        cell_sc[...] = new_cell
        hprev_sc[...] = new_h
        h_ref[0] = new_h
    return kernel


def lstm_bidir_pallas(zx, Wh, gln, bln, H):
    """zx: (F, 2B, 4H) hoisted x-projection for [fwd ; frame-reversed bwd].
    Returns h: (F, 2B, H)."""
    F, B2, H4 = zx.shape
    return pl.pallas_call(
        _make_lstm_step_kernel(H),
        out_shape=jax.ShapeDtypeStruct((F, B2, H), jnp.float32),
        grid=(F,),
        in_specs=[
            pl.BlockSpec((1, B2, H4), lambda t: (t, 0, 0)),
            pl.BlockSpec((H, H4), lambda t: (0, 0)),
            pl.BlockSpec((1, H), lambda t: (0, 0)),
            pl.BlockSpec((1, H), lambda t: (0, 0)),
        ],
        out_specs=pl.BlockSpec((1, B2, H), lambda t: (t, 0, 0)),
        scratch_shapes=[pltpu.VMEM((B2, H), jnp.float32),   # cell state
                        pltpu.VMEM((B2, H), jnp.float32)],  # previous hidden
        compiler_params=pltpu.CompilerParams(dimension_semantics=("arbitrary",)),
    )(zx, Wh, gln, bln)


# ---------------------------------------------------------------------------
# Kernel 3: classifier + log_softmax (vocab lane-padded to 128)
# ---------------------------------------------------------------------------
def _classifier_kernel(h_ref, w_ref, b_ref, o_ref):
    logits = jnp.dot(h_ref[...], w_ref[...],
                     preferred_element_type=jnp.float32) + b_ref[...]
    m = jnp.max(logits, axis=1, keepdims=True)
    s = logits - m
    lse = jnp.log(jnp.sum(jnp.exp(s), axis=1, keepdims=True))
    o_ref[...] = s - lse


def classifier_pallas(h, Wc, bc, tile_cap=512):
    M, K = h.shape
    Vp = Wc.shape[1]
    tm = _pick_tile(M, tile_cap)
    nt = M // tm
    return pl.pallas_call(
        _classifier_kernel,
        out_shape=jax.ShapeDtypeStruct((M, Vp), jnp.float32),
        grid=(nt,),
        in_specs=[
            pl.BlockSpec((tm, K), lambda i: (i, 0)),
            pl.BlockSpec((K, Vp), lambda i: (0, 0)),
            pl.BlockSpec((1, Vp), lambda i: (0, 0)),
        ],
        out_specs=pl.BlockSpec((tm, Vp), lambda i: (i, 0)),
        compiler_params=pltpu.CompilerParams(dimension_semantics=("parallel",)),
    )(h, Wc, bc)


# ---------------------------------------------------------------------------
# Full model
# ---------------------------------------------------------------------------
def model_forward(x_ncdhw, params, hidden_size):
    H = hidden_size
    mmdt = _mm_dtype()

    # NCDHW -> channels-last (B, F, H, W, C) once; conv stack stays channels-last.
    x = x_ncdhw.transpose(0, 2, 3, 4, 1)

    y = conv3d_bn_relu(x, params['w1'], params['b1'], params['g1'], params['be1'])
    y = maxpool_hw(y)
    y = conv3d_bn_relu(y, params['w2'], params['b2'], params['g2'], params['be2'])
    y = maxpool_hw(y)
    y = conv3d_bn_relu(y, params['w3'], params['b3'], params['g3'], params['be3'])
    y = maxpool_hw(y)                                     # (B, F, Hs, Ws, 32)

    B, F, Hs, Ws, C = y.shape
    D = C * Hs * Ws
    # Faithful to PyTorch: `conv_out.view(b, f, -1)` reinterprets the contiguous
    # NCDHW buffer (b, c, f, h, w) row-major -- it does NOT permute to
    # (b, f, c, h, w) first.  Replicate that exact reinterpretation.
    feat = y.transpose(0, 4, 1, 2, 3).reshape(B, F, D)     # (B, C, F, Hs, Ws)->view

    # Fuse both directions: stack forward and frame-reversed backward along batch
    # (both directions share the same gate weights in the original module).
    x_stk = jnp.concatenate([feat, feat[:, ::-1, :]], axis=0)   # (2B, F, D)
    x_fbd = x_stk.transpose(1, 0, 2)                            # (F, 2B, D)

    # Hoisted input-to-hidden projection: ONE (F*2B, D)x(D, 4H) matmul + gate bias.
    zx = matmul_bias(x_fbd.reshape(F * 2 * B, D).astype(mmdt),
                     params['Wx'].astype(mmdt), params['bg'])
    zx = zx.reshape(F, 2 * B, 4 * H)

    h_all = lstm_bidir_pallas(zx, params['Wh'].astype(mmdt),
                              params['gln'], params['bln'], H)   # (F, 2B, H)
    h_all = h_all.transpose(1, 0, 2)                             # (2B, F, H)
    h_fwd = h_all[:B]                                            # (B, F, H)
    h_bwd = h_all[B:, ::-1, :]                                   # un-reverse frames
    hcat = jnp.concatenate([h_fwd, h_bwd], axis=2)               # (B, F, 2H)

    logp = classifier_pallas(hcat.reshape(B * F, 2 * H).astype(mmdt),
                             params['Wc'].astype(mmdt), params['bc'])
    return logp[:, :VOCAB_SIZE].reshape(B, F, VOCAB_SIZE)


def init_params(key, in_channels, hidden_size, cnn_output_size):
    ks = jax.random.split(key, 8)
    H, D = hidden_size, cnn_output_size
    Vp = _round_up(VOCAB_SIZE, LANE)

    def nrm(k, shape, fan_in):
        return jax.random.normal(k, shape, jnp.float32) / jnp.sqrt(fan_in)

    params = {
        'w1': nrm(ks[0], (32, in_channels, 3, 3, 3), in_channels * 27),
        'b1': jnp.zeros((32,), jnp.float32),   # cancelled by train-mode BN
        'g1': jnp.ones((32,), jnp.float32), 'be1': jnp.zeros((32,), jnp.float32),
        'w2': nrm(ks[1], (16, 32, 3, 3, 3), 32 * 27),
        'b2': jnp.zeros((16,), jnp.float32),
        'g2': jnp.ones((16,), jnp.float32), 'be2': jnp.zeros((16,), jnp.float32),
        'w3': nrm(ks[2], (32, 16, 3, 3, 3), 16 * 27),
        'b3': jnp.zeros((32,), jnp.float32),
        'g3': jnp.ones((32,), jnp.float32), 'be3': jnp.zeros((32,), jnp.float32),
        # Gate weights split into x- and h- parts (both directions share weights,
        # as in the original module); columns: [forget | input | candidate | output].
        'Wx': nrm(ks[3], (D, 4 * H), D + H),
        'Wh': nrm(ks[4], (H, 4 * H), D + H),
        'bg': 0.01 * jax.random.normal(ks[5], (1, 4 * H), jnp.float32),
        'gln': jnp.ones((1, H), jnp.float32), 'bln': jnp.zeros((1, H), jnp.float32),
        # Classifier padded to 128 lanes; padded bias columns get -1e30 so the
        # softmax normalization is unaffected (sliced back to 28 in the wrapper).
        'Wc': jnp.pad(nrm(ks[6], (2 * H, VOCAB_SIZE), 2 * H),
                      ((0, 0), (0, Vp - VOCAB_SIZE))),
        'bc': jnp.pad(0.01 * jax.random.normal(ks[7], (1, VOCAB_SIZE), jnp.float32),
                      ((0, 0), (0, Vp - VOCAB_SIZE)), constant_values=-1e30),
    }
    return params


if __name__ == "__main__":
    # Small shapes consistent with the module: B=2, C=3, frames=4, H=W=16, hidden=32.
    batch, in_channels, frames, height, width, hidden = 2, 3, 4, 16, 16, 32
    cnn_output_size = (width // 8) * (height // 8) * 32   # 128

    key = jax.random.PRNGKey(0)
    kx, kp = jax.random.split(key)
    x = jax.random.normal(kx, (batch, in_channels, frames, height, width), jnp.float32)
    params = init_params(kp, in_channels, hidden, cnn_output_size)

    fwd = jax.jit(functools.partial(model_forward, params=params, hidden_size=hidden))
    out = jax.block_until_ready(fwd(x))

    assert out.shape == (batch, frames, VOCAB_SIZE)
    assert bool(jnp.all(jnp.isfinite(out)))
    # log_softmax rows should sum (in prob space) to ~1
    assert bool(jnp.allclose(jnp.sum(jnp.exp(out), axis=-1), 1.0, atol=1e-3))
    print("KERNEL_OK")
</pallas_src>

<mosaic_0001>
module attributes {stable_mosaic.version = 11 : i64} {
  func.func @_conv_mm_stats_kernel(%arg0: i32, %arg1: memref<512x128xbf16, #tpu.memory_space<vmem>>, %arg2: memref<128x128xbf16, #tpu.memory_space<vmem>>, %arg3: memref<512x128xf32, #tpu.memory_space<vmem>>, %arg4: memref<1x2x128xf32, #tpu.memory_space<vmem>>) attributes {dimension_semantics = [#tpu.dimension_semantics<parallel>], iteration_bounds = array<i64: 4>, scalar_prefetch = 0 : i64, scratch_operands = 0 : i64, tpu.core_type = #tpu.core_type<tc>, window_params = [{transform_indices = @transform_0, window_bounds = array<i64: 512, 128>}, {pipeline_mode = #tpu.pipeline_mode<synchronous>, transform_indices = @transform_1, window_bounds = array<i64: 128, 128>}, {transform_indices = @transform_2, window_bounds = array<i64: 512, 128>}, {transform_indices = @transform_3, window_bounds = array<i64: 1, 2, 128>}]} {
    %c0 = arith.constant 0 : index
    %c0_0 = arith.constant 0 : index
    %0 = vector.load %arg1[%c0, %c0_0] : memref<512x128xbf16, #tpu.memory_space<vmem>>, vector<512x128xbf16>
    %c0_1 = arith.constant 0 : index
    %c0_2 = arith.constant 0 : index
    %1 = vector.load %arg2[%c0_1, %c0_2] : memref<128x128xbf16, #tpu.memory_space<vmem>>, vector<128x128xbf16>
    %cst = arith.constant dense<0.000000e+00> : vector<512x128xf32>
    %2 = tpu.matmul %0, %1, %cst {dimension_numbers = #tpu.dot_dimension_numbers<[1], [0], [0], [1], [0, 0, 1, 1], [], []>} : vector<512x128xbf16>, vector<128x128xbf16>, vector<512x128xf32> -> vector<512x128xf32>
    %c0_3 = arith.constant 0 : index
    %c0_4 = arith.constant 0 : index
    %3 = vector.load %arg3[%c0_3, %c0_4] : memref<512x128xf32, #tpu.memory_space<vmem>>, vector<512x128xf32>
    tpu.vector_store %arg3[%c0_3, %c0_4], %2 {strides = array<i32>} : memref<512x128xf32, #tpu.memory_space<vmem>>, vector<512x128xf32>,
    %cst_5 = arith.constant dense<0.000000e+00> : vector<128xf32>
    %4 = vector.multi_reduction <add>, %2, %cst_5 [0] : vector<512x128xf32> to vector<128xf32>
    %5 = vector.shape_cast %4 : vector<128xf32> to vector<1x128xf32>
    %6 = arith.mulf %2, %2 : vector<512x128xf32>
    %cst_6 = arith.constant dense<0.000000e+00> : vector<128xf32>
    %7 = vector.multi_reduction <add>, %6, %cst_6 [0] : vector<512x128xf32> to vector<128xf32>
    %8 = vector.shape_cast %7 : vector<128xf32> to vector<1x128xf32>
    %9 = tpu.concatenate %5, %8 in 0 : vector<1x128xf32>, vector<1x128xf32> -> vector<2x128xf32>
    %c0_7 = arith.constant 0 : index
    %c0_8 = arith.constant 0 : index
    %c0_9 = arith.constant 0 : index
    %10 = vector.load %arg4[%c0_7, %c0_8, %c0_9] : memref<1x2x128xf32, #tpu.memory_space<vmem>>, vector<1x2x128xf32>
    %11 = vector.shape_cast %10 : vector<1x2x128xf32> to vector<2x128xf32>
    %12 = vector.shape_cast %9 : vector<2x128xf32> to vector<1x2x128xf32>
    tpu.vector_store %arg4[%c0_7, %c0_8, %c0_9], %12 {strides = array<i32>} : memref<1x2x128xf32, #tpu.memory_space<vmem>>, vector<1x2x128xf32>,
    return
  }
  func.func @transform_0(%arg0: i32) -> (i32, i32) {
    %c0_i32 = arith.constant 0 : i32
    %c0_i32_0 = arith.constant 0 : i32
    return %arg0, %c0_i32 : i32, i32
  }
  func.func @transform_1(%arg0: i32) -> (i32, i32) {
    %c0_i32 = arith.constant 0 : i32
    %c0_i32_0 = arith.constant 0 : i32
    %c0_i32_1 = arith.constant 0 : i32
    return %c0_i32, %c0_i32_0 : i32, i32
  }
  func.func @transform_2(%arg0: i32) -> (i32, i32) {
    %c0_i32 = arith.constant 0 : i32
    %c0_i32_0 = arith.constant 0 : i32
    return %arg0, %c0_i32 : i32, i32
  }
  func.func @transform_3(%arg0: i32) -> (i32, i32, i32) {
    %c0_i32 = arith.constant 0 : i32
    %c0_i32_0 = arith.constant 0 : i32
    %c0_i32_1 = arith.constant 0 : i32
    return %arg0, %c0_i32, %c0_i32_0 : i32, i32, i32
  }
}

module attributes {stable_mosaic.version = 11 : i64} {
  func.func @_scale_shift_relu_kernel(%arg0: i32, %arg1: memref<1024x128xf32, #tpu.memory_space<vmem>>, %arg2: memref<1x128xf32, #tpu.memory_space<vmem>>, %arg3: memref<1x128xf32, #tpu.memory_space<vmem>>, %arg4: memref<1024x128xf32, #tpu.memory_space<vmem>>) attributes {dimension_semantics = [#tpu.dimension_semantics<parallel>], iteration_bounds = array<i64: 2>, scalar_prefetch = 0 : i64, scratch_operands = 0 : i64, tpu.core_type = #tpu.core_type<tc>, window_params = [{transform_indices = @transform_0, window_bounds = array<i64: 1024, 128>}, {pipeline_mode = #tpu.pipeline_mode<synchronous>, transform_indices = @transform_1, window_bounds = array<i64: 1, 128>}, {pipeline_mode = #tpu.pipeline_mode<synchronous>, transform_indices = @transform_2, window_bounds = array<i64: 1, 128>}, {transform_indices = @transform_3, window_bounds = array<i64: 1024, 128>}]} {
    %c0 = arith.constant 0 : index
    %c0_0 = arith.constant 0 : index
    %0 = vector.load %arg1[%c0, %c0_0] : memref<1024x128xf32, #tpu.memory_space<vmem>>, vector<1024x128xf32>
    %c0_1 = arith.constant 0 : index
    %c0_2 = arith.constant 0 : index
    %1 = vector.load %arg2[%c0_1, %c0_2] : memref<1x128xf32, #tpu.memory_space<vmem>>, vector<1x128xf32>
    %2 = vector.broadcast %1 : vector<1x128xf32> to vector<1024x128xf32>
    %3 = arith.mulf %0, %2 : vector<1024x128xf32>
    %c0_3 = arith.constant 0 : index
    %c0_4 = arith.constant 0 : index
    %4 = vector.load %arg3[%c0_3, %c0_4] : memref<1x128xf32, #tpu.memory_space<vmem>>, vector<1x128xf32>
    %5 = vector.broadcast %4 : vector<1x128xf32> to vector<1024x128xf32>
    %6 = arith.addf %3, %5 : vector<1024x128xf32>
    %cst = arith.constant 0.000000e+00 : f32
    %7 = vector.broadcast %cst : f32 to vector<1024x128xf32>
    %8 = arith.maximumf %6, %7 : vector<1024x128xf32>
    %c0_5 = arith.constant 0 : index
    %c0_6 = arith.constant 0 : index
    %9 = vector.load %arg4[%c0_5, %c0_6] : memref<1024x128xf32, #tpu.memory_space<vmem>>, vector<1024x128xf32>
    tpu.vector_store %arg4[%c0_5, %c0_6], %8 {strides = array<i32>} : memref<1024x128xf32, #tpu.memory_space<vmem>>, vector<1024x128xf32>,
    return
  }
  func.func @transform_0(%arg0: i32) -> (i32, i32) {
    %c0_i32 = arith.constant 0 : i32
    %c0_i32_0 = arith.constant 0 : i32
    return %arg0, %c0_i32 : i32, i32
  }
  func.func @transform_1(%arg0: i32) -> (i32, i32) {
    %c0_i32 = arith.constant 0 : i32
    %c0_i32_0 = arith.constant 0 : i32
    %c0_i32_1 = arith.constant 0 : i32
    return %c0_i32, %c0_i32_0 : i32, i32
  }
  func.func @transform_2(%arg0: i32) -> (i32, i32) {
    %c0_i32 = arith.constant 0 : i32
    %c0_i32_0 = arith.constant 0 : i32
    %c0_i32_1 = arith.constant 0 : i32
    return %c0_i32, %c0_i32_0 : i32, i32
  }
  func.func @transform_3(%arg0: i32) -> (i32, i32) {
    %c0_i32 = arith.constant 0 : i32
    %c0_i32_0 = arith.constant 0 : i32
    return %arg0, %c0_i32 : i32, i32
  }
}

module attributes {stable_mosaic.version = 11 : i64} {
  func.func @_conv_mm_stats_kernel(%arg0: i32, %arg1: memref<512x896xbf16, #tpu.memory_space<vmem>>, %arg2: memref<896x128xbf16, #tpu.memory_space<vmem>>, %arg3: memref<512x128xf32, #tpu.memory_space<vmem>>, %arg4: memref<1x2x128xf32, #tpu.memory_space<vmem>>) attributes {dimension_semantics = [#tpu.dimension_semantics<parallel>], iteration_bounds = array<i64: 1>, scalar_prefetch = 0 : i64, scratch_operands = 0 : i64, tpu.core_type = #tpu.core_type<tc>, window_params = [{transform_indices = @transform_0, window_bounds = array<i64: 512, 896>}, {pipeline_mode = #tpu.pipeline_mode<synchronous>, transform_indices = @transform_1, window_bounds = array<i64: 896, 128>}, {transform_indices = @transform_2, window_bounds = array<i64: 512, 128>}, {transform_indices = @transform_3, window_bounds = array<i64: 1, 2, 128>}]} {
    %c0 = arith.constant 0 : index
    %c0_0 = arith.constant 0 : index
    %0 = vector.load %arg1[%c0, %c0_0] : memref<512x896xbf16, #tpu.memory_space<vmem>>, vector<512x896xbf16>
    %c0_1 = arith.constant 0 : index
    %c0_2 = arith.constant 0 : index
    %1 = vector.load %arg2[%c0_1, %c0_2] : memref<896x128xbf16, #tpu.memory_space<vmem>>, vector<896x128xbf16>
    %cst = arith.constant dense<0.000000e+00> : vector<512x128xf32>
    %2 = tpu.matmul %0, %1, %cst {dimension_numbers = #tpu.dot_dimension_numbers<[1], [0], [0], [1], [0, 0, 1, 1], [], []>} : vector<512x896xbf16>, vector<896x128xbf16>, vector<512x128xf32> -> vector<512x128xf32>
    %c0_3 = arith.constant 0 : index
    %c0_4 = arith.constant 0 : index
    %3 = vector.load %arg3[%c0_3, %c0_4] : memref<512x128xf32, #tpu.memory_space<vmem>>, vector<512x128xf32>
    tpu.vector_store %arg3[%c0_3, %c0_4], %2 {strides = array<i32>} : memref<512x128xf32, #tpu.memory_space<vmem>>, vector<512x128xf32>,
    %cst_5 = arith.constant dense<0.000000e+00> : vector<128xf32>
    %4 = vector.multi_reduction <add>, %2, %cst_5 [0] : vector<512x128xf32> to vector<128xf32>
    %5 = vector.shape_cast %4 : vector<128xf32> to vector<1x128xf32>
    %6 = arith.mulf %2, %2 : vector<512x128xf32>
    %cst_6 = arith.constant dense<0.000000e+00> : vector<128xf32>
    %7 = vector.multi_reduction <add>, %6, %cst_6 [0] : vector<512x128xf32> to vector<128xf32>
    %8 = vector.shape_cast %7 : vector<128xf32> to vector<1x128xf32>
    %9 = tpu.concatenate %5, %8 in 0 : vector<1x128xf32>, vector<1x128xf32> -> vector<2x128xf32>
    %c0_7 = arith.constant 0 : index
    %c0_8 = arith.constant 0 : index
    %c0_9 = arith.constant 0 : index
    %10 = vector.load %arg4[%c0_7, %c0_8, %c0_9] : memref<1x2x128xf32, #tpu.memory_space<vmem>>, vector<1x2x128xf32>
    %11 = vector.shape_cast %10 : vector<1x2x128xf32> to vector<2x128xf32>
    %12 = vector.shape_cast %9 : vector<2x128xf32> to vector<1x2x128xf32>
    tpu.vector_store %arg4[%c0_7, %c0_8, %c0_9], %12 {strides = array<i32>} : memref<1x2x128xf32, #tpu.memory_space<vmem>>, vector<1x2x128xf32>,
    return
  }
  func.func @transform_0(%arg0: i32) -> (i32, i32) {
    %c0_i32 = arith.constant 0 : i32
    %c0_i32_0 = arith.constant 0 : i32
    return %arg0, %c0_i32 : i32, i32
  }
  func.func @transform_1(%arg0: i32) -> (i32, i32) {
    %c0_i32 = arith.constant 0 : i32
    %c0_i32_0 = arith.constant 0 : i32
    %c0_i32_1 = arith.constant 0 : i32
    return %c0_i32, %c0_i32_0 : i32, i32
  }
  func.func @transform_2(%arg0: i32) -> (i32, i32) {
    %c0_i32 = arith.constant 0 : i32
    %c0_i32_0 = arith.constant 0 : i32
    return %arg0, %c0_i32 : i32, i32
  }
  func.func @transform_3(%arg0: i32) -> (i32, i32, i32) {
    %c0_i32 = arith.constant 0 : i32
    %c0_i32_0 = arith.constant 0 : i32
    %c0_i32_1 = arith.constant 0 : i32
    return %arg0, %c0_i32, %c0_i32_0 : i32, i32, i32
  }
}

module attributes {stable_mosaic.version = 11 : i64} {
  func.func @_scale_shift_relu_kernel(%arg0: i32, %arg1: memref<512x128xf32, #tpu.memory_space<vmem>>, %arg2: memref<1x128xf32, #tpu.memory_space<vmem>>, %arg3: memref<1x128xf32, #tpu.memory_space<vmem>>, %arg4: memref<512x128xf32, #tpu.memory_space<vmem>>) attributes {dimension_semantics = [#tpu.dimension_semantics<parallel>], iteration_bounds = array<i64: 1>, scalar_prefetch = 0 : i64, scratch_operands = 0 : i64, tpu.core_type = #tpu.core_type<tc>, window_params = [{transform_indices = @transform_0, window_bounds = array<i64: 512, 128>}, {pipeline_mode = #tpu.pipeline_mode<synchronous>, transform_indices = @transform_1, window_bounds = array<i64: 1, 128>}, {pipeline_mode = #tpu.pipeline_mode<synchronous>, transform_indices = @transform_2, window_bounds = array<i64: 1, 128>}, {transform_indices = @transform_3, window_bounds = array<i64: 512, 128>}]} {
    %c0 = arith.constant 0 : index
    %c0_0 = arith.constant 0 : index
    %0 = vector.load %arg1[%c0, %c0_0] : memref<512x128xf32, #tpu.memory_space<vmem>>, vector<512x128xf32>
    %c0_1 = arith.constant 0 : index
    %c0_2 = arith.constant 0 : index
    %1 = vector.load %arg2[%c0_1, %c0_2] : memref<1x128xf32, #tpu.memory_space<vmem>>, vector<1x128xf32>
    %2 = vector.broadcast %1 : vector<1x128xf32> to vector<512x128xf32>
    %3 = arith.mulf %0, %2 : vector<512x128xf32>
    %c0_3 = arith.constant 0 : index
    %c0_4 = arith.constant 0 : index
    %4 = vector.load %arg3[%c0_3, %c0_4] : memref<1x128xf32, #tpu.memory_space<vmem>>, vector<1x128xf32>
    %5 = vector.broadcast %4 : vector<1x128xf32> to vector<512x128xf32>
    %6 = arith.addf %3, %5 : vector<512x128xf32>
    %cst = arith.constant 0.000000e+00 : f32
    %7 = vector.broadcast %cst : f32 to vector<512x128xf32>
    %8 = arith.maximumf %6, %7 : vector<512x128xf32>
    %c0_5 = arith.constant 0 : index
    %c0_6 = arith.constant 0 : index
    %9 = vector.load %arg4[%c0_5, %c0_6] : memref<512x128xf32, #tpu.memory_space<vmem>>, vector<512x128xf32>
    tpu.vector_store %arg4[%c0_5, %c0_6], %8 {strides = array<i32>} : memref<512x128xf32, #tpu.memory_space<vmem>>, vector<512x128xf32>,
    return
  }
  func.func @transform_0(%arg0: i32) -> (i32, i32) {
    %c0_i32 = arith.constant 0 : i32
    %c0_i32_0 = arith.constant 0 : i32
    return %arg0, %c0_i32 : i32, i32
  }
  func.func @transform_1(%arg0: i32) -> (i32, i32) {
    %c0_i32 = arith.constant 0 : i32
    %c0_i32_0 = arith.constant 0 : i32
    %c0_i32_1 = arith.constant 0 : i32
    return %c0_i32, %c0_i32_0 : i32, i32
  }
  func.func @transform_2(%arg0: i32) -> (i32, i32) {
    %c0_i32 = arith.constant 0 : i32
    %c0_i32_0 = arith.constant 0 : i32
    %c0_i32_1 = arith.constant 0 : i32
    return %c0_i32, %c0_i32_0 : i32, i32
  }
  func.func @transform_3(%arg0: i32) -> (i32, i32) {
    %c0_i32 = arith.constant 0 : i32
    %c0_i32_0 = arith.constant 0 : i32
    return %arg0, %c0_i32 : i32, i32
  }
}

module attributes {stable_mosaic.version = 11 : i64} {
  func.func @_conv_mm_stats_kernel(%arg0: i32, %arg1: memref<128x512xbf16, #tpu.memory_space<vmem>>, %arg2: memref<512x128xbf16, #tpu.memory_space<vmem>>, %arg3: memref<128x128xf32, #tpu.memory_space<vmem>>, %arg4: memref<1x2x128xf32, #tpu.memory_space<vmem>>) attributes {dimension_semantics = [#tpu.dimension_semantics<parallel>], iteration_bounds = array<i64: 1>, scalar_prefetch = 0 : i64, scratch_operands = 0 : i64, tpu.core_type = #tpu.core_type<tc>, window_params = [{transform_indices = @transform_0, window_bounds = array<i64: 128, 512>}, {pipeline_mode = #tpu.pipeline_mode<synchronous>, transform_indices = @transform_1, window_bounds = array<i64: 512, 128>}, {transform_indices = @transform_2, window_bounds = array<i64: 128, 128>}, {transform_indices = @transform_3, window_bounds = array<i64: 1, 2, 128>}]} {
    %c0 = arith.constant 0 : index
    %c0_0 = arith.constant 0 : index
    %0 = vector.load %arg1[%c0, %c0_0] : memref<128x512xbf16, #tpu.memory_space<vmem>>, vector<128x512xbf16>
    %c0_1 = arith.constant 0 : index
    %c0_2 = arith.constant 0 : index
    %1 = vector.load %arg2[%c0_1, %c0_2] : memref<512x128xbf16, #tpu.memory_space<vmem>>, vector<512x128xbf16>
    %cst = arith.constant dense<0.000000e+00> : vector<128x128xf32>
    %2 = tpu.matmul %0, %1, %cst {dimension_numbers = #tpu.dot_dimension_numbers<[1], [0], [0], [1], [0, 0, 1, 1], [], []>} : vector<128x512xbf16>, vector<512x128xbf16>, vector<128x128xf32> -> vector<128x128xf32>
    %c0_3 = arith.constant 0 : index
    %c0_4 = arith.constant 0 : index
    %3 = vector.load %arg3[%c0_3, %c0_4] : memref<128x128xf32, #tpu.memory_space<vmem>>, vector<128x128xf32>
    tpu.vector_store %arg3[%c0_3, %c0_4], %2 {strides = array<i32>} : memref<128x128xf32, #tpu.memory_space<vmem>>, vector<128x128xf32>,
    %cst_5 = arith.constant dense<0.000000e+00> : vector<128xf32>
    %4 = vector.multi_reduction <add>, %2, %cst_5 [0] : vector<128x128xf32> to vector<128xf32>
    %5 = vector.shape_cast %4 : vector<128xf32> to vector<1x128xf32>
    %6 = arith.mulf %2, %2 : vector<128x128xf32>
    %cst_6 = arith.constant dense<0.000000e+00> : vector<128xf32>
    %7 = vector.multi_reduction <add>, %6, %cst_6 [0] : vector<128x128xf32> to vector<128xf32>
    %8 = vector.shape_cast %7 : vector<128xf32> to vector<1x128xf32>
    %9 = tpu.concatenate %5, %8 in 0 : vector<1x128xf32>, vector<1x128xf32> -> vector<2x128xf32>
    %c0_7 = arith.constant 0 : index
    %c0_8 = arith.constant 0 : index
    %c0_9 = arith.constant 0 : index
    %10 = vector.load %arg4[%c0_7, %c0_8, %c0_9] : memref<1x2x128xf32, #tpu.memory_space<vmem>>, vector<1x2x128xf32>
    %11 = vector.shape_cast %10 : vector<1x2x128xf32> to vector<2x128xf32>
    %12 = vector.shape_cast %9 : vector<2x128xf32> to vector<1x2x128xf32>
    tpu.vector_store %arg4[%c0_7, %c0_8, %c0_9], %12 {strides = array<i32>} : memref<1x2x128xf32, #tpu.memory_space<vmem>>, vector<1x2x128xf32>,
    return
  }
  func.func @transform_0(%arg0: i32) -> (i32, i32) {
    %c0_i32 = arith.constant 0 : i32
    %c0_i32_0 = arith.constant 0 : i32
    return %arg0, %c0_i32 : i32, i32
  }
  func.func @transform_1(%arg0: i32) -> (i32, i32) {
    %c0_i32 = arith.constant 0 : i32
    %c0_i32_0 = arith.constant 0 : i32
    %c0_i32_1 = arith.constant 0 : i32
    return %c0_i32, %c0_i32_0 : i32, i32
  }
  func.func @transform_2(%arg0: i32) -> (i32, i32) {
    %c0_i32 = arith.constant 0 : i32
    %c0_i32_0 = arith.constant 0 : i32
    return %arg0, %c0_i32 : i32, i32
  }
  func.func @transform_3(%arg0: i32) -> (i32, i32, i32) {
    %c0_i32 = arith.constant 0 : i32
    %c0_i32_0 = arith.constant 0 : i32
    %c0_i32_1 = arith.constant 0 : i32
    return %arg0, %c0_i32, %c0_i32_0 : i32, i32, i32
  }
}

module attributes {stable_mosaic.version = 11 : i64} {
  func.func @_scale_shift_relu_kernel(%arg0: i32, %arg1: memref<128x128xf32, #tpu.memory_space<vmem>>, %arg2: memref<1x128xf32, #tpu.memory_space<vmem>>, %arg3: memref<1x128xf32, #tpu.memory_space<vmem>>, %arg4: memref<128x128xf32, #tpu.memory_space<vmem>>) attributes {dimension_semantics = [#tpu.dimension_semantics<parallel>], iteration_bounds = array<i64: 1>, scalar_prefetch = 0 : i64, scratch_operands = 0 : i64, tpu.core_type = #tpu.core_type<tc>, window_params = [{transform_indices = @transform_0, window_bounds = array<i64: 128, 128>}, {pipeline_mode = #tpu.pipeline_mode<synchronous>, transform_indices = @transform_1, window_bounds = array<i64: 1, 128>}, {pipeline_mode = #tpu.pipeline_mode<synchronous>, transform_indices = @transform_2, window_bounds = array<i64: 1, 128>}, {transform_indices = @transform_3, window_bounds = array<i64: 128, 128>}]} {
    %c0 = arith.constant 0 : index
    %c0_0 = arith.constant 0 : index
    %0 = vector.load %arg1[%c0, %c0_0] : memref<128x128xf32, #tpu.memory_space<vmem>>, vector<128x128xf32>
    %c0_1 = arith.constant 0 : index
    %c0_2 = arith.constant 0 : index
    %1 = vector.load %arg2[%c0_1, %c0_2] : memref<1x128xf32, #tpu.memory_space<vmem>>, vector<1x128xf32>
    %2 = vector.broadcast %1 : vector<1x128xf32> to vector<128x128xf32>
    %3 = arith.mulf %0, %2 : vector<128x128xf32>
    %c0_3 = arith.constant 0 : index
    %c0_4 = arith.constant 0 : index
    %4 = vector.load %arg3[%c0_3, %c0_4] : memref<1x128xf32, #tpu.memory_space<vmem>>, vector<1x128xf32>
    %5 = vector.broadcast %4 : vector<1x128xf32> to vector<128x128xf32>
    %6 = arith.addf %3, %5 : vector<128x128xf32>
    %cst = arith.constant 0.000000e+00 : f32
    %7 = vector.broadcast %cst : f32 to vector<128x128xf32>
    %8 = arith.maximumf %6, %7 : vector<128x128xf32>
    %c0_5 = arith.constant 0 : index
    %c0_6 = arith.constant 0 : index
    %9 = vector.load %arg4[%c0_5, %c0_6] : memref<128x128xf32, #tpu.memory_space<vmem>>, vector<128x128xf32>
    tpu.vector_store %arg4[%c0_5, %c0_6], %8 {strides = array<i32>} : memref<128x128xf32, #tpu.memory_space<vmem>>, vector<128x128xf32>,
    return
  }
  func.func @transform_0(%arg0: i32) -> (i32, i32) {
    %c0_i32 = arith.constant 0 : i32
    %c0_i32_0 = arith.constant 0 : i32
    return %arg0, %c0_i32 : i32, i32
  }
  func.func @transform_1(%arg0: i32) -> (i32, i32) {
    %c0_i32 = arith.constant 0 : i32
    %c0_i32_0 = arith.constant 0 : i32
    %c0_i32_1 = arith.constant 0 : i32
    return %c0_i32, %c0_i32_0 : i32, i32
  }
  func.func @transform_2(%arg0: i32) -> (i32, i32) {
    %c0_i32 = arith.constant 0 : i32
    %c0_i32_0 = arith.constant 0 : i32
    %c0_i32_1 = arith.constant 0 : i32
    return %c0_i32, %c0_i32_0 : i32, i32
  }
  func.func @transform_3(%arg0: i32) -> (i32, i32) {
    %c0_i32 = arith.constant 0 : i32
    %c0_i32_0 = arith.constant 0 : i32
    return %arg0, %c0_i32 : i32, i32
  }
}

module attributes {stable_mosaic.version = 11 : i64} {
  func.func @_mm_bias_kernel(%arg0: i32, %arg1: memref<16x128xbf16, #tpu.memory_space<vmem>>, %arg2: memref<128x128xbf16, #tpu.memory_space<vmem>>, %arg3: memref<1x128xf32, #tpu.memory_space<vmem>>, %arg4: memref<16x128xf32, #tpu.memory_space<vmem>>) attributes {dimension_semantics = [#tpu.dimension_semantics<parallel>], iteration_bounds = array<i64: 1>, scalar_prefetch = 0 : i64, scratch_operands = 0 : i64, tpu.core_type = #tpu.core_type<tc>, window_params = [{transform_indices = @transform_0, window_bounds = array<i64: 16, 128>}, {pipeline_mode = #tpu.pipeline_mode<synchronous>, transform_indices = @transform_1, window_bounds = array<i64: 128, 128>}, {pipeline_mode = #tpu.pipeline_mode<synchronous>, transform_indices = @transform_2, window_bounds = array<i64: 1, 128>}, {transform_indices = @transform_3, window_bounds = array<i64: 16, 128>}]} {
    %c0 = arith.constant 0 : index
    %c0_0 = arith.constant 0 : index
    %0 = vector.load %arg1[%c0, %c0_0] : memref<16x128xbf16, #tpu.memory_space<vmem>>, vector<16x128xbf16>
    %c0_1 = arith.constant 0 : index
    %c0_2 = arith.constant 0 : index
    %1 = vector.load %arg2[%c0_1, %c0_2] : memref<128x128xbf16, #tpu.memory_space<vmem>>, vector<128x128xbf16>
    %cst = arith.constant dense<0.000000e+00> : vector<16x128xf32>
    %2 = tpu.matmul %0, %1, %cst {dimension_numbers = #tpu.dot_dimension_numbers<[1], [0], [0], [1], [0, 0, 1, 1], [], []>} : vector<16x128xbf16>, vector<128x128xbf16>, vector<16x128xf32> -> vector<16x128xf32>
    %c0_3 = arith.constant 0 : index
    %c0_4 = arith.constant 0 : index
    %3 = vector.load %arg3[%c0_3, %c0_4] : memref<1x128xf32, #tpu.memory_space<vmem>>, vector<1x128xf32>
    %4 = vector.broadcast %3 : vector<1x128xf32> to vector<16x128xf32>
    %5 = arith.addf %2, %4 : vector<16x128xf32>
    %c0_5 = arith.constant 0 : index
    %c0_6 = arith.constant 0 : index
    %6 = vector.load %arg4[%c0_5, %c0_6] : memref<16x128xf32, #tpu.memory_space<vmem>>, vector<16x128xf32>
    tpu.vector_store %arg4[%c0_5, %c0_6], %5 {strides = array<i32>} : memref<16x128xf32, #tpu.memory_space<vmem>>, vector<16x128xf32>,
    return
  }
  func.func @transform_0(%arg0: i32) -> (i32, i32) {
    %c0_i32 = arith.constant 0 : i32
    %c0_i32_0 = arith.constant 0 : i32
    return %arg0, %c0_i32 : i32, i32
  }
  func.func @transform_1(%arg0: i32) -> (i32, i32) {
    %c0_i32 = arith.constant 0 : i32
    %c0_i32_0 = arith.constant 0 : i32
    %c0_i32_1 = arith.constant 0 : i32
    return %c0_i32, %c0_i32_0 : i32, i32
  }
  func.func @transform_2(%arg0: i32) -> (i32, i32) {
    %c0_i32 = arith.constant 0 : i32
    %c0_i32_0 = arith.constant 0 : i32
    %c0_i32_1 = arith.constant 0 : i32
    return %c0_i32, %c0_i32_0 : i32, i32
  }
  func.func @transform_3(%arg0: i32) -> (i32, i32) {
    %c0_i32 = arith.constant 0 : i32
    %c0_i32_0 = arith.constant 0 : i32
    return %arg0, %c0_i32 : i32, i32
  }
}

module attributes {stable_mosaic.version = 11 : i64} {
  func.func @kernel(%arg0: i32, %arg1: memref<1x4x128xf32, #tpu.memory_space<vmem>>, %arg2: memref<32x128xbf16, #tpu.memory_space<vmem>>, %arg3: memref<1x32xf32, #tpu.memory_space<vmem>>, %arg4: memref<1x32xf32, #tpu.memory_space<vmem>>, %arg5: memref<1x4x32xf32, #tpu.memory_space<vmem>>, %arg6: memref<4x32xf32, #tpu.memory_space<vmem>>, %arg7: memref<4x32xf32, #tpu.memory_space<vmem>>) attributes {dimension_semantics = [#tpu.dimension_semantics<arbitrary>], iteration_bounds = array<i64: 4>, scalar_prefetch = 0 : i64, scratch_operands = 2 : i64, tpu.core_type = #tpu.core_type<tc>, window_params = [{transform_indices = @transform_0, window_bounds = array<i64: 1, 4, 128>}, {pipeline_mode = #tpu.pipeline_mode<synchronous>, transform_indices = @transform_1, window_bounds = array<i64: 32, 128>}, {pipeline_mode = #tpu.pipeline_mode<synchronous>, transform_indices = @transform_2, window_bounds = array<i64: 1, 32>}, {pipeline_mode = #tpu.pipeline_mode<synchronous>, transform_indices = @transform_3, window_bounds = array<i64: 1, 32>}, {transform_indices = @transform_4, window_bounds = array<i64: 1, 4, 32>}]} {
    %c0_i32 = arith.constant 0 : i32
    %0 = arith.cmpi eq, %arg0, %c0_i32 : i32
    %1 = arith.extui %0 : i1 to i32
    %c0_i32_0 = arith.constant 0 : i32
    %2 = arith.cmpi ne, %1, %c0_i32_0 : i32
    scf.if %2 {
      %cst_30 = arith.constant 0.000000e+00 : f32
      %69 = vector.broadcast %cst_30 : f32 to vector<4x32xf32>
      %c0_31 = arith.constant 0 : index
      %c0_32 = arith.constant 0 : index
      %70 = vector.load %arg6[%c0_31, %c0_32] : memref<4x32xf32, #tpu.memory_space<vmem>>, vector<4x32xf32>
      tpu.vector_store %arg6[%c0_31, %c0_32], %69 {strides = array<i32>} : memref<4x32xf32, #tpu.memory_space<vmem>>, vector<4x32xf32>,
      %cst_33 = arith.constant 0.000000e+00 : f32
      %71 = vector.broadcast %cst_33 : f32 to vector<4x32xf32>
      %c0_34 = arith.constant 0 : index
      %c0_35 = arith.constant 0 : index
      %72 = vector.load %arg7[%c0_34, %c0_35] : memref<4x32xf32, #tpu.memory_space<vmem>>, vector<4x32xf32>
      tpu.vector_store %arg7[%c0_34, %c0_35], %71 {strides = array<i32>} : memref<4x32xf32, #tpu.memory_space<vmem>>, vector<4x32xf32>,
    } else {
    }
    %c0 = arith.constant 0 : index
    %c0_1 = arith.constant 0 : index
    %c0_2 = arith.constant 0 : index
    %3 = vector.load %arg1[%c0, %c0_1, %c0_2] : memref<1x4x128xf32, #tpu.memory_space<vmem>>, vector<1x4x128xf32>
    %4 = vector.shape_cast %3 : vector<1x4x128xf32> to vector<4x128xf32>
    %c0_3 = arith.constant 0 : index
    %c0_4 = arith.constant 0 : index
    %5 = vector.load %arg7[%c0_3, %c0_4] : memref<4x32xf32, #tpu.memory_space<vmem>>, vector<4x32xf32>
    %6 = arith.truncf %5 : vector<4x32xf32> to vector<4x32xbf16>
    %c0_5 = arith.constant 0 : index
    %c0_6 = arith.constant 0 : index
    %7 = vector.load %arg2[%c0_5, %c0_6] : memref<32x128xbf16, #tpu.memory_space<vmem>>, vector<32x128xbf16>
    %cst = arith.constant dense<0.000000e+00> : vector<4x128xf32>
    %8 = tpu.matmul %6, %7, %cst {dimension_numbers = #tpu.dot_dimension_numbers<[1], [0], [0], [1], [0, 0, 1, 1], [], []>} : vector<4x32xbf16>, vector<32x128xbf16>, vector<4x128xf32> -> vector<4x128xf32>
    %9 = arith.addf %4, %8 : vector<4x128xf32>
    %10 = vector.extract_strided_slice %9 {offsets = [0, 0], sizes = [4, 32], strides = [1, 1]} : vector<4x128xf32> to vector<4x32xf32>
    %11 = arith.negf %10 : vector<4x32xf32>
    %12 = math.exp %11 : vector<4x32xf32>
    %cst_7 = arith.constant 1.000000e+00 : f32
    %13 = vector.broadcast %cst_7 : f32 to vector<4x32xf32>
    %14 = arith.addf %13, %12 : vector<4x32xf32>
    %15 = arith.divf %13, %14 : vector<4x32xf32>
    %16 = vector.extract_strided_slice %9 {offsets = [0, 32], sizes = [4, 32], strides = [1, 1]} : vector<4x128xf32> to vector<4x32xf32>
    %17 = arith.negf %16 : vector<4x32xf32>
    %18 = math.exp %17 : vector<4x32xf32>
    %cst_8 = arith.constant 1.000000e+00 : f32
    %19 = vector.broadcast %cst_8 : f32 to vector<4x32xf32>
    %20 = arith.addf %19, %18 : vector<4x32xf32>
    %21 = arith.divf %19, %20 : vector<4x32xf32>
    %22 = vector.extract_strided_slice %9 {offsets = [0, 64], sizes = [4, 32], strides = [1, 1]} : vector<4x128xf32> to vector<4x32xf32>
    %23 = math.tanh %22 : vector<4x32xf32>
    %24 = vector.extract_strided_slice %9 {offsets = [0, 96], sizes = [4, 32], strides = [1, 1]} : vector<4x128xf32> to vector<4x32xf32>
    %cst_9 = arith.constant dense<0.000000e+00> : vector<4xf32>
    %25 = vector.multi_reduction <add>, %24, %cst_9 [1] : vector<4x32xf32> to vector<4xf32>
    %26 = vector.shape_cast %25 : vector<4xf32> to vector<4x1xf32>
    %cst_10 = arith.constant 3.200000e+01 : f32
    %27 = vector.broadcast %cst_10 : f32 to vector<4x1xf32>
    %28 = arith.divf %26, %27 : vector<4x1xf32>
    %29 = vector.broadcast %28 : vector<4x1xf32> to vector<4x32xf32>
    %30 = arith.subf %24, %29 : vector<4x32xf32>
    %31 = arith.mulf %30, %30 : vector<4x32xf32>
    %cst_11 = arith.constant dense<0.000000e+00> : vector<4xf32>
    %32 = vector.multi_reduction <add>, %31, %cst_11 [1] : vector<4x32xf32> to vector<4xf32>
    %33 = vector.shape_cast %32 : vector<4xf32> to vector<4x1xf32>
    %cst_12 = arith.constant 3.200000e+01 : f32
    %34 = vector.broadcast %cst_12 : f32 to vector<4x1xf32>
    %35 = arith.divf %33, %34 : vector<4x1xf32>
    %36 = vector.broadcast %28 : vector<4x1xf32> to vector<4x32xf32>
    %37 = arith.subf %24, %36 : vector<4x32xf32>
    %cst_13 = arith.constant 9.99999974E-6 : f32
    %38 = vector.broadcast %cst_13 : f32 to vector<4x1xf32>
    %39 = arith.addf %35, %38 : vector<4x1xf32>
    %40 = math.rsqrt %39 : vector<4x1xf32>
    %41 = vector.broadcast %40 : vector<4x1xf32> to vector<4x32xf32>
    %42 = arith.mulf %37, %41 : vector<4x32xf32>
    %c0_14 = arith.constant 0 : index
    %c0_15 = arith.constant 0 : index
    %43 = vector.load %arg3[%c0_14, %c0_15] : memref<1x32xf32, #tpu.memory_space<vmem>>, vector<1x32xf32>
    %44 = vector.broadcast %43 : vector<1x32xf32> to vector<4x32xf32>
    %45 = arith.mulf %42, %44 : vector<4x32xf32>
    %c0_16 = arith.constant 0 : index
    %c0_17 = arith.constant 0 : index
    %46 = vector.load %arg4[%c0_16, %c0_17] : memref<1x32xf32, #tpu.memory_space<vmem>>, vector<1x32xf32>
    %47 = vector.broadcast %46 : vector<1x32xf32> to vector<4x32xf32>
    %48 = arith.addf %45, %47 : vector<4x32xf32>
    %49 = arith.negf %48 : vector<4x32xf32>
    %50 = math.exp %49 : vector<4x32xf32>
    %cst_18 = arith.constant 1.000000e+00 : f32
    %51 = vector.broadcast %cst_18 : f32 to vector<4x32xf32>
    %52 = arith.addf %51, %50 : vector<4x32xf32>
    %53 = arith.divf %51, %52 : vector<4x32xf32>
    %c0_19 = arith.constant 0 : index
    %c0_20 = arith.constant 0 : index
    %54 = vector.load %arg6[%c0_19, %c0_20] : memref<4x32xf32, #tpu.memory_space<vmem>>, vector<4x32xf32>
    %55 = arith.mulf %15, %54 : vector<4x32xf32>
    %56 = arith.mulf %21, %23 : vector<4x32xf32>
    %57 = arith.addf %55, %56 : vector<4x32xf32>
    %cst_21 = arith.constant -1.000000e+01 : f32
    %cst_22 = arith.constant 1.000000e+01 : f32
    %58 = vector.broadcast %cst_21 : f32 to vector<4x32xf32>
    %59 = arith.maximumf %58, %57 : vector<4x32xf32>
    %60 = vector.broadcast %cst_22 : f32 to vector<4x32xf32>
    %61 = arith.minimumf %60, %59 : vector<4x32xf32>
    %62 = math.tanh %61 : vector<4x32xf32>
    %63 = arith.mulf %53, %62 : vector<4x32xf32>
    %c0_23 = arith.constant 0 : index
    %c0_24 = arith.constant 0 : index
    %64 = vector.load %arg6[%c0_23, %c0_24] : memref<4x32xf32, #tpu.memory_space<vmem>>, vector<4x32xf32>
    tpu.vector_store %arg6[%c0_23, %c0_24], %61 {strides = array<i32>} : memref<4x32xf32, #tpu.memory_space<vmem>>, vector<4x32xf32>,
    %c0_25 = arith.constant 0 : index
    %c0_26 = arith.constant 0 : index
    %65 = vector.load %arg7[%c0_25, %c0_26] : memref<4x32xf32, #tpu.memory_space<vmem>>, vector<4x32xf32>
    tpu.vector_store %arg7[%c0_25, %c0_26], %63 {strides = array<i32>} : memref<4x32xf32, #tpu.memory_space<vmem>>, vector<4x32xf32>,
    %c0_27 = arith.constant 0 : index
    %c0_28 = arith.constant 0 : index
    %c0_29 = arith.constant 0 : index
    %66 = vector.load %arg5[%c0_27, %c0_28, %c0_29] : memref<1x4x32xf32, #tpu.memory_space<vmem>>, vector<1x4x32xf32>
    %67 = vector.shape_cast %66 : vector<1x4x32xf32> to vector<4x32xf32>
    %68 = vector.shape_cast %63 : vector<4x32xf32> to vector<1x4x32xf32>
    tpu.vector_store %arg5[%c0_27, %c0_28, %c0_29], %68 {strides = array<i32>} : memref<1x4x32xf32, #tpu.memory_space<vmem>>, vector<1x4x32xf32>,
    return
  }
  func.func @transform_0(%arg0: i32) -> (i32, i32, i32) {
    %c0_i32 = arith.constant 0 : i32
    %c0_i32_0 = arith.constant 0 : i32
    %c0_i32_1 = arith.constant 0 : i32
    return %arg0, %c0_i32, %c0_i32_0 : i32, i32, i32
  }
  func.func @transform_1(%arg0: i32) -> (i32, i32) {
    %c0_i32 = arith.constant 0 : i32
    %c0_i32_0 = arith.constant 0 : i32
    %c0_i32_1 = arith.constant 0 : i32
    return %c0_i32, %c0_i32_0 : i32, i32
  }
  func.func @transform_2(%arg0: i32) -> (i32, i32) {
    %c0_i32 = arith.constant 0 : i32
    %c0_i32_0 = arith.constant 0 : i32
    %c0_i32_1 = arith.constant 0 : i32
    return %c0_i32, %c0_i32_0 : i32, i32
  }
  func.func @transform_3(%arg0: i32) -> (i32, i32) {
    %c0_i32 = arith.constant 0 : i32
    %c0_i32_0 = arith.constant 0 : i32
    %c0_i32_1 = arith.constant 0 : i32
    return %c0_i32, %c0_i32_0 : i32, i32
  }
  func.func @transform_4(%arg0: i32) -> (i32, i32, i32) {
    %c0_i32 = arith.constant 0 : i32
    %c0_i32_0 = arith.constant 0 : i32
    %c0_i32_1 = arith.constant 0 : i32
    return %arg0, %c0_i32, %c0_i32_0 : i32, i32, i32
  }
}

module attributes {stable_mosaic.version = 11 : i64} {
  func.func @_classifier_kernel(%arg0: i32, %arg1: memref<8x64xbf16, #tpu.memory_space<vmem>>, %arg2: memref<64x128xbf16, #tpu.memory_space<vmem>>, %arg3: memref<1x128xf32, #tpu.memory_space<vmem>>, %arg4: memref<8x128xf32, #tpu.memory_space<vmem>>) attributes {dimension_semantics = [#tpu.dimension_semantics<parallel>], iteration_bounds = array<i64: 1>, scalar_prefetch = 0 : i64, scratch_operands = 0 : i64, tpu.core_type = #tpu.core_type<tc>, window_params = [{transform_indices = @transform_0, window_bounds = array<i64: 8, 64>}, {pipeline_mode = #tpu.pipeline_mode<synchronous>, transform_indices = @transform_1, window_bounds = array<i64: 64, 128>}, {pipeline_mode = #tpu.pipeline_mode<synchronous>, transform_indices = @transform_2, window_bounds = array<i64: 1, 128>}, {transform_indices = @transform_3, window_bounds = array<i64: 8, 128>}]} {
    %c0 = arith.constant 0 : index
    %c0_0 = arith.constant 0 : index
    %0 = vector.load %arg1[%c0, %c0_0] : memref<8x64xbf16, #tpu.memory_space<vmem>>, vector<8x64xbf16>
    %c0_1 = arith.constant 0 : index
    %c0_2 = arith.constant 0 : index
    %1 = vector.load %arg2[%c0_1, %c0_2] : memref<64x128xbf16, #tpu.memory_space<vmem>>, vector<64x128xbf16>
    %cst = arith.constant dense<0.000000e+00> : vector<8x128xf32>
    %2 = tpu.matmul %0, %1, %cst {dimension_numbers = #tpu.dot_dimension_numbers<[1], [0], [0], [1], [0, 0, 1, 1], [], []>} : vector<8x64xbf16>, vector<64x128xbf16>, vector<8x128xf32> -> vector<8x128xf32>
    %c0_3 = arith.constant 0 : index
    %c0_4 = arith.constant 0 : index
    %3 = vector.load %arg3[%c0_3, %c0_4] : memref<1x128xf32, #tpu.memory_space<vmem>>, vector<1x128xf32>
    %4 = vector.broadcast %3 : vector<1x128xf32> to vector<8x128xf32>
    %5 = arith.addf %2, %4 : vector<8x128xf32>
    %cst_5 = arith.constant dense<0xFF800000> : vector<8xf32>
    %6 = vector.multi_reduction <maximumf>, %5, %cst_5 [1] : vector<8x128xf32> to vector<8xf32>
    %7 = vector.shape_cast %6 : vector<8xf32> to vector<8x1xf32>
    %8 = vector.broadcast %7 : vector<8x1xf32> to vector<8x128xf32>
    %9 = arith.subf %5, %8 : vector<8x128xf32>
    %10 = math.exp %9 : vector<8x128xf32>
    %cst_6 = arith.constant dense<0.000000e+00> : vector<8xf32>
    %11 = vector.multi_reduction <add>, %10, %cst_6 [1] : vector<8x128xf32> to vector<8xf32>
    %12 = vector.shape_cast %11 : vector<8xf32> to vector<8x1xf32>
    %13 = math.log %12 : vector<8x1xf32>
    %14 = vector.broadcast %13 : vector<8x1xf32> to vector<8x128xf32>
    %15 = arith.subf %9, %14 : vector<8x128xf32>
    %c0_7 = arith.constant 0 : index
    %c0_8 = arith.constant 0 : index
    %16 = vector.load %arg4[%c0_7, %c0_8] : memref<8x128xf32, #tpu.memory_space<vmem>>, vector<8x128xf32>
    tpu.vector_store %arg4[%c0_7, %c0_8], %15 {strides = array<i32>} : memref<8x128xf32, #tpu.memory_space<vmem>>, vector<8x128xf32>,
    return
  }
  func.func @transform_0(%arg0: i32) -> (i32, i32) {
    %c0_i32 = arith.constant 0 : i32
    %c0_i32_0 = arith.constant 0 : i32
    return %arg0, %c0_i32 : i32, i32
  }
  func.func @transform_1(%arg0: i32) -> (i32, i32) {
    %c0_i32 = arith.constant 0 : i32
    %c0_i32_0 = arith.constant 0 : i32
    %c0_i32_1 = arith.constant 0 : i32
    return %c0_i32, %c0_i32_0 : i32, i32
  }
  func.func @transform_2(%arg0: i32) -> (i32, i32) {
    %c0_i32 = arith.constant 0 : i32
    %c0_i32_0 = arith.constant 0 : i32
    %c0_i32_1 = arith.constant 0 : i32
    return %c0_i32, %c0_i32_0 : i32, i32
  }
  func.func @transform_3(%arg0: i32) -> (i32, i32) {
    %c0_i32 = arith.constant 0 : i32
    %c0_i32_0 = arith.constant 0 : i32
    return %arg0, %c0_i32 : i32, i32
  }
}

</mosaic_0001>

<bundles_post_ra>
// kernel: model_forward.9
= control target key start
LH: loop header
LB: loop body
LE: loop exit
PB: predicated region body
PF: predicated region fallthrough
CT: control target
= control target key end

     0   :  { %s1415_s12 = smov 0   ;;  %s1760_s0 = inlined_call_operand.vmem [shape: bf16[2048,128], index: 0, kind: input, shape index: {}]   ;;  %s1761_s1 = inlined_call_operand.vmem [shape: bf16[128,128], index: 1, kind: input, shape index: {}]   ;;  %s1762_s2 = inlined_call_operand.vmem [shape: f32[2048,128], index: 2, kind: output, shape index: {0}]   ;;  %s1763_s3 = inlined_call_operand.vmem [shape: f32[4,2,128], index: 3, kind: output, shape index: {1}]  }
   0x1 LB: > { %s1421_s13 = sadd.s32 4294967295, %s1393_s12   ;;  %p1155_p0 = scmp.ge.s32.totalorder %s1393_s12, 1  ;;  %s1393_s12 = sphi %s1415_s12, %s14_s12  }
   0x2   : > { %p141_p1 = scmp.lt.s32.totalorder %s1393_s12, 5 }
   0x4   : > { %p142_p2 = pnand %p1155_p0, %p141_p1 }
   0x5   : > { %v1347_v0 = vld [vmem:[%s1761_s1] sm:$0xff] (!%p142_p2)   ;;  %s1156_s16 = sshll.u32 (!%p142_p2), %s1421_s13, 6  ;;  %v1348_v1 = vld [vmem:[%s1761_s1 + $0x8] sm:$0xff] (!%p142_p2)   ;;  %v1349_v2 = vld [vmem:[%s1761_s1 + $0x10] sm:$0xff] (!%p142_p2)   ;;  %p181_p4 = scmp.lt.s32.totalorder (!%p142_p2), %s1421_s13, 3  ;;  %vm1061_vm0 = vcmask (!%p142_p2), 1040384  }
   0x6   : > { %145 = sbr.rel (%p142_p2) target bundleno = 395 (0x18b), region = 28  ;;  %p170_p3 = scmp.lt.s32.totalorder (!%p142_p2), %s1156_s16, 255  ;;  %1243 = vmatprep.subr.bf16.mxu0 (!%p142_p2), %v1347_v0  ;;  %1323 = vmatprep.subr.bf16.mxu1 (!%p142_p2), %v1347_v0  ;;  %v1350_v3 = vld [vmem:[%s1761_s1 + $0x18] sm:$0xff] (!%p142_p2)   ;;  %v1351_v5 = vld [vmem:[%s1761_s1 + $0x20] sm:$0xff] (!%p142_p2)   ;;  %v1352_v6 = vld [vmem:[%s1761_s1 + $0x28] sm:$0xff] (!%p142_p2)  }
   0x7   : > { %1244 = vmatpush3.bf16.msra.mxu0 (!%p142_p2), %v1347_v0  ;;  %1331 = vmatpush3.bf16.msra.mxu1 (!%p142_p2), %v1347_v0  ;;  %v1353_v7 = vld [vmem:[%s1761_s1 + $0x30] sm:$0xff] (!%p142_p2)   ;;  %v1354_v8 = vld [vmem:[%s1761_s1 + $0x38] sm:$0xff] (!%p142_p2)  }
   0x8   : > { %1245 = vmatprep.subr.bf16.mxu0 (!%p142_p2), %v1348_v1  ;;  %1324 = vmatprep.subr.bf16.mxu1 (!%p142_p2), %v1348_v1 }
   0xb   : > { %1246 = vmatpush3.bf16.msra.mxu0 (!%p142_p2), %v1348_v1  ;;  %1332 = vmatpush3.bf16.msra.mxu1 (!%p142_p2), %v1348_v1 }
   0xc   : > { %1247 = vmatprep.subr.bf16.mxu0 (!%p142_p2), %v1349_v2  ;;  %1325 = vmatprep.subr.bf16.mxu1 (!%p142_p2), %v1349_v2 }
   0xd   : > { %s1765_s16 = smov (!%p170_p3, %s1156_s16), 255  ;;  %s1767_s13 = smov (!%p181_p4, %s1421_s13), 3 }
   0xe   : > { %s1157_s21 = sshll.u32 %s1765_s16, 2  ;;  %s1159_s8 = sshll.u32 %s1765_s16, 3 }
   0xf   : > { %s1441_s24 = scalar_lea.vmem %s1760_s0, %s1157_s21  ;;  %1248 = vmatpush3.bf16.msra.mxu0 %v1349_v2  ;;  %1333 = vmatpush3.bf16.msra.mxu1 %v1349_v2  ;;  %s1494_s11 = scalar_lea.vmem %s1762_s2, %s1159_s8 }
  0x10   : > { %v1355_v4 = vld [vmem:[%s1441_s24] sm:$0xff]   ;;  %1249 = vmatprep.subr.bf16.mxu0 %v1350_v3  ;;  %1326 = vmatprep.subr.bf16.mxu1 %v1350_v3  ;;  %v1356_v10 = vld [vmem:[%s1441_s24 + $0x8] sm:$0xff]   ;;  %v1357_v11 = vld [vmem:[%s1441_s24 + $0x10] sm:$0xff]   ;;  %s1160_s14 = sshll.u32 %s1767_s13, 1 }
  0x11   : > { %1259 = vmatprep.mubr.bf16.mxu0 %v1355_v4  ;;  %v1371_v9 = vld [vmem:[%s1441_s24 + $0x80] sm:$0xff]   ;;  %v1372_v12 = vld [vmem:[%s1441_s24 + $0x88] sm:$0xff]   ;;  %v1373_v13 = vld [vmem:[%s1441_s24 + $0x90] sm:$0xff]   ;;  %s184_s17 = scalar_lea.vmem %s1763_s3, %s1160_s14 }
  0x12   : > { %1291 = vmatprep.mubr.bf16.mxu1 %v1371_v9  ;;  %v1358_v14 = vld [vmem:[%s1441_s24 + $0x18] sm:$0xff]   ;;  %v1359_v15 = vld [vmem:[%s1441_s24 + $0x20] sm:$0xff]   ;;  %v1360_v18 = vld [vmem:[%s1441_s24 + $0x28] sm:$0xff]  }
  0x13   : > { %1250 = vmatpush3.bf16.msra.mxu0 %v1350_v3  ;;  %1334 = vmatpush3.bf16.msra.mxu1 %v1350_v3  ;;  %v1374_v16 = vld [vmem:[%s1441_s24 + $0x98] sm:$0xff]   ;;  %v1375_v17 = vld [vmem:[%s1441_s24 + $0xa0] sm:$0xff]   ;;  %v1376_v19 = vld [vmem:[%s1441_s24 + $0xa8] sm:$0xff]  }
  0x14   : > { %1251 = vmatprep.subr.bf16.mxu0 %v1351_v5  ;;  %1327 = vmatprep.subr.bf16.mxu1 %v1351_v5  ;;  %v1361_v20 = vld [vmem:[%s1441_s24 + $0x30] sm:$0xff]   ;;  %v1362_v22 = vld [vmem:[%s1441_s24 + $0x38] sm:$0xff]   ;;  %v1363_v24 = vld [vmem:[%s1441_s24 + $0x40] sm:$0xff]  }
  0x15   : > { %v1377_v21 = vld [vmem:[%s1441_s24 + $0xb0] sm:$0xff]   ;;  %v1378_v23 = vld [vmem:[%s1441_s24 + $0xb8] sm:$0xff]   ;;  %v1379_v25 = vld [vmem:[%s1441_s24 + $0xc0] sm:$0xff]  }
  0x16   : > { %v1364_v26 = vld [vmem:[%s1441_s24 + $0x48] sm:$0xff]   ;;  %v1365_v28 = vld [vmem:[%s1441_s24 + $0x50] sm:$0xff]   ;;  %v1366_v30 = vld [vmem:[%s1441_s24 + $0x58] sm:$0xff]  }
  0x17   : > { %1252 = vmatpush3.bf16.msra.mxu0 %v1351_v5  ;;  %1335 = vmatpush3.bf16.msra.mxu1 %v1351_v5  ;;  %v1380_v27 = vld [vmem:[%s1441_s24 + $0xc8] sm:$0xff]   ;;  %v1381_v29 = vld [vmem:[%s1441_s24 + $0xd0] sm:$0xff]   ;;  %v1382_v31 = vld [vmem:[%s1441_s24 + $0xd8] sm:$0xff]  }
  0x18   : > { %1253 = vmatprep.subr.bf16.mxu0 %v1352_v6  ;;  %1328 = vmatprep.subr.bf16.mxu1 %v1352_v6  ;;  %v1367_v32 = vld [vmem:[%s1441_s24 + $0x60] sm:$0xff]   ;;  %v1368_v34 = vld [vmem:[%s1441_s24 + $0x68] sm:$0xff]   ;;  %v1369_v36 = vld [vmem:[%s1441_s24 + $0x70] sm:$0xff]  }
  0x19   : > { %v1383_v33 = vld [vmem:[%s1441_s24 + $0xe0] sm:$0xff]   ;;  %v1384_v35 = vld [vmem:[%s1441_s24 + $0xe8] sm:$0xff]   ;;  %v1385_v37 = vld [vmem:[%s1441_s24 + $0xf0] sm:$0xff]  }
  0x1a   : > { %v1370_v38 = vld [vmem:[%s1441_s24 + $0x78] sm:$0xff]  }
  0x1b   : > { %1254 = vmatpush3.bf16.msra.mxu0 %v1352_v6  ;;  %1336 = vmatpush3.bf16.msra.mxu1 %v1352_v6  ;;  %v1386_v39 = vld [vmem:[%s1441_s24 + $0xf8] sm:$0xff]  }
  0x1c   : > { %1255 = vmatprep.subr.bf16.mxu0 %v1353_v7  ;;  %1329 = vmatprep.subr.bf16.mxu1 %v1353_v7 }
  0x1f   : > { %1256 = vmatpush3.bf16.msra.mxu0 %v1353_v7  ;;  %1337 = vmatpush3.bf16.msra.mxu1 %v1353_v7 }
  0x20   : > { %1257 = vmatprep.subr.bf16.mxu0 %v1354_v8  ;;  %1330 = vmatprep.subr.bf16.mxu1 %v1354_v8 }
  0x23   : > { %1258 = vmatpush3.bf16.msra.mxu0 %v1354_v8  ;;  %1338 = vmatpush3.bf16.msra.mxu1 %v1354_v8 }
  0x26   : > { %1260 = vmatmul.mubr.bf16.vlgmr.msra.gmra.mrb[0].mxu0 %v1356_v10  ;;  %1292 = vmatmul.mubr.bf16.vlgmr.msra.gmra.mrb[0].mxu1 %v1372_v12 }
  0x27   : > { %1263 = vmatprep.mubr.bf16.mxu0 %v1357_v11  ;;  %1295 = vmatprep.mubr.bf16.mxu1 %v1373_v13 }
  0x2e   : > { %1264 = vmatmul.mubr.bf16.gmra.mrb[4].mxu0 %v1358_v14  ;;  %1296 = vmatmul.mubr.bf16.gmra.mrb[4].mxu1 %v1374_v16 }
  0x2f   : > { %1267 = vmatprep.mubr.bf16.mxu0 %v1359_v15  ;;  %1299 = vmatprep.mubr.bf16.mxu1 %v1375_v17 }
  0x36   : > { %1268 = vmatmul.mubr.bf16.gmra.mrb[8].mxu0 %v1360_v18  ;;  %1300 = vmatmul.mubr.bf16.gmra.mrb[8].mxu1 %v1376_v19 }
  0x37   : > { %1271 = vmatprep.mubr.bf16.mxu0 %v1361_v20  ;;  %1303 = vmatprep.mubr.bf16.mxu1 %v1377_v21 }
  0x3e   : > { %1272 = vmatmul.mubr.bf16.gmra.mrb[12].mxu0 %v1362_v22  ;;  %1304 = vmatmul.mubr.bf16.gmra.mrb[12].mxu1 %v1378_v23 }
  0x3f   : > { %1275 = vmatprep.mubr.bf16.mxu0 %v1363_v24  ;;  %1307 = vmatprep.mubr.bf16.mxu1 %v1379_v25 }
  0x46   : > { %1276 = vmatmul.mubr.bf16.gmra.mrb[16].mxu0 %v1364_v26  ;;  %1308 = vmatmul.mubr.bf16.gmra.mrb[16].mxu1 %v1380_v27 }
  0x47   : > { %1279 = vmatprep.mubr.bf16.mxu0 %v1365_v28  ;;  %1311 = vmatprep.mubr.bf16.mxu1 %v1381_v29 }
  0x4e   : > { %1280 = vmatmul.mubr.bf16.gmra.mrb[20].mxu0 %v1366_v30  ;;  %1312 = vmatmul.mubr.bf16.gmra.mrb[20].mxu1 %v1382_v31 }
  0x4f   : > { %1283 = vmatprep.mubr.bf16.mxu0 %v1367_v32  ;;  %1315 = vmatprep.mubr.bf16.mxu1 %v1383_v33 }
  0x56   : > { %1284 = vmatmul.mubr.bf16.gmra.mrb[24].mxu0 %v1368_v34  ;;  %1316 = vmatmul.mubr.bf16.gmra.mrb[24].mxu1 %v1384_v35 }
  0x57   : > { %1287 = vmatprep.mubr.bf16.mxu0 %v1369_v36  ;;  %1319 = vmatprep.mubr.bf16.mxu1 %v1385_v37 }
  0x5e   : > { %1288 = vmatmul.mubr.bf16.gmra.mrb[28].mxu0 %v1370_v38  ;;  %1320 = vmatmul.mubr.bf16.gmra.mrb[28].mxu1 %v1386_v39 }
  0xf9   : > { %v1261_v40 = vpop.f32.mrb[0].mxu0  ;;  %v1496_v41 = vpop.f32.mrb[0].mxu1 }
  0xfa   : > { %797 = vst [vmem:[%s1494_s11 + $0x10] sm:$0xff] %v1261_v40  ;;  %v540_v42 = vpop.f32.mrb[1].mxu0  ;;  %829 = vst [vmem:[%s1494_s11 + $0x110] sm:$0xff] %v1496_v41  ;;  %v1501_v43 = vpop.f32.mrb[1].mxu1  ;;  %v930_v51 = vmul.f32 %v1261_v40, %v1261_v40 }
  0xfb   : > { %795 = vst [vmem:[%s1494_s11] sm:$0xff] %v540_v42  ;;  %v1262_v44 = vpop.f32.mrb[2].mxu0  ;;  %827 = vst [vmem:[%s1494_s11 + $0x100] sm:$0xff] %v1501_v43  ;;  %v1506_v45 = vpop.f32.mrb[2].mxu1  ;;  %v928_v48 = vmul.f32 %v540_v42, %v540_v42 }
  0xfc   : > { %798 = vst [vmem:[%s1494_s11 + $0x18] sm:$0xff] %v1262_v44  ;;  %v543_v46 = vpop.f32.mrb[3].mxu0  ;;  %830 = vst [vmem:[%s1494_s11 + $0x118] sm:$0xff] %v1506_v45  ;;  %v1511_v47 = vpop.f32.mrb[3].mxu1  ;;  %v931_v54 = vmul.f32 %v1262_v44, %v1262_v44 }
  0xfd   : > { %796 = vst [vmem:[%s1494_s11 + $0x8] sm:$0xff] %v543_v46  ;;  %v859_v49 = vadd.f32 %v543_v46, %v540_v42  ;;  %v929_v50 = vmul.f32 %v543_v46, %v543_v46  ;;  %828 = vst [vmem:[%s1494_s11 + $0x108] sm:$0xff] %v1511_v47 }
  0xff   : > { %v860_v52 = vadd.f32 %v1261_v40, %v859_v49  ;;  %v992_v53 = vadd.f32 %v929_v50, %v928_v48 }
 0x101   : > { %v993_v55 = vadd.f32 %v992_v53, %v930_v51  ;;  %v1265_v56 = vpop.f32.mrb[4].mxu0  ;;  %v861_v57 = vadd.f32 %v1262_v44, %v860_v52  ;;  %v1516_v58 = vpop.f32.mrb[4].mxu1 }
 0x102   : > { %801 = vst [vmem:[%s1494_s11 + $0x30] sm:$0xff] %v1265_v56  ;;  %v556_v59 = vpop.f32.mrb[5].mxu0  ;;  %833 = vst [vmem:[%s1494_s11 + $0x130] sm:$0xff] %v1516_v58  ;;  %v1521_v60 = vpop.f32.mrb[5].mxu1  ;;  %v934_v7 = vmul.f32 %v1265_v56, %v1265_v56 }
 0x103   : > { %799 = vst [vmem:[%s1494_s11 + $0x20] sm:$0xff] %v556_v59  ;;  %v862_v61 = vadd.f32 %v861_v57, %v556_v59  ;;  %v932_v62 = vmul.f32 %v556_v59, %v556_v59  ;;  %v994_v63 = vadd.f32 %v993_v55, %v931_v54  ;;  %v1266_v0 = vpop.f32.mrb[6].mxu0  ;;  %831 = vst [vmem:[%s1494_s11 + $0x120] sm:$0xff] %v1521_v60  ;;  %v1526_v1 = vpop.f32.mrb[6].mxu1 }
 0x104   : > { %802 = vst [vmem:[%s1494_s11 + $0x38] sm:$0xff] %v1266_v0  ;;  %v559_v2 = vpop.f32.mrb[7].mxu0  ;;  %834 = vst [vmem:[%s1494_s11 + $0x138] sm:$0xff] %v1526_v1  ;;  %v1531_v3 = vpop.f32.mrb[7].mxu1  ;;  %v935_v10 = vmul.f32 %v1266_v0, %v1266_v0 }
 0x105   : > { %v995_v4 = vadd.f32 %v994_v63, %v932_v62  ;;  %800 = vst [vmem:[%s1494_s11 + $0x28] sm:$0xff] %v559_v2  ;;  %v863_v5 = vadd.f32 %v862_v61, %v559_v2  ;;  %v933_v6 = vmul.f32 %v559_v2, %v559_v2  ;;  %832 = vst [vmem:[%s1494_s11 + $0x128] sm:$0xff] %v1531_v3 }
 0x107   : > { %v864_v8 = vadd.f32 %v1265_v56, %v863_v5  ;;  %v996_v9 = vadd.f32 %v995_v4, %v933_v6 }
 0x109   : > { %v997_v11 = vadd.f32 %v996_v9, %v934_v7  ;;  %v1269_v12 = vpop.f32.mrb[8].mxu0  ;;  %v865_v13 = vadd.f32 %v1266_v0, %v864_v8  ;;  %v1536_v14 = vpop.f32.mrb[8].mxu1 }
 0x10a   : > { %805 = vst [vmem:[%s1494_s11 + $0x50] sm:$0xff] %v1269_v12  ;;  %v572_v15 = vpop.f32.mrb[9].mxu0  ;;  %837 = vst [vmem:[%s1494_s11 + $0x150] sm:$0xff] %v1536_v14  ;;  %v1541_v16 = vpop.f32.mrb[9].mxu1  ;;  %v938_v27 = vmul.f32 %v1269_v12, %v1269_v12 }
 0x10b   : > { %803 = vst [vmem:[%s1494_s11 + $0x40] sm:$0xff] %v572_v15  ;;  %v866_v17 = vadd.f32 %v865_v13, %v572_v15  ;;  %v936_v18 = vmul.f32 %v572_v15, %v572_v15  ;;  %v998_v19 = vadd.f32 %v997_v11, %v935_v10  ;;  %v1270_v20 = vpop.f32.mrb[10].mxu0  ;;  %835 = vst [vmem:[%s1494_s11 + $0x140] sm:$0xff] %v1541_v16  ;;  %v1546_v21 = vpop.f32.mrb[10].mxu1 }
 0x10c   : > { %806 = vst [vmem:[%s1494_s11 + $0x58] sm:$0xff] %v1270_v20  ;;  %v575_v22 = vpop.f32.mrb[11].mxu0  ;;  %838 = vst [vmem:[%s1494_s11 + $0x158] sm:$0xff] %v1546_v21  ;;  %v1551_v23 = vpop.f32.mrb[11].mxu1  ;;  %v939_v30 = vmul.f32 %v1270_v20, %v1270_v20 }
 0x10d   : > { %v999_v24 = vadd.f32 %v998_v19, %v936_v18  ;;  %804 = vst [vmem:[%s1494_s11 + $0x48] sm:$0xff] %v575_v22  ;;  %v867_v25 = vadd.f32 %v866_v17, %v575_v22  ;;  %v937_v26 = vmul.f32 %v575_v22, %v575_v22  ;;  %836 = vst [vmem:[%s1494_s11 + $0x148] sm:$0xff] %v1551_v23 }
 0x10f   : > { %v868_v28 = vadd.f32 %v1269_v12, %v867_v25  ;;  %v1000_v29 = vadd.f32 %v999_v24, %v937_v26 }
 0x111   : > { %v1001_v31 = vadd.f32 %v1000_v29, %v938_v27  ;;  %v1273_v32 = vpop.f32.mrb[12].mxu0  ;;  %v869_v33 = vadd.f32 %v1270_v20, %v868_v28  ;;  %v1556_v34 = vpop.f32.mrb[12].mxu1 }
 0x112   : > { %809 = vst [vmem:[%s1494_s11 + $0x70] sm:$0xff] %v1273_v32  ;;  %v588_v35 = vpop.f32.mrb[13].mxu0  ;;  %841 = vst [vmem:[%s1494_s11 + $0x170] sm:$0xff] %v1556_v34  ;;  %v1561_v36 = vpop.f32.mrb[13].mxu1  ;;  %v942_v51 = vmul.f32 %v1273_v32, %v1273_v32 }
 0x113   : > { %807 = vst [vmem:[%s1494_s11 + $0x60] sm:$0xff] %v588_v35  ;;  %v870_v37 = vadd.f32 %v869_v33, %v588_v35  ;;  %v940_v38 = vmul.f32 %v588_v35, %v588_v35  ;;  %v1002_v39 = vadd.f32 %v1001_v31, %v939_v30  ;;  %v1274_v40 = vpop.f32.mrb[14].mxu0  ;;  %839 = vst [vmem:[%s1494_s11 + $0x160] sm:$0xff] %v1561_v36  ;;  %v1566_v42 = vpop.f32.mrb[14].mxu1 }
 0x114   : > { %810 = vst [vmem:[%s1494_s11 + $0x78] sm:$0xff] %v1274_v40  ;;  %v591_v44 = vpop.f32.mrb[15].mxu0  ;;  %842 = vst [vmem:[%s1494_s11 + $0x178] sm:$0xff] %v1566_v42  ;;  %v1571_v46 = vpop.f32.mrb[15].mxu1  ;;  %v943_v54 = vmul.f32 %v1274_v40, %v1274_v40 }
 0x115   : > { %v1003_v48 = vadd.f32 %v1002_v39, %v940_v38  ;;  %808 = vst [vmem:[%s1494_s11 + $0x68] sm:$0xff] %v591_v44  ;;  %v871_v49 = vadd.f32 %v870_v37, %v591_v44  ;;  %v941_v50 = vmul.f32 %v591_v44, %v591_v44  ;;  %840 = vst [vmem:[%s1494_s11 + $0x168] sm:$0xff] %v1571_v46 }
 0x117   : > { %v872_v52 = vadd.f32 %v1273_v32, %v871_v49  ;;  %v1004_v53 = vadd.f32 %v1003_v48, %v941_v50 }
 0x119   : > { %v1005_v55 = vadd.f32 %v1004_v53, %v942_v51  ;;  %v1277_v56 = vpop.f32.mrb[16].mxu0  ;;  %v873_v57 = vadd.f32 %v1274_v40, %v872_v52  ;;  %v1576_v59 = vpop.f32.mrb[16].mxu1 }
 0x11a   : > { %813 = vst [vmem:[%s1494_s11 + $0x90] sm:$0xff] %v1277_v56  ;;  %v604_v61 = vpop.f32.mrb[17].mxu0  ;;  %845 = vst [vmem:[%s1494_s11 + $0x190] sm:$0xff] %v1576_v59  ;;  %v1581_v62 = vpop.f32.mrb[17].mxu1  ;;  %v946_v11 = vmul.f32 %v1277_v56, %v1277_v56 }
 0x11b   : > { %811 = vst [vmem:[%s1494_s11 + $0x80] sm:$0xff] %v604_v61  ;;  %v874_v63 = vadd.f32 %v873_v57, %v604_v61  ;;  %v944_v0 = vmul.f32 %v604_v61, %v604_v61  ;;  %v1006_v2 = vadd.f32 %v1005_v55, %v943_v54  ;;  %v1278_v4 = vpop.f32.mrb[18].mxu0  ;;  %843 = vst [vmem:[%s1494_s11 + $0x180] sm:$0xff] %v1581_v62  ;;  %v1586_v5 = vpop.f32.mrb[18].mxu1 }
 0x11c   : > { %814 = vst [vmem:[%s1494_s11 + $0x98] sm:$0xff] %v1278_v4  ;;  %v607_v6 = vpop.f32.mrb[19].mxu0  ;;  %846 = vst [vmem:[%s1494_s11 + $0x198] sm:$0xff] %v1586_v5  ;;  %v1591_v7 = vpop.f32.mrb[19].mxu1  ;;  %v947_v15 = vmul.f32 %v1278_v4, %v1278_v4 }
 0x11d   : > { %v1007_v8 = vadd.f32 %v1006_v2, %v944_v0  ;;  %812 = vst [vmem:[%s1494_s11 + $0x88] sm:$0xff] %v607_v6  ;;  %v875_v9 = vadd.f32 %v874_v63, %v607_v6  ;;  %v945_v10 = vmul.f32 %v607_v6, %v607_v6  ;;  %844 = vst [vmem:[%s1494_s11 + $0x188] sm:$0xff] %v1591_v7 }
 0x11f   : > { %v876_v12 = vadd.f32 %v1277_v56, %v875_v9  ;;  %v1008_v13 = vadd.f32 %v1007_v8, %v945_v10 }
 0x121   : > { %v1009_v17 = vadd.f32 %v1008_v13, %v946_v11  ;;  %v1281_v18 = vpop.f32.mrb[20].mxu0  ;;  %v877_v19 = vadd.f32 %v1278_v4, %v876_v12  ;;  %v1596_v20 = vpop.f32.mrb[20].mxu1 }
 0x122   : > { %817 = vst [vmem:[%s1494_s11 + $0xb0] sm:$0xff] %v1281_v18  ;;  %v620_v22 = vpop.f32.mrb[21].mxu0  ;;  %849 = vst [vmem:[%s1494_s11 + $0x1b0] sm:$0xff] %v1596_v20  ;;  %v1601_v24 = vpop.f32.mrb[21].mxu1  ;;  %v950_v37 = vmul.f32 %v1281_v18, %v1281_v18 }
 0x123   : > { %815 = vst [vmem:[%s1494_s11 + $0xa0] sm:$0xff] %v620_v22  ;;  %v878_v25 = vadd.f32 %v877_v19, %v620_v22  ;;  %v948_v26 = vmul.f32 %v620_v22, %v620_v22  ;;  %v1010_v27 = vadd.f32 %v1009_v17, %v947_v15  ;;  %v1282_v28 = vpop.f32.mrb[22].mxu0  ;;  %847 = vst [vmem:[%s1494_s11 + $0x1a0] sm:$0xff] %v1601_v24  ;;  %v1606_v29 = vpop.f32.mrb[22].mxu1 }
 0x124   : > { %818 = vst [vmem:[%s1494_s11 + $0xb8] sm:$0xff] %v1282_v28  ;;  %v623_v30 = vpop.f32.mrb[23].mxu0  ;;  %850 = vst [vmem:[%s1494_s11 + $0x1b8] sm:$0xff] %v1606_v29  ;;  %v1611_v31 = vpop.f32.mrb[23].mxu1  ;;  %v951_v40 = vmul.f32 %v1282_v28, %v1282_v28 }
 0x125   : > { %v1011_v32 = vadd.f32 %v1010_v27, %v948_v26  ;;  %816 = vst [vmem:[%s1494_s11 + $0xa8] sm:$0xff] %v623_v30  ;;  %v879_v33 = vadd.f32 %v878_v25, %v623_v30  ;;  %v949_v35 = vmul.f32 %v623_v30, %v623_v30  ;;  %848 = vst [vmem:[%s1494_s11 + $0x1a8] sm:$0xff] %v1611_v31 }
 0x127   : > { %v880_v38 = vadd.f32 %v1281_v18, %v879_v33  ;;  %v1012_v39 = vadd.f32 %v1011_v32, %v949_v35 }
 0x129   : > { %v1013_v44 = vadd.f32 %v1012_v39, %v950_v37  ;;  %v1285_v48 = vpop.f32.mrb[24].mxu0  ;;  %v881_v49 = vadd.f32 %v1282_v28, %v880_v38  ;;  %v1616_v50 = vpop.f32.mrb[24].mxu1 }
 0x12a   : > { %821 = vst [vmem:[%s1494_s11 + $0xd0] sm:$0xff] %v1285_v48  ;;  %v636_v51 = vpop.f32.mrb[25].mxu0  ;;  %853 = vst [vmem:[%s1494_s11 + $0x1d0] sm:$0xff] %v1616_v50  ;;  %v1621_v52 = vpop.f32.mrb[25].mxu1  ;;  %v954_v6 = vmul.f32 %v1285_v48, %v1285_v48 }
 0x12b   : > { %819 = vst [vmem:[%s1494_s11 + $0xc0] sm:$0xff] %v636_v51  ;;  %v882_v53 = vadd.f32 %v881_v49, %v636_v51  ;;  %v952_v54 = vmul.f32 %v636_v51, %v636_v51  ;;  %v1014_v55 = vadd.f32 %v1013_v44, %v951_v40  ;;  %v1286_v56 = vpop.f32.mrb[26].mxu0  ;;  %851 = vst [vmem:[%s1494_s11 + $0x1c0] sm:$0xff] %v1621_v52  ;;  %v1626_v57 = vpop.f32.mrb[26].mxu1 }
 0x12c   : > { %822 = vst [vmem:[%s1494_s11 + $0xd8] sm:$0xff] %v1286_v56  ;;  %v639_v61 = vpop.f32.mrb[27].mxu0  ;;  %854 = vst [vmem:[%s1494_s11 + $0x1d8] sm:$0xff] %v1626_v57  ;;  %v1631_v63 = vpop.f32.mrb[27].mxu1  ;;  %v955_v10 = vmul.f32 %v1286_v56, %v1286_v56  ;;  %v960_v49 = vmul.f32 %v1501_v43, %v1501_v43 }
 0x12d   : > { %v1015_v0 = vadd.f32 %v1014_v55, %v952_v54  ;;  %820 = vst [vmem:[%s1494_s11 + $0xc8] sm:$0xff] %v639_v61  ;;  %v883_v2 = vadd.f32 %v882_v53, %v639_v61  ;;  %v953_v4 = vmul.f32 %v639_v61, %v639_v61  ;;  %852 = vst [vmem:[%s1494_s11 + $0x1c8] sm:$0xff] %v1631_v63 }
 0x12e   : > { %v962_v61 = vmul.f32 %v1496_v41, %v1496_v41 }
 0x12f   : > { %v884_v8 = vadd.f32 %v1285_v48, %v883_v2  ;;  %v1016_v9 = vadd.f32 %v1015_v0, %v953_v4  ;;  %v963_v4 = vmul.f32 %v1506_v45, %v1506_v45 }
 0x131   : > { %v1017_v11 = vadd.f32 %v1016_v9, %v954_v6  ;;  %v1289_v12 = vpop.f32.mrb[28].mxu0  ;;  %v885_v13 = vadd.f32 %v1286_v56, %v884_v8  ;;  %v1636_v15 = vpop.f32.mrb[28].mxu1  ;;  %v961_v56 = vmul.f32 %v1511_v47, %v1511_v47 }
 0x132   : > { %825 = vst [vmem:[%s1494_s11 + $0xf0] sm:$0xff] %v1289_v12  ;;  %v652_v17 = vpop.f32.mrb[29].mxu0  ;;  %857 = vst [vmem:[%s1494_s11 + $0x1f0] sm:$0xff] %v1636_v15  ;;  %v1641_v18 = vpop.f32.mrb[29].mxu1  ;;  %v958_v37 = vmul.f32 %v1289_v12, %v1289_v12 }
 0x133   : > { %823 = vst [vmem:[%s1494_s11 + $0xe0] sm:$0xff] %v652_v17  ;;  %v886_v19 = vadd.f32 %v885_v13, %v652_v17  ;;  %v956_v22 = vmul.f32 %v652_v17, %v652_v17  ;;  %v1018_v25 = vadd.f32 %v1017_v11, %v955_v10  ;;  %v1290_v26 = vpop.f32.mrb[30].mxu0  ;;  %855 = vst [vmem:[%s1494_s11 + $0x1e0] sm:$0xff] %v1641_v18  ;;  %v1646_v27 = vpop.f32.mrb[30].mxu1 }
 0x134   : > { %826 = vst [vmem:[%s1494_s11 + $0xf8] sm:$0xff] %v1290_v26  ;;  %v655_v28 = vpop.f32.mrb[31].mxu0  ;;  %858 = vst [vmem:[%s1494_s11 + $0x1f8] sm:$0xff] %v1646_v27  ;;  %v1651_v30 = vpop.f32.mrb[31].mxu1  ;;  %v959_v40 = vmul.f32 %v1290_v26, %v1290_v26 }
 0x135   : > { %v1019_v32 = vadd.f32 %v1018_v25, %v956_v22  ;;  %824 = vst [vmem:[%s1494_s11 + $0xe8] sm:$0xff] %v655_v28  ;;  %v887_v33 = vadd.f32 %v886_v19, %v655_v28  ;;  %v957_v35 = vmul.f32 %v655_v28, %v655_v28  ;;  %856 = vst [vmem:[%s1494_s11 + $0x1e8] sm:$0xff] %v1651_v30 }
 0x137   : > { %v888_v38 = vadd.f32 %v1289_v12, %v887_v33  ;;  %v1020_v39 = vadd.f32 %v1019_v32, %v957_v35  ;;  %v965_v12 = vmul.f32 %v1531_v3, %v1531_v3  ;;  %v969_v32 = vmul.f32 %v1551_v23, %v1551_v23 }
 0x139   : > { %v1021_v44 = vadd.f32 %v1020_v39, %v958_v37  ;;  %v889_v48 = vadd.f32 %v1290_v26, %v888_v38 }
 0x13b   : > { %v890_v51 = vadd.f32 %v889_v48, %v1501_v43  ;;  %v1022_v53 = vadd.f32 %v1021_v44, %v959_v40  ;;  %v964_v43 = vmul.f32 %v1521_v60, %v1521_v60  ;;  %v973_v48 = vmul.f32 %v1571_v46, %v1571_v46 }
 0x13d   : > { %v1023_v54 = vadd.f32 %v1022_v53, %v960_v49  ;;  %v891_v55 = vadd.f32 %v890_v51, %v1511_v47 }
 0x13f   : > { %v892_v0 = vadd.f32 %v1496_v41, %v891_v55  ;;  %v1024_v2 = vadd.f32 %v1023_v54, %v961_v56  ;;  %v966_v41 = vmul.f32 %v1516_v58, %v1516_v58 }
 0x141   : > { %v1025_v6 = vadd.f32 %v1024_v2, %v962_v61  ;;  %v893_v8 = vadd.f32 %v1506_v45, %v892_v0  ;;  %v967_v45 = vmul.f32 %v1526_v1, %v1526_v1  ;;  %v977_v0 = vmul.f32 %v1591_v7, %v1591_v7 }
 0x143   : > { %v894_v9 = vadd.f32 %v893_v8, %v1521_v60  ;;  %v1026_v10 = vadd.f32 %v1025_v6, %v963_v4  ;;  %v968_v60 = vmul.f32 %v1541_v16, %v1541_v16 }
 0x145   : > { %v1027_v11 = vadd.f32 %v1026_v10, %v964_v43  ;;  %v895_v47 = vadd.f32 %v894_v9, %v1531_v3 }
 0x147   : > { %v896_v13 = vadd.f32 %v1516_v58, %v895_v47  ;;  %v1028_v17 = vadd.f32 %v1027_v11, %v965_v12  ;;  %v970_v58 = vmul.f32 %v1536_v14, %v1536_v14  ;;  %v981_v11 = vmul.f32 %v1611_v31, %v1611_v31 }
 0x149   : > { %v1029_v19 = vadd.f32 %v1028_v17, %v966_v41  ;;  %v897_v22 = vadd.f32 %v1526_v1, %v896_v13  ;;  %v971_v1 = vmul.f32 %v1546_v21, %v1546_v21 }
 0x14b   : > { %v898_v25 = vadd.f32 %v897_v22, %v1541_v16  ;;  %v1030_v26 = vadd.f32 %v1029_v19, %v967_v45  ;;  %v972_v16 = vmul.f32 %v1561_v36, %v1561_v36  ;;  %v985_v22 = vmul.f32 %v1631_v63, %v1631_v63 }
 0x14d   : > { %v1031_v28 = vadd.f32 %v1030_v26, %v968_v60  ;;  %v899_v3 = vadd.f32 %v898_v25, %v1551_v23 }
 0x14f   : > { %v900_v33 = vadd.f32 %v1536_v14, %v899_v3  ;;  %v1032_v35 = vadd.f32 %v1031_v28, %v969_v32  ;;  %v974_v14 = vmul.f32 %v1556_v34, %v1556_v34  ;;  %v988_v28 = vmul.f32 %v1641_v18, %v1641_v18 }
 0x151   : > { %v1033_v37 = vadd.f32 %v1032_v35, %v970_v58  ;;  %v901_v38 = vadd.f32 %v1546_v21, %v900_v33  ;;  %v975_v21 = vmul.f32 %v1566_v42, %v1566_v42  ;;  %v990_v33 = vmul.f32 %v1636_v15, %v1636_v15 }
 0x153   : > { %v902_v39 = vadd.f32 %v901_v38, %v1561_v36  ;;  %v1034_v40 = vadd.f32 %v1033_v37, %v971_v1  ;;  %v976_v36 = vmul.f32 %v1581_v62, %v1581_v62 }
 0x155   : > { %v1035_v44 = vadd.f32 %v1034_v40, %v972_v16  ;;  %v903_v23 = vadd.f32 %v902_v39, %v1571_v46 }
 0x157   : > { %v904_v49 = vadd.f32 %v1556_v34, %v903_v23  ;;  %v1036_v51 = vadd.f32 %v1035_v44, %v973_v48  ;;  %v978_v34 = vmul.f32 %v1576_v59, %v1576_v59 }
 0x159   : > { %v1037_v53 = vadd.f32 %v1036_v51, %v974_v14  ;;  %v905_v54 = vadd.f32 %v1566_v42, %v904_v49  ;;  %v979_v42 = vmul.f32 %v1586_v5, %v1586_v5 }
 0x15b   : > { %v906_v55 = vadd.f32 %v905_v54, %v1581_v62  ;;  %v1038_v56 = vadd.f32 %v1037_v53, %v975_v21  ;;  %v980_v62 = vmul.f32 %v1601_v24, %v1601_v24 }
 0x15d   : > { %v1039_v61 = vadd.f32 %v1038_v56, %v976_v36  ;;  %v907_v46 = vadd.f32 %v906_v55, %v1591_v7 }
 0x15f   : > { %v908_v2 = vadd.f32 %v1576_v59, %v907_v46  ;;  %v1040_v4 = vadd.f32 %v1039_v61, %v977_v0  ;;  %v982_v59 = vmul.f32 %v1596_v20, %v1596_v20 }
 0x161   : > { %v1041_v6 = vadd.f32 %v1040_v4, %v978_v34  ;;  %v909_v8 = vadd.f32 %v1586_v5, %v908_v2  ;;  %v983_v5 = vmul.f32 %v1606_v29, %v1606_v29 }
 0x163   : > { %v910_v43 = vadd.f32 %v909_v8, %v1601_v24  ;;  %v1042_v9 = vadd.f32 %v1041_v6, %v979_v42  ;;  %v984_v24 = vmul.f32 %v1621_v52, %v1621_v52 }
 0x165   : > { %v1043_v10 = vadd.f32 %v1042_v9, %v980_v62  ;;  %v911_v7 = vadd.f32 %v910_v43, %v1611_v31 }
 0x167   : > { %v912_v47 = vadd.f32 %v1596_v20, %v911_v7  ;;  %v1044_v12 = vadd.f32 %v1043_v10, %v981_v11  ;;  %v986_v20 = vmul.f32 %v1616_v50, %v1616_v50 }
 0x169   : > { %v1045_v41 = vadd.f32 %v1044_v12, %v982_v59  ;;  %v913_v13 = vadd.f32 %v1606_v29, %v912_v47  ;;  %v987_v29 = vmul.f32 %v1626_v57, %v1626_v57 }
 0x16b   : > { %v914_v17 = vadd.f32 %v913_v13, %v1621_v52  ;;  %v1046_v45 = vadd.f32 %v1045_v41, %v983_v5 }
 0x16d   : > { %v1047_v19 = vadd.f32 %v1046_v45, %v984_v24  ;;  %v915_v31 = vadd.f32 %v914_v17, %v1631_v63 }
 0x16f   : > { %v916_v60 = vadd.f32 %v1616_v50, %v915_v31  ;;  %v1048_v25 = vadd.f32 %v1047_v19, %v985_v22  ;;  %v989_v50 = vmul.f32 %v1651_v30, %v1651_v30 }
 0x171   : > { %v1049_v26 = vadd.f32 %v1048_v25, %v986_v20  ;;  %v917_v52 = vadd.f32 %v1626_v57, %v916_v60  ;;  %v991_v57 = vmul.f32 %v1646_v27, %v1646_v27 }
 0x173   : > { %v918_v3 = vadd.f32 %v917_v52, %v1641_v18  ;;  %v1050_v32 = vadd.f32 %v1049_v26, %v987_v29 }
 0x175   : > { %v1051_v63 = vadd.f32 %v1050_v32, %v988_v28  ;;  %v919_v58 = vadd.f32 %v918_v3, %v1651_v30 }
 0x177   : > { %v920_v35 = vadd.f32 %v1636_v15, %v919_v58  ;;  %v1052_v1 = vadd.f32 %v1051_v63, %v989_v50 }
 0x179   : > { %v921_v37 = vadd.f32 %v1646_v27, %v920_v35  ;;  %v1053_v18 = vadd.f32 %v1052_v1, %v990_v33 }
 0x17b   : > { %v922_v38 = vrot.slane %v921_v37, 4  ;;  %v1054_v16 = vadd.f32 %v1053_v18, %v991_v57 }
 0x17d   : > { %v923_v39 = vadd.f32 %v922_v38, %v921_v37  ;;  %v1055_v40 = vrot.slane %v1054_v16, 4 }
 0x17f   : > { %v924_v44 = vrot.slane %v923_v39, 2  ;;  %v1056_v23 = vadd.f32 %v1055_v40, %v1054_v16 }
 0x181   : > { %v925_v30 = vadd.f32 %v924_v44, %v923_v39  ;;  %v1057_v48 = vrot.slane %v1056_v23, 2 }
 0x183   : > { %v926_v14 = vrot.slane %v925_v30, 1  ;;  %v1058_v49 = vadd.f32 %v1057_v48, %v1056_v23 }
 0x185   : > { %v1059_v15 = vrot.slane %v1058_v49, 1  ;;  %v927_v27 = vadd.f32 %v926_v14, %v925_v30 }
 0x187   : > { %v1060_v51 = vadd.f32 %v1059_v15, %v1058_v49 }
 0x189   : > { %v1062_v21 = vsel %vm1061_vm0, %v927_v27, %v1060_v51 }
 0x18a   : > { %1063 = vst [vmem:[%s184_s17] sm:$0x3] %v1062_v21 }
 0x18b PF: > { %s14_s12 = sadd.s32 1, %s1393_s12  }
 0x18c   : > { %p11_p5 = scmp.ge.s32.totalorder %s14_s12, 6  }
 0x18e   :  { %13 = sbr.rel (!%p11_p5) target bundleno = 1 (0x1), region = 70 }

// kernel: model_forward.10
= control target key start
LH: loop header
LB: loop body
LE: loop exit
PB: predicated region body
PF: predicated region fallthrough
CT: control target
= control target key end

     0   :  { %s935_s12 = smov 0   ;;  %s1488_s0 = inlined_call_operand.vmem [shape: f32[2048,128], index: 0, kind: input, shape index: {}]   ;;  %s1489_s1 = inlined_call_operand.vmem [shape: f32[1,128], index: 1, kind: input, shape index: {}]   ;;  %s1490_s2 = inlined_call_operand.vmem [shape: f32[1,128], index: 2, kind: input, shape index: {}]   ;;  %s1491_s3 = inlined_call_operand.vmem [shape: f32[2048,128], index: 3, kind: output, shape index: {}]  }
   0x1 LB: > { %s884_s13 = sadd.s32 4294967295, %s913_s12   ;;  %p888_p0 = scmp.ge.s32.totalorder %s913_s12, 1  ;;  %s913_s12 = sphi %s935_s12, %s13_s12  }
   0x2   : > { %p138_p1 = scmp.lt.s32.totalorder %s913_s12, 3 }
   0x4   : > { %p139_p2 = pnand %p888_p0, %p138_p1 }
   0x5   : > { %s889_s14 = sshll.u32 (!%p139_p2), %s884_s13, 7  ;;  %v946_v0 = vld [vmem:[%s1489_s1] ss:$0 sm:$0xff] (!%p139_p2) }
   0x6   : > { %142 = sbr.rel (%p139_p2) target bundleno = 118 (0x76), region = 32  ;;  %p163_p3 = scmp.lt.s32.totalorder (!%p139_p2), %s889_s14, 255  ;;  %v956_v1 = vld [vmem:[%s1490_s2] ss:$0 sm:$0xff] (!%p139_p2) }
   0xd   : > { %s1493_s14 = smov (!%p163_p3, %s889_s14), 255 }
   0xe   : > { %s890_s15 = sshll.u32 %s1493_s14, 3 }
   0xf   : > { %s951_s20 = scalar_lea.vmem %s1488_s0, %s890_s15  ;;  %s979_s25 = scalar_lea.vmem %s1491_s3, %s890_s15 }
  0x10   : > { %v174_v2 = vld [vmem:[%s951_s20] sm:$0xff]  ;;  %v175_v3 = vld [vmem:[%s951_s20 + $0x8] sm:$0xff]  ;;  %v176_v4 = vld [vmem:[%s951_s20 + $0x10] sm:$0xff] }
  0x11   : > { %v309_v5 = vmul.f32 %v946_v0, %v174_v2  ;;  %v310_v6 = vmul.f32 %v946_v0, %v175_v3  ;;  %v311_v7 = vmul.f32 %v946_v0, %v176_v4  ;;  %v177_v8 = vld [vmem:[%s951_s20 + $0x18] sm:$0xff]  ;;  %v178_v9 = vld [vmem:[%s951_s20 + $0x20] sm:$0xff]  ;;  %v179_v10 = vld [vmem:[%s951_s20 + $0x28] sm:$0xff] }
  0x12   : > { %v312_v11 = vmul.f32 %v946_v0, %v177_v8  ;;  %v313_v12 = vmul.f32 %v946_v0, %v178_v9  ;;  %v314_v13 = vmul.f32 %v946_v0, %v179_v10  ;;  %v180_v14 = vld [vmem:[%s951_s20 + $0x30] sm:$0xff]  ;;  %v181_v15 = vld [vmem:[%s951_s20 + $0x38] sm:$0xff]  ;;  %v182_v24 = vld [vmem:[%s951_s20 + $0x40] sm:$0xff] }
  0x13   : > { %v444_v16 = vadd.f32 %v956_v1, %v309_v5  ;;  %v445_v17 = vadd.f32 %v956_v1, %v310_v6  ;;  %v446_v18 = vadd.f32 %v956_v1, %v311_v7  ;;  %v315_v19 = vmul.f32 %v946_v0, %v180_v14  ;;  %v183_v25 = vld [vmem:[%s951_s20 + $0x48] sm:$0xff]  ;;  %v184_v26 = vld [vmem:[%s951_s20 + $0x50] sm:$0xff]  ;;  %v185_v31 = vld [vmem:[%s951_s20 + $0x58] sm:$0xff] }
  0x14   : > { %v447_v20 = vadd.f32 %v956_v1, %v312_v11  ;;  %v448_v21 = vadd.f32 %v956_v1, %v313_v12  ;;  %v449_v22 = vadd.f32 %v956_v1, %v314_v13  ;;  %v316_v23 = vmul.f32 %v946_v0, %v181_v15  ;;  %v186_v32 = vld [vmem:[%s951_s20 + $0x60] sm:$0xff]  ;;  %v187_v33 = vld [vmem:[%s951_s20 + $0x68] sm:$0xff]  ;;  %v188_v38 = vld [vmem:[%s951_s20 + $0x70] sm:$0xff] }
  0x15   : > { %v572_v27 = vmax.f32 %v444_v16, 0.0  ;;  %v573_v28 = vmax.f32 %v445_v17, 0.0  ;;  %v574_v29 = vmax.f32 %v446_v18, 0.0  ;;  %v450_v30 = vadd.f32 %v956_v1, %v315_v19  ;;  %v189_v43 = vld [vmem:[%s951_s20 + $0x78] sm:$0xff]  ;;  %v190_v56 = vld [vmem:[%s951_s20 + $0x80] sm:$0xff]  ;;  %v191_v57 = vld [vmem:[%s951_s20 + $0x88] sm:$0xff] }
  0x16   : > { %v575_v34 = vmax.f32 %v447_v20, 0.0  ;;  %v576_v35 = vmax.f32 %v448_v21, 0.0  ;;  %v577_v36 = vmax.f32 %v449_v22, 0.0  ;;  %v451_v37 = vadd.f32 %v956_v1, %v316_v23  ;;  %v192_v58 = vld [vmem:[%s951_s20 + $0x90] sm:$0xff]  ;;  %v193_v63 = vld [vmem:[%s951_s20 + $0x98] sm:$0xff]  ;;  %v194_v2 = vld [vmem:[%s951_s20 + $0xa0] sm:$0xff] }
  0x17   : > { %700 = vst [vmem:[%s979_s25] sm:$0xff] %v572_v27  ;;  %701 = vst [vmem:[%s979_s25 + $0x8] sm:$0xff] %v573_v28  ;;  %v578_v39 = vmax.f32 %v450_v30, 0.0  ;;  %v317_v40 = vmul.f32 %v946_v0, %v182_v24  ;;  %v318_v41 = vmul.f32 %v946_v0, %v183_v25  ;;  %v319_v42 = vmul.f32 %v946_v0, %v184_v26  ;;  %v195_v3 = vld [vmem:[%s951_s20 + $0xa8] sm:$0xff]  ;;  %v196_v8 = vld [vmem:[%s951_s20 + $0xb0] sm:$0xff] }
  0x18   : > { %702 = vst [vmem:[%s979_s25 + $0x10] sm:$0xff] %v574_v29  ;;  %703 = vst [vmem:[%s979_s25 + $0x18] sm:$0xff] %v575_v34  ;;  %v579_v44 = vmax.f32 %v451_v37, 0.0  ;;  %v320_v45 = vmul.f32 %v946_v0, %v185_v31  ;;  %v321_v46 = vmul.f32 %v946_v0, %v186_v32  ;;  %v322_v47 = vmul.f32 %v946_v0, %v187_v33  ;;  %v197_v13 = vld [vmem:[%s951_s20 + $0xb8] sm:$0xff]  ;;  %v198_v26 = vld [vmem:[%s951_s20 + $0xc0] sm:$0xff] }
  0x19   : > { %704 = vst [vmem:[%s979_s25 + $0x20] sm:$0xff] %v576_v35  ;;  %705 = vst [vmem:[%s979_s25 + $0x28] sm:$0xff] %v577_v36  ;;  %v452_v48 = vadd.f32 %v956_v1, %v317_v40  ;;  %v453_v49 = vadd.f32 %v956_v1, %v318_v41  ;;  %v454_v50 = vadd.f32 %v956_v1, %v319_v42  ;;  %v199_v27 = vld [vmem:[%s951_s20 + $0xc8] sm:$0xff]  ;;  %v200_v28 = vld [vmem:[%s951_s20 + $0xd0] sm:$0xff] }
  0x1a   : > { %706 = vst [vmem:[%s979_s25 + $0x30] sm:$0xff] %v578_v39  ;;  %v323_v51 = vmul.f32 %v946_v0, %v188_v38  ;;  %707 = vst [vmem:[%s979_s25 + $0x38] sm:$0xff] %v579_v44  ;;  %v455_v52 = vadd.f32 %v956_v1, %v320_v45  ;;  %v456_v53 = vadd.f32 %v956_v1, %v321_v46  ;;  %v201_v33 = vld [vmem:[%s951_s20 + $0xd8] sm:$0xff]  ;;  %v202_v34 = vld [vmem:[%s951_s20 + $0xe0] sm:$0xff] }
  0x1b   : > { %v457_v54 = vadd.f32 %v956_v1, %v322_v47  ;;  %v324_v55 = vmul.f32 %v946_v0, %v189_v43  ;;  %v580_v59 = vmax.f32 %v452_v48, 0.0  ;;  %v581_v60 = vmax.f32 %v453_v49, 0.0  ;;  %v203_v35 = vld [vmem:[%s951_s20 + $0xe8] sm:$0xff]  ;;  %v204_v40 = vld [vmem:[%s951_s20 + $0xf0] sm:$0xff]  ;;  %v205_v45 = vld [vmem:[%s951_s20 + $0xf8] sm:$0xff] }
  0x1c   : > { %v582_v61 = vmax.f32 %v454_v50, 0.0  ;;  %v458_v62 = vadd.f32 %v956_v1, %v323_v51  ;;  %v583_v4 = vmax.f32 %v455_v52, 0.0  ;;  %v584_v5 = vmax.f32 %v456_v53, 0.0 }
  0x1d   : > { %v585_v6 = vmax.f32 %v457_v54, 0.0  ;;  %v459_v7 = vadd.f32 %v956_v1, %v324_v55  ;;  %708 = vst [vmem:[%s979_s25 + $0x40] sm:$0xff] %v580_v59  ;;  %709 = vst [vmem:[%s979_s25 + $0x48] sm:$0xff] %v581_v60  ;;  %v325_v10 = vmul.f32 %v946_v0, %v190_v56  ;;  %v326_v11 = vmul.f32 %v946_v0, %v191_v57  ;;  %v207_v59 = vld [vmem:[%s951_s20 + $0x108] sm:$0xff]  ;;  %v208_v60 = vld [vmem:[%s951_s20 + $0x110] sm:$0xff] }
  0x1e   : > { %710 = vst [vmem:[%s979_s25 + $0x50] sm:$0xff] %v582_v61  ;;  %v586_v9 = vmax.f32 %v458_v62, 0.0  ;;  %v327_v12 = vmul.f32 %v946_v0, %v192_v58  ;;  %711 = vst [vmem:[%s979_s25 + $0x58] sm:$0xff] %v583_v4  ;;  %v328_v15 = vmul.f32 %v946_v0, %v193_v63  ;;  %v329_v16 = vmul.f32 %v946_v0, %v194_v2  ;;  %v206_v58 = vld [vmem:[%s951_s20 + $0x100] sm:$0xff] }
  0x1f   : > { %712 = vst [vmem:[%s979_s25 + $0x60] sm:$0xff] %v584_v5  ;;  %713 = vst [vmem:[%s979_s25 + $0x68] sm:$0xff] %v585_v6  ;;  %v587_v14 = vmax.f32 %v459_v7, 0.0  ;;  %v330_v17 = vmul.f32 %v946_v0, %v195_v3  ;;  %v460_v18 = vadd.f32 %v956_v1, %v325_v10  ;;  %v461_v19 = vadd.f32 %v956_v1, %v326_v11  ;;  %v209_v3 = vld [vmem:[%s951_s20 + $0x118] sm:$0xff]  ;;  %v210_v4 = vld [vmem:[%s951_s20 + $0x120] sm:$0xff] }
  0x20   : > { %714 = vst [vmem:[%s979_s25 + $0x70] sm:$0xff] %v586_v9  ;;  %v462_v20 = vadd.f32 %v956_v1, %v327_v12  ;;  %v331_v21 = vmul.f32 %v946_v0, %v196_v8  ;;  %v463_v22 = vadd.f32 %v956_v1, %v328_v15  ;;  %v464_v23 = vadd.f32 %v956_v1, %v329_v16  ;;  %v211_v5 = vld [vmem:[%s951_s20 + $0x128] sm:$0xff]  ;;  %v212_v10 = vld [vmem:[%s951_s20 + $0x130] sm:$0xff]  ;;  %v213_v15 = vld [vmem:[%s951_s20 + $0x138] sm:$0xff] }
  0x21   : > { %715 = vst [vmem:[%s979_s25 + $0x78] sm:$0xff] %v587_v14  ;;  %v465_v24 = vadd.f32 %v956_v1, %v330_v17  ;;  %v332_v25 = vmul.f32 %v946_v0, %v197_v13  ;;  %v588_v29 = vmax.f32 %v460_v18, 0.0  ;;  %v589_v30 = vmax.f32 %v461_v19, 0.0 }
  0x22   : > { %v590_v31 = vmax.f32 %v462_v20, 0.0  ;;  %v466_v32 = vadd.f32 %v956_v1, %v331_v21  ;;  %v591_v36 = vmax.f32 %v463_v22, 0.0  ;;  %v592_v37 = vmax.f32 %v464_v23, 0.0 }
  0x23   : > { %v593_v38 = vmax.f32 %v465_v24, 0.0  ;;  %v467_v39 = vadd.f32 %v956_v1, %v332_v25  ;;  %716 = vst [vmem:[%s979_s25 + $0x80] sm:$0xff] %v588_v29  ;;  %717 = vst [vmem:[%s979_s25 + $0x88] sm:$0xff] %v589_v30  ;;  %v333_v42 = vmul.f32 %v946_v0, %v198_v26  ;;  %v334_v43 = vmul.f32 %v946_v0, %v199_v27  ;;  %v215_v29 = vld [vmem:[%s951_s20 + $0x148] sm:$0xff]  ;;  %v216_v30 = vld [vmem:[%s951_s20 + $0x150] sm:$0xff] }
  0x24   : > { %718 = vst [vmem:[%s979_s25 + $0x90] sm:$0xff] %v590_v31  ;;  %v594_v41 = vmax.f32 %v466_v32, 0.0  ;;  %v335_v44 = vmul.f32 %v946_v0, %v200_v28  ;;  %719 = vst [vmem:[%s979_s25 + $0x98] sm:$0xff] %v591_v36  ;;  %v336_v47 = vmul.f32 %v946_v0, %v201_v33  ;;  %v337_v48 = vmul.f32 %v946_v0, %v202_v34  ;;  %v214_v28 = vld [vmem:[%s951_s20 + $0x140] sm:$0xff] }
  0x25   : > { %720 = vst [vmem:[%s979_s25 + $0xa0] sm:$0xff] %v592_v37  ;;  %721 = vst [vmem:[%s979_s25 + $0xa8] sm:$0xff] %v593_v38  ;;  %v595_v46 = vmax.f32 %v467_v39, 0.0  ;;  %v338_v49 = vmul.f32 %v946_v0, %v203_v35  ;;  %v468_v50 = vadd.f32 %v956_v1, %v333_v42  ;;  %v469_v51 = vadd.f32 %v956_v1, %v334_v43  ;;  %v217_v35 = vld [vmem:[%s951_s20 + $0x158] sm:$0xff]  ;;  %v218_v36 = vld [vmem:[%s951_s20 + $0x160] sm:$0xff] }
  0x26   : > { %722 = vst [vmem:[%s979_s25 + $0xb0] sm:$0xff] %v594_v41  ;;  %v470_v52 = vadd.f32 %v956_v1, %v335_v44  ;;  %v339_v53 = vmul.f32 %v946_v0, %v204_v40  ;;  %v471_v54 = vadd.f32 %v956_v1, %v336_v47  ;;  %v472_v55 = vadd.f32 %v956_v1, %v337_v48  ;;  %v219_v37 = vld [vmem:[%s951_s20 + $0x168] sm:$0xff]  ;;  %v220_v42 = vld [vmem:[%s951_s20 + $0x170] sm:$0xff]  ;;  %v221_v47 = vld [vmem:[%s951_s20 + $0x178] sm:$0xff] }
  0x27   : > { %723 = vst [vmem:[%s979_s25 + $0xb8] sm:$0xff] %v595_v46  ;;  %v473_v56 = vadd.f32 %v956_v1, %v338_v49  ;;  %v340_v57 = vmul.f32 %v946_v0, %v205_v45  ;;  %v596_v61 = vmax.f32 %v468_v50, 0.0  ;;  %v597_v62 = vmax.f32 %v469_v51, 0.0 }
  0x28   : > { %v598_v63 = vmax.f32 %v470_v52, 0.0  ;;  %v474_v2 = vadd.f32 %v956_v1, %v339_v53  ;;  %v599_v6 = vmax.f32 %v471_v54, 0.0  ;;  %v600_v7 = vmax.f32 %v472_v55, 0.0 }
  0x29   : > { %v601_v8 = vmax.f32 %v473_v56, 0.0  ;;  %v475_v9 = vadd.f32 %v956_v1, %v340_v57  ;;  %724 = vst [vmem:[%s979_s25 + $0xc0] sm:$0xff] %v596_v61  ;;  %725 = vst [vmem:[%s979_s25 + $0xc8] sm:$0xff] %v597_v62  ;;  %v341_v12 = vmul.f32 %v946_v0, %v206_v58  ;;  %v342_v13 = vmul.f32 %v946_v0, %v207_v59  ;;  %v223_v61 = vld [vmem:[%s951_s20 + $0x188] sm:$0xff]  ;;  %v224_v62 = vld [vmem:[%s951_s20 + $0x190] sm:$0xff] }
  0x2a   : > { %726 = vst [vmem:[%s979_s25 + $0xd0] sm:$0xff] %v598_v63  ;;  %v602_v11 = vmax.f32 %v474_v2, 0.0  ;;  %v343_v14 = vmul.f32 %v946_v0, %v208_v60  ;;  %727 = vst [vmem:[%s979_s25 + $0xd8] sm:$0xff] %v599_v6  ;;  %v344_v17 = vmul.f32 %v946_v0, %v209_v3  ;;  %v345_v18 = vmul.f32 %v946_v0, %v210_v4  ;;  %v222_v60 = vld [vmem:[%s951_s20 + $0x180] sm:$0xff] }
  0x2b   : > { %728 = vst [vmem:[%s979_s25 + $0xe0] sm:$0xff] %v600_v7  ;;  %729 = vst [vmem:[%s979_s25 + $0xe8] sm:$0xff] %v601_v8  ;;  %v603_v16 = vmax.f32 %v475_v9, 0.0  ;;  %v346_v19 = vmul.f32 %v946_v0, %v211_v5  ;;  %v476_v20 = vadd.f32 %v956_v1, %v341_v12  ;;  %v477_v21 = vadd.f32 %v956_v1, %v342_v13  ;;  %v225_v5 = vld [vmem:[%s951_s20 + $0x198] sm:$0xff]  ;;  %v226_v6 = vld [vmem:[%s951_s20 + $0x1a0] sm:$0xff] }
  0x2c   : > { %730 = vst [vmem:[%s979_s25 + $0xf0] sm:$0xff] %v602_v11  ;;  %v478_v22 = vadd.f32 %v956_v1, %v343_v14  ;;  %v347_v23 = vmul.f32 %v946_v0, %v212_v10  ;;  %v479_v24 = vadd.f32 %v956_v1, %v344_v17  ;;  %v480_v25 = vadd.f32 %v956_v1, %v345_v18  ;;  %v227_v7 = vld [vmem:[%s951_s20 + $0x1a8] sm:$0xff]  ;;  %v228_v12 = vld [vmem:[%s951_s20 + $0x1b0] sm:$0xff]  ;;  %v229_v17 = vld [vmem:[%s951_s20 + $0x1b8] sm:$0xff] }
  0x2d   : > { %731 = vst [vmem:[%s979_s25 + $0xf8] sm:$0xff] %v603_v16  ;;  %v481_v26 = vadd.f32 %v956_v1, %v346_v19  ;;  %v348_v27 = vmul.f32 %v946_v0, %v213_v15  ;;  %v604_v31 = vmax.f32 %v476_v20, 0.0  ;;  %v605_v32 = vmax.f32 %v477_v21, 0.0 }
  0x2e   : > { %v606_v33 = vmax.f32 %v478_v22, 0.0  ;;  %v482_v34 = vadd.f32 %v956_v1, %v347_v23  ;;  %v607_v38 = vmax.f32 %v479_v24, 0.0  ;;  %v608_v39 = vmax.f32 %v480_v25, 0.0 }
  0x2f   : > { %v609_v40 = vmax.f32 %v481_v26, 0.0  ;;  %v483_v41 = vadd.f32 %v956_v1, %v348_v27  ;;  %732 = vst [vmem:[%s979_s25 + $0x100] sm:$0xff] %v604_v31  ;;  %733 = vst [vmem:[%s979_s25 + $0x108] sm:$0xff] %v605_v32  ;;  %v349_v44 = vmul.f32 %v946_v0, %v214_v28  ;;  %v350_v45 = vmul.f32 %v946_v0, %v215_v29  ;;  %v231_v31 = vld [vmem:[%s951_s20 + $0x1c8] sm:$0xff]  ;;  %v232_v32 = vld [vmem:[%s951_s20 + $0x1d0] sm:$0xff] }
  0x30   : > { %734 = vst [vmem:[%s979_s25 + $0x110] sm:$0xff] %v606_v33  ;;  %v610_v43 = vmax.f32 %v482_v34, 0.0  ;;  %v351_v46 = vmul.f32 %v946_v0, %v216_v30  ;;  %735 = vst [vmem:[%s979_s25 + $0x118] sm:$0xff] %v607_v38  ;;  %v352_v49 = vmul.f32 %v946_v0, %v217_v35  ;;  %v353_v50 = vmul.f32 %v946_v0, %v218_v36  ;;  %v230_v30 = vld [vmem:[%s951_s20 + $0x1c0] sm:$0xff] }
  0x31   : > { %736 = vst [vmem:[%s979_s25 + $0x120] sm:$0xff] %v608_v39  ;;  %737 = vst [vmem:[%s979_s25 + $0x128] sm:$0xff] %v609_v40  ;;  %v611_v48 = vmax.f32 %v483_v41, 0.0  ;;  %v354_v51 = vmul.f32 %v946_v0, %v219_v37  ;;  %v484_v52 = vadd.f32 %v956_v1, %v349_v44  ;;  %v485_v53 = vadd.f32 %v956_v1, %v350_v45  ;;  %v233_v37 = vld [vmem:[%s951_s20 + $0x1d8] sm:$0xff]  ;;  %v234_v38 = vld [vmem:[%s951_s20 + $0x1e0] sm:$0xff] }
  0x32   : > { %738 = vst [vmem:[%s979_s25 + $0x130] sm:$0xff] %v610_v43  ;;  %v486_v54 = vadd.f32 %v956_v1, %v351_v46  ;;  %v355_v55 = vmul.f32 %v946_v0, %v220_v42  ;;  %v487_v56 = vadd.f32 %v956_v1, %v352_v49  ;;  %v488_v57 = vadd.f32 %v956_v1, %v353_v50  ;;  %v235_v39 = vld [vmem:[%s951_s20 + $0x1e8] sm:$0xff]  ;;  %v236_v44 = vld [vmem:[%s951_s20 + $0x1f0] sm:$0xff]  ;;  %v237_v49 = vld [vmem:[%s951_s20 + $0x1f8] sm:$0xff] }
  0x33   : > { %739 = vst [vmem:[%s979_s25 + $0x138] sm:$0xff] %v611_v48  ;;  %v489_v58 = vadd.f32 %v956_v1, %v354_v51  ;;  %v356_v59 = vmul.f32 %v946_v0, %v221_v47  ;;  %v612_v63 = vmax.f32 %v484_v52, 0.0  ;;  %v613_v2 = vmax.f32 %v485_v53, 0.0 }
  0x34   : > { %v614_v3 = vmax.f32 %v486_v54, 0.0  ;;  %v490_v4 = vadd.f32 %v956_v1, %v355_v55  ;;  %v615_v8 = vmax.f32 %v487_v56, 0.0  ;;  %v616_v9 = vmax.f32 %v488_v57, 0.0 }
  0x35   : > { %v617_v10 = vmax.f32 %v489_v58, 0.0  ;;  %v491_v11 = vadd.f32 %v956_v1, %v356_v59  ;;  %740 = vst [vmem:[%s979_s25 + $0x140] sm:$0xff] %v612_v63  ;;  %741 = vst [vmem:[%s979_s25 + $0x148] sm:$0xff] %v613_v2  ;;  %v357_v14 = vmul.f32 %v946_v0, %v222_v60  ;;  %v358_v15 = vmul.f32 %v946_v0, %v223_v61  ;;  %v239_v63 = vld [vmem:[%s951_s20 + $0x208] sm:$0xff]  ;;  %v240_v2 = vld [vmem:[%s951_s20 + $0x210] sm:$0xff] }
  0x36   : > { %742 = vst [vmem:[%s979_s25 + $0x150] sm:$0xff] %v614_v3  ;;  %v618_v13 = vmax.f32 %v490_v4, 0.0  ;;  %v359_v16 = vmul.f32 %v946_v0, %v224_v62  ;;  %743 = vst [vmem:[%s979_s25 + $0x158] sm:$0xff] %v615_v8  ;;  %v360_v19 = vmul.f32 %v946_v0, %v225_v5  ;;  %v361_v20 = vmul.f32 %v946_v0, %v226_v6  ;;  %v238_v62 = vld [vmem:[%s951_s20 + $0x200] sm:$0xff] }
  0x37   : > { %744 = vst [vmem:[%s979_s25 + $0x160] sm:$0xff] %v616_v9  ;;  %745 = vst [vmem:[%s979_s25 + $0x168] sm:$0xff] %v617_v10  ;;  %v619_v18 = vmax.f32 %v491_v11, 0.0  ;;  %v362_v21 = vmul.f32 %v946_v0, %v227_v7  ;;  %v492_v22 = vadd.f32 %v956_v1, %v357_v14  ;;  %v493_v23 = vadd.f32 %v956_v1, %v358_v15  ;;  %v241_v7 = vld [vmem:[%s951_s20 + $0x218] sm:$0xff]  ;;  %v242_v8 = vld [vmem:[%s951_s20 + $0x220] sm:$0xff] }
  0x38   : > { %746 = vst [vmem:[%s979_s25 + $0x170] sm:$0xff] %v618_v13  ;;  %v494_v24 = vadd.f32 %v956_v1, %v359_v16  ;;  %v363_v25 = vmul.f32 %v946_v0, %v228_v12  ;;  %v495_v26 = vadd.f32 %v956_v1, %v360_v19  ;;  %v496_v27 = vadd.f32 %v956_v1, %v361_v20  ;;  %v243_v9 = vld [vmem:[%s951_s20 + $0x228] sm:$0xff]  ;;  %v244_v14 = vld [vmem:[%s951_s20 + $0x230] sm:$0xff]  ;;  %v245_v19 = vld [vmem:[%s951_s20 + $0x238] sm:$0xff] }
  0x39   : > { %747 = vst [vmem:[%s979_s25 + $0x178] sm:$0xff] %v619_v18  ;;  %v497_v28 = vadd.f32 %v956_v1, %v362_v21  ;;  %v364_v29 = vmul.f32 %v946_v0, %v229_v17  ;;  %v620_v33 = vmax.f32 %v492_v22, 0.0  ;;  %v621_v34 = vmax.f32 %v493_v23, 0.0 }
  0x3a   : > { %v622_v35 = vmax.f32 %v494_v24, 0.0  ;;  %v498_v36 = vadd.f32 %v956_v1, %v363_v25  ;;  %v623_v40 = vmax.f32 %v495_v26, 0.0  ;;  %v624_v41 = vmax.f32 %v496_v27, 0.0 }
  0x3b   : > { %v625_v42 = vmax.f32 %v497_v28, 0.0  ;;  %v499_v43 = vadd.f32 %v956_v1, %v364_v29  ;;  %748 = vst [vmem:[%s979_s25 + $0x180] sm:$0xff] %v620_v33  ;;  %749 = vst [vmem:[%s979_s25 + $0x188] sm:$0xff] %v621_v34  ;;  %v365_v46 = vmul.f32 %v946_v0, %v230_v30  ;;  %v366_v47 = vmul.f32 %v946_v0, %v231_v31  ;;  %v247_v33 = vld [vmem:[%s951_s20 + $0x248] sm:$0xff]  ;;  %v248_v34 = vld [vmem:[%s951_s20 + $0x250] sm:$0xff] }
  0x3c   : > { %750 = vst [vmem:[%s979_s25 + $0x190] sm:$0xff] %v622_v35  ;;  %v626_v45 = vmax.f32 %v498_v36, 0.0  ;;  %v367_v48 = vmul.f32 %v946_v0, %v232_v32  ;;  %751 = vst [vmem:[%s979_s25 + $0x198] sm:$0xff] %v623_v40  ;;  %v368_v51 = vmul.f32 %v946_v0, %v233_v37  ;;  %v369_v52 = vmul.f32 %v946_v0, %v234_v38  ;;  %v246_v32 = vld [vmem:[%s951_s20 + $0x240] sm:$0xff] }
  0x3d   : > { %752 = vst [vmem:[%s979_s25 + $0x1a0] sm:$0xff] %v624_v41  ;;  %753 = vst [vmem:[%s979_s25 + $0x1a8] sm:$0xff] %v625_v42  ;;  %v627_v50 = vmax.f32 %v499_v43, 0.0  ;;  %v370_v53 = vmul.f32 %v946_v0, %v235_v39  ;;  %v500_v54 = vadd.f32 %v956_v1, %v365_v46  ;;  %v501_v55 = vadd.f32 %v956_v1, %v366_v47  ;;  %v249_v39 = vld [vmem:[%s951_s20 + $0x258] sm:$0xff]  ;;  %v250_v40 = vld [vmem:[%s951_s20 + $0x260] sm:$0xff] }
  0x3e   : > { %754 = vst [vmem:[%s979_s25 + $0x1b0] sm:$0xff] %v626_v45  ;;  %v502_v56 = vadd.f32 %v956_v1, %v367_v48  ;;  %v371_v57 = vmul.f32 %v946_v0, %v236_v44  ;;  %v503_v58 = vadd.f32 %v956_v1, %v368_v51  ;;  %v504_v59 = vadd.f32 %v956_v1, %v369_v52  ;;  %v251_v41 = vld [vmem:[%s951_s20 + $0x268] sm:$0xff]  ;;  %v252_v46 = vld [vmem:[%s951_s20 + $0x270] sm:$0xff]  ;;  %v253_v51 = vld [vmem:[%s951_s20 + $0x278] sm:$0xff] }
  0x3f   : > { %755 = vst [vmem:[%s979_s25 + $0x1b8] sm:$0xff] %v627_v50  ;;  %v505_v60 = vadd.f32 %v956_v1, %v370_v53  ;;  %v372_v61 = vmul.f32 %v946_v0, %v237_v49  ;;  %v628_v3 = vmax.f32 %v500_v54, 0.0  ;;  %v629_v4 = vmax.f32 %v501_v55, 0.0 }
  0x40   : > { %v630_v5 = vmax.f32 %v502_v56, 0.0  ;;  %v506_v6 = vadd.f32 %v956_v1, %v371_v57  ;;  %v631_v10 = vmax.f32 %v503_v58, 0.0  ;;  %v632_v11 = vmax.f32 %v504_v59, 0.0 }
  0x41   : > { %v633_v12 = vmax.f32 %v505_v60, 0.0  ;;  %v507_v13 = vadd.f32 %v956_v1, %v372_v61  ;;  %756 = vst [vmem:[%s979_s25 + $0x1c0] sm:$0xff] %v628_v3  ;;  %757 = vst [vmem:[%s979_s25 + $0x1c8] sm:$0xff] %v629_v4  ;;  %v373_v16 = vmul.f32 %v946_v0, %v238_v62  ;;  %v374_v17 = vmul.f32 %v946_v0, %v239_v63  ;;  %v255_v3 = vld [vmem:[%s951_s20 + $0x288] sm:$0xff]  ;;  %v256_v4 = vld [vmem:[%s951_s20 + $0x290] sm:$0xff] }
  0x42   : > { %758 = vst [vmem:[%s979_s25 + $0x1d0] sm:$0xff] %v630_v5  ;;  %v634_v15 = vmax.f32 %v506_v6, 0.0  ;;  %v375_v18 = vmul.f32 %v946_v0, %v240_v2  ;;  %759 = vst [vmem:[%s979_s25 + $0x1d8] sm:$0xff] %v631_v10  ;;  %v376_v21 = vmul.f32 %v946_v0, %v241_v7  ;;  %v377_v22 = vmul.f32 %v946_v0, %v242_v8  ;;  %v254_v2 = vld [vmem:[%s951_s20 + $0x280] sm:$0xff] }
  0x43   : > { %760 = vst [vmem:[%s979_s25 + $0x1e0] sm:$0xff] %v632_v11  ;;  %761 = vst [vmem:[%s979_s25 + $0x1e8] sm:$0xff] %v633_v12  ;;  %v635_v20 = vmax.f32 %v507_v13, 0.0  ;;  %v378_v23 = vmul.f32 %v946_v0, %v243_v9  ;;  %v508_v24 = vadd.f32 %v956_v1, %v373_v16  ;;  %v509_v25 = vadd.f32 %v956_v1, %v374_v17  ;;  %v257_v9 = vld [vmem:[%s951_s20 + $0x298] sm:$0xff]  ;;  %v258_v10 = vld [vmem:[%s951_s20 + $0x2a0] sm:$0xff] }
  0x44   : > { %762 = vst [vmem:[%s979_s25 + $0x1f0] sm:$0xff] %v634_v15  ;;  %v510_v26 = vadd.f32 %v956_v1, %v375_v18  ;;  %v379_v27 = vmul.f32 %v946_v0, %v244_v14  ;;  %v511_v28 = vadd.f32 %v956_v1, %v376_v21  ;;  %v512_v29 = vadd.f32 %v956_v1, %v377_v22  ;;  %v259_v11 = vld [vmem:[%s951_s20 + $0x2a8] sm:$0xff]  ;;  %v260_v16 = vld [vmem:[%s951_s20 + $0x2b0] sm:$0xff]  ;;  %v261_v21 = vld [vmem:[%s951_s20 + $0x2b8] sm:$0xff] }
  0x45   : > { %763 = vst [vmem:[%s979_s25 + $0x1f8] sm:$0xff] %v635_v20  ;;  %v513_v30 = vadd.f32 %v956_v1, %v378_v23  ;;  %v380_v31 = vmul.f32 %v946_v0, %v245_v19  ;;  %v636_v35 = vmax.f32 %v508_v24, 0.0  ;;  %v637_v36 = vmax.f32 %v509_v25, 0.0 }
  0x46   : > { %v638_v37 = vmax.f32 %v510_v26, 0.0  ;;  %v514_v38 = vadd.f32 %v956_v1, %v379_v27  ;;  %v639_v42 = vmax.f32 %v511_v28, 0.0  ;;  %v640_v43 = vmax.f32 %v512_v29, 0.0 }
  0x47   : > { %v641_v44 = vmax.f32 %v513_v30, 0.0  ;;  %v515_v45 = vadd.f32 %v956_v1, %v380_v31  ;;  %764 = vst [vmem:[%s979_s25 + $0x200] sm:$0xff] %v636_v35  ;;  %765 = vst [vmem:[%s979_s25 + $0x208] sm:$0xff] %v637_v36  ;;  %v381_v48 = vmul.f32 %v946_v0, %v246_v32  ;;  %v382_v49 = vmul.f32 %v946_v0, %v247_v33  ;;  %v263_v35 = vld [vmem:[%s951_s20 + $0x2c8] sm:$0xff]  ;;  %v264_v36 = vld [vmem:[%s951_s20 + $0x2d0] sm:$0xff] }
  0x48   : > { %766 = vst [vmem:[%s979_s25 + $0x210] sm:$0xff] %v638_v37  ;;  %v642_v47 = vmax.f32 %v514_v38, 0.0  ;;  %v383_v50 = vmul.f32 %v946_v0, %v248_v34  ;;  %767 = vst [vmem:[%s979_s25 + $0x218] sm:$0xff] %v639_v42  ;;  %v384_v53 = vmul.f32 %v946_v0, %v249_v39  ;;  %v385_v54 = vmul.f32 %v946_v0, %v250_v40  ;;  %v262_v34 = vld [vmem:[%s951_s20 + $0x2c0] sm:$0xff] }
  0x49   : > { %768 = vst [vmem:[%s979_s25 + $0x220] sm:$0xff] %v640_v43  ;;  %769 = vst [vmem:[%s979_s25 + $0x228] sm:$0xff] %v641_v44  ;;  %v643_v52 = vmax.f32 %v515_v45, 0.0  ;;  %v386_v55 = vmul.f32 %v946_v0, %v251_v41  ;;  %v516_v56 = vadd.f32 %v956_v1, %v381_v48  ;;  %v517_v57 = vadd.f32 %v956_v1, %v382_v49  ;;  %v265_v41 = vld [vmem:[%s951_s20 + $0x2d8] sm:$0xff]  ;;  %v266_v42 = vld [vmem:[%s951_s20 + $0x2e0] sm:$0xff] }
  0x4a   : > { %770 = vst [vmem:[%s979_s25 + $0x230] sm:$0xff] %v642_v47  ;;  %v518_v58 = vadd.f32 %v956_v1, %v383_v50  ;;  %v387_v59 = vmul.f32 %v946_v0, %v252_v46  ;;  %v519_v60 = vadd.f32 %v956_v1, %v384_v53  ;;  %v520_v61 = vadd.f32 %v956_v1, %v385_v54  ;;  %v267_v43 = vld [vmem:[%s951_s20 + $0x2e8] sm:$0xff]  ;;  %v268_v48 = vld [vmem:[%s951_s20 + $0x2f0] sm:$0xff]  ;;  %v269_v53 = vld [vmem:[%s951_s20 + $0x2f8] sm:$0xff] }
  0x4b   : > { %771 = vst [vmem:[%s979_s25 + $0x238] sm:$0xff] %v643_v52  ;;  %v521_v62 = vadd.f32 %v956_v1, %v386_v55  ;;  %v388_v63 = vmul.f32 %v946_v0, %v253_v51  ;;  %v644_v5 = vmax.f32 %v516_v56, 0.0  ;;  %v645_v6 = vmax.f32 %v517_v57, 0.0 }
  0x4c   : > { %v646_v7 = vmax.f32 %v518_v58, 0.0  ;;  %v522_v8 = vadd.f32 %v956_v1, %v387_v59  ;;  %v647_v12 = vmax.f32 %v519_v60, 0.0  ;;  %v648_v13 = vmax.f32 %v520_v61, 0.0 }
  0x4d   : > { %v649_v14 = vmax.f32 %v521_v62, 0.0  ;;  %v523_v15 = vadd.f32 %v956_v1, %v388_v63  ;;  %772 = vst [vmem:[%s979_s25 + $0x240] sm:$0xff] %v644_v5  ;;  %773 = vst [vmem:[%s979_s25 + $0x248] sm:$0xff] %v645_v6  ;;  %v389_v18 = vmul.f32 %v946_v0, %v254_v2  ;;  %v390_v19 = vmul.f32 %v946_v0, %v255_v3  ;;  %v271_v5 = vld [vmem:[%s951_s20 + $0x308] sm:$0xff]  ;;  %v272_v6 = vld [vmem:[%s951_s20 + $0x310] sm:$0xff] }
  0x4e   : > { %774 = vst [vmem:[%s979_s25 + $0x250] sm:$0xff] %v646_v7  ;;  %v650_v17 = vmax.f32 %v522_v8, 0.0  ;;  %v391_v20 = vmul.f32 %v946_v0, %v256_v4  ;;  %775 = vst [vmem:[%s979_s25 + $0x258] sm:$0xff] %v647_v12  ;;  %v392_v23 = vmul.f32 %v946_v0, %v257_v9  ;;  %v393_v24 = vmul.f32 %v946_v0, %v258_v10  ;;  %v270_v4 = vld [vmem:[%s951_s20 + $0x300] sm:$0xff] }
  0x4f   : > { %776 = vst [vmem:[%s979_s25 + $0x260] sm:$0xff] %v648_v13  ;;  %777 = vst [vmem:[%s979_s25 + $0x268] sm:$0xff] %v649_v14  ;;  %v651_v22 = vmax.f32 %v523_v15, 0.0  ;;  %v394_v25 = vmul.f32 %v946_v0, %v259_v11  ;;  %v524_v26 = vadd.f32 %v956_v1, %v389_v18  ;;  %v525_v27 = vadd.f32 %v956_v1, %v390_v19  ;;  %v273_v11 = vld [vmem:[%s951_s20 + $0x318] sm:$0xff]  ;;  %v274_v12 = vld [vmem:[%s951_s20 + $0x320] sm:$0xff] }
  0x50   : > { %778 = vst [vmem:[%s979_s25 + $0x270] sm:$0xff] %v650_v17  ;;  %v526_v28 = vadd.f32 %v956_v1, %v391_v20  ;;  %v395_v29 = vmul.f32 %v946_v0, %v260_v16  ;;  %v527_v30 = vadd.f32 %v956_v1, %v392_v23  ;;  %v528_v31 = vadd.f32 %v956_v1, %v393_v24  ;;  %v275_v13 = vld [vmem:[%s951_s20 + $0x328] sm:$0xff]  ;;  %v276_v18 = vld [vmem:[%s951_s20 + $0x330] sm:$0xff]  ;;  %v277_v23 = vld [vmem:[%s951_s20 + $0x338] sm:$0xff] }
  0x51   : > { %779 = vst [vmem:[%s979_s25 + $0x278] sm:$0xff] %v651_v22  ;;  %v529_v32 = vadd.f32 %v956_v1, %v394_v25  ;;  %v396_v33 = vmul.f32 %v946_v0, %v261_v21  ;;  %v652_v37 = vmax.f32 %v524_v26, 0.0  ;;  %v653_v38 = vmax.f32 %v525_v27, 0.0 }
  0x52   : > { %v654_v39 = vmax.f32 %v526_v28, 0.0  ;;  %v530_v40 = vadd.f32 %v956_v1, %v395_v29  ;;  %v655_v44 = vmax.f32 %v527_v30, 0.0  ;;  %v656_v45 = vmax.f32 %v528_v31, 0.0 }
  0x53   : > { %v657_v46 = vmax.f32 %v529_v32, 0.0  ;;  %v531_v47 = vadd.f32 %v956_v1, %v396_v33  ;;  %780 = vst [vmem:[%s979_s25 + $0x280] sm:$0xff] %v652_v37  ;;  %781 = vst [vmem:[%s979_s25 + $0x288] sm:$0xff] %v653_v38  ;;  %v397_v50 = vmul.f32 %v946_v0, %v262_v34  ;;  %v398_v51 = vmul.f32 %v946_v0, %v263_v35  ;;  %v279_v37 = vld [vmem:[%s951_s20 + $0x348] sm:$0xff]  ;;  %v280_v38 = vld [vmem:[%s951_s20 + $0x350] sm:$0xff] }
  0x54   : > { %782 = vst [vmem:[%s979_s25 + $0x290] sm:$0xff] %v654_v39  ;;  %v658_v49 = vmax.f32 %v530_v40, 0.0  ;;  %v399_v52 = vmul.f32 %v946_v0, %v264_v36  ;;  %783 = vst [vmem:[%s979_s25 + $0x298] sm:$0xff] %v655_v44  ;;  %v400_v55 = vmul.f32 %v946_v0, %v265_v41  ;;  %v401_v56 = vmul.f32 %v946_v0, %v266_v42  ;;  %v278_v36 = vld [vmem:[%s951_s20 + $0x340] sm:$0xff] }
  0x55   : > { %784 = vst [vmem:[%s979_s25 + $0x2a0] sm:$0xff] %v656_v45  ;;  %785 = vst [vmem:[%s979_s25 + $0x2a8] sm:$0xff] %v657_v46  ;;  %v659_v54 = vmax.f32 %v531_v47, 0.0  ;;  %v402_v57 = vmul.f32 %v946_v0, %v267_v43  ;;  %v532_v58 = vadd.f32 %v956_v1, %v397_v50  ;;  %v533_v59 = vadd.f32 %v956_v1, %v398_v51  ;;  %v281_v43 = vld [vmem:[%s951_s20 + $0x358] sm:$0xff]  ;;  %v282_v44 = vld [vmem:[%s951_s20 + $0x360] sm:$0xff] }
  0x56   : > { %786 = vst [vmem:[%s979_s25 + $0x2b0] sm:$0xff] %v658_v49  ;;  %v534_v60 = vadd.f32 %v956_v1, %v399_v52  ;;  %v403_v61 = vmul.f32 %v946_v0, %v268_v48  ;;  %v535_v62 = vadd.f32 %v956_v1, %v400_v55  ;;  %v536_v63 = vadd.f32 %v956_v1, %v401_v56  ;;  %v283_v45 = vld [vmem:[%s951_s20 + $0x368] sm:$0xff]  ;;  %v1379_v48 = vld [vmem:[%s1490_s2] ss:$0 sm:$0xff]  ;;  %v284_v50 = vld [vmem:[%s951_s20 + $0x370] sm:$0xff] }
  0x57   : > { %787 = vst [vmem:[%s979_s25 + $0x2b8] sm:$0xff] %v659_v54  ;;  %v537_v2 = vadd.f32 %v956_v1, %v402_v57  ;;  %v404_v3 = vmul.f32 %v946_v0, %v269_v53  ;;  %v660_v7 = vmax.f32 %v532_v58, 0.0  ;;  %v661_v8 = vmax.f32 %v533_v59, 0.0  ;;  %v1389_v51 = vld [vmem:[%s1489_s1] ss:$0 sm:$0xff]  ;;  %v285_v55 = vld [vmem:[%s951_s20 + $0x378] sm:$0xff] }
  0x58   : > { %v662_v9 = vmax.f32 %v534_v60, 0.0  ;;  %v538_v10 = vadd.f32 %v956_v1, %v403_v61  ;;  %v663_v14 = vmax.f32 %v535_v62, 0.0  ;;  %v664_v15 = vmax.f32 %v536_v63, 0.0 }
  0x59   : > { %v665_v16 = vmax.f32 %v537_v2, 0.0  ;;  %v539_v17 = vadd.f32 %v956_v1, %v404_v3  ;;  %788 = vst [vmem:[%s979_s25 + $0x2c0] sm:$0xff] %v660_v7  ;;  %789 = vst [vmem:[%s979_s25 + $0x2c8] sm:$0xff] %v661_v8  ;;  %v405_v20 = vmul.f32 %v946_v0, %v270_v4  ;;  %v406_v21 = vmul.f32 %v946_v0, %v271_v5  ;;  %v287_v7 = vld [vmem:[%s951_s20 + $0x388] sm:$0xff]  ;;  %v288_v8 = vld [vmem:[%s951_s20 + $0x390] sm:$0xff] }
  0x5a   : > { %790 = vst [vmem:[%s979_s25 + $0x2d0] sm:$0xff] %v662_v9  ;;  %v666_v19 = vmax.f32 %v538_v10, 0.0  ;;  %v407_v22 = vmul.f32 %v946_v0, %v272_v6  ;;  %791 = vst [vmem:[%s979_s25 + $0x2d8] sm:$0xff] %v663_v14  ;;  %v408_v25 = vmul.f32 %v946_v0, %v273_v11  ;;  %v409_v26 = vmul.f32 %v946_v0, %v274_v12  ;;  %v286_v6 = vld [vmem:[%s951_s20 + $0x380] sm:$0xff] }
  0x5b   : > { %792 = vst [vmem:[%s979_s25 + $0x2e0] sm:$0xff] %v664_v15  ;;  %793 = vst [vmem:[%s979_s25 + $0x2e8] sm:$0xff] %v665_v16  ;;  %v667_v24 = vmax.f32 %v539_v17, 0.0  ;;  %v410_v27 = vmul.f32 %v946_v0, %v275_v13  ;;  %v540_v28 = vadd.f32 %v956_v1, %v405_v20  ;;  %v541_v29 = vadd.f32 %v956_v1, %v406_v21  ;;  %v289_v13 = vld [vmem:[%s951_s20 + $0x398] sm:$0xff]  ;;  %v290_v14 = vld [vmem:[%s951_s20 + $0x3a0] sm:$0xff] }
  0x5c   : > { %794 = vst [vmem:[%s979_s25 + $0x2f0] sm:$0xff] %v666_v19  ;;  %v542_v30 = vadd.f32 %v956_v1, %v407_v22  ;;  %v411_v31 = vmul.f32 %v946_v0, %v276_v18  ;;  %v543_v32 = vadd.f32 %v956_v1, %v408_v25  ;;  %v544_v33 = vadd.f32 %v956_v1, %v409_v26  ;;  %v291_v15 = vld [vmem:[%s951_s20 + $0x3a8] sm:$0xff]  ;;  %v292_v20 = vld [vmem:[%s951_s20 + $0x3b0] sm:$0xff]  ;;  %v293_v25 = vld [vmem:[%s951_s20 + $0x3b8] sm:$0xff] }
  0x5d   : > { %795 = vst [vmem:[%s979_s25 + $0x2f8] sm:$0xff] %v667_v24  ;;  %v545_v34 = vadd.f32 %v956_v1, %v410_v27  ;;  %v412_v35 = vmul.f32 %v946_v0, %v277_v23  ;;  %v668_v39 = vmax.f32 %v540_v28, 0.0  ;;  %v669_v40 = vmax.f32 %v541_v29, 0.0 }
  0x5e   : > { %v670_v41 = vmax.f32 %v542_v30, 0.0  ;;  %v546_v42 = vadd.f32 %v956_v1, %v411_v31  ;;  %v671_v46 = vmax.f32 %v543_v32, 0.0  ;;  %v672_v0 = vmax.f32 %v544_v33, 0.0 }
  0x5f   : > { %v673_v47 = vmax.f32 %v545_v34, 0.0  ;;  %v547_v49 = vadd.f32 %v1379_v48, %v412_v35  ;;  %796 = vst [vmem:[%s979_s25 + $0x300] sm:$0xff] %v668_v39  ;;  %797 = vst [vmem:[%s979_s25 + $0x308] sm:$0xff] %v669_v40  ;;  %v413_v52 = vmul.f32 %v1389_v51, %v278_v36  ;;  %v414_v53 = vmul.f32 %v1389_v51, %v279_v37  ;;  %v295_v39 = vld [vmem:[%s951_s20 + $0x3c8] sm:$0xff]  ;;  %v296_v40 = vld [vmem:[%s951_s20 + $0x3d0] sm:$0xff] }
  0x60   : > { %798 = vst [vmem:[%s979_s25 + $0x310] sm:$0xff] %v670_v41  ;;  %v674_v1 = vmax.f32 %v546_v42, 0.0  ;;  %v415_v54 = vmul.f32 %v1389_v51, %v280_v38  ;;  %799 = vst [vmem:[%s979_s25 + $0x318] sm:$0xff] %v671_v46  ;;  %v416_v57 = vmul.f32 %v1389_v51, %v281_v43  ;;  %v417_v58 = vmul.f32 %v1389_v51, %v282_v44  ;;  %v294_v38 = vld [vmem:[%s951_s20 + $0x3c0] sm:$0xff] }
  0x61   : > { %800 = vst [vmem:[%s979_s25 + $0x320] sm:$0xff] %v672_v0  ;;  %801 = vst [vmem:[%s979_s25 + $0x328] sm:$0xff] %v673_v47  ;;  %v675_v56 = vmax.f32 %v547_v49, 0.0  ;;  %v418_v59 = vmul.f32 %v1389_v51, %v283_v45  ;;  %v548_v60 = vadd.f32 %v1379_v48, %v413_v52  ;;  %v549_v61 = vadd.f32 %v1379_v48, %v414_v53  ;;  %v297_v45 = vld [vmem:[%s951_s20 + $0x3d8] sm:$0xff]  ;;  %v298_v46 = vld [vmem:[%s951_s20 + $0x3e0] sm:$0xff] }
  0x62   : > { %802 = vst [vmem:[%s979_s25 + $0x330] sm:$0xff] %v674_v1  ;;  %v550_v62 = vadd.f32 %v1379_v48, %v415_v54  ;;  %v419_v63 = vmul.f32 %v1389_v51, %v284_v50  ;;  %v551_v2 = vadd.f32 %v1379_v48, %v416_v57  ;;  %v552_v3 = vadd.f32 %v1379_v48, %v417_v58  ;;  %v299_v0 = vld [vmem:[%s951_s20 + $0x3e8] sm:$0xff]  ;;  %v300_v52 = vld [vmem:[%s951_s20 + $0x3f0] sm:$0xff]  ;;  %v301_v57 = vld [vmem:[%s951_s20 + $0x3f8] sm:$0xff] }
  0x63   : > { %803 = vst [vmem:[%s979_s25 + $0x338] sm:$0xff] %v675_v56  ;;  %v553_v4 = vadd.f32 %v1379_v48, %v418_v59  ;;  %v420_v5 = vmul.f32 %v1389_v51, %v285_v55  ;;  %v676_v9 = vmax.f32 %v548_v60, 0.0  ;;  %v677_v10 = vmax.f32 %v549_v61, 0.0 }
  0x64   : > { %v678_v11 = vmax.f32 %v550_v62, 0.0  ;;  %v554_v12 = vadd.f32 %v1379_v48, %v419_v63  ;;  %v679_v16 = vmax.f32 %v551_v2, 0.0  ;;  %v680_v17 = vmax.f32 %v552_v3, 0.0 }
  0x65   : > { %v681_v18 = vmax.f32 %v553_v4, 0.0  ;;  %v555_v19 = vadd.f32 %v1379_v48, %v420_v5  ;;  %804 = vst [vmem:[%s979_s25 + $0x340] sm:$0xff] %v676_v9  ;;  %805 = vst [vmem:[%s979_s25 + $0x348] sm:$0xff] %v677_v10  ;;  %v421_v22 = vmul.f32 %v1389_v51, %v286_v6  ;;  %v422_v23 = vmul.f32 %v1389_v51, %v287_v7 }
  0x66   : > { %806 = vst [vmem:[%s979_s25 + $0x350] sm:$0xff] %v678_v11  ;;  %v682_v21 = vmax.f32 %v554_v12, 0.0  ;;  %v423_v24 = vmul.f32 %v1389_v51, %v288_v8  ;;  %807 = vst [vmem:[%s979_s25 + $0x358] sm:$0xff] %v679_v16  ;;  %v424_v27 = vmul.f32 %v1389_v51, %v289_v13  ;;  %v425_v28 = vmul.f32 %v1389_v51, %v290_v14 }
  0x67   : > { %808 = vst [vmem:[%s979_s25 + $0x360] sm:$0xff] %v680_v17  ;;  %809 = vst [vmem:[%s979_s25 + $0x368] sm:$0xff] %v681_v18  ;;  %v683_v26 = vmax.f32 %v555_v19, 0.0  ;;  %v426_v29 = vmul.f32 %v1389_v51, %v291_v15  ;;  %v556_v30 = vadd.f32 %v1379_v48, %v421_v22  ;;  %v557_v31 = vadd.f32 %v1379_v48, %v422_v23 }
  0x68   : > { %810 = vst [vmem:[%s979_s25 + $0x370] sm:$0xff] %v682_v21  ;;  %v558_v32 = vadd.f32 %v1379_v48, %v423_v24  ;;  %v427_v33 = vmul.f32 %v1389_v51, %v292_v20  ;;  %v559_v34 = vadd.f32 %v1379_v48, %v424_v27  ;;  %v560_v35 = vadd.f32 %v1379_v48, %v425_v28 }
  0x69   : > { %811 = vst [vmem:[%s979_s25 + $0x378] sm:$0xff] %v683_v26  ;;  %v561_v36 = vadd.f32 %v1379_v48, %v426_v29  ;;  %v428_v37 = vmul.f32 %v1389_v51, %v293_v25  ;;  %v684_v41 = vmax.f32 %v556_v30, 0.0  ;;  %v685_v42 = vmax.f32 %v557_v31, 0.0 }
  0x6a   : > { %v686_v43 = vmax.f32 %v558_v32, 0.0  ;;  %v562_v44 = vadd.f32 %v1379_v48, %v427_v33  ;;  %v687_v47 = vmax.f32 %v559_v34, 0.0  ;;  %v688_v49 = vmax.f32 %v560_v35, 0.0 }
  0x6b   : > { %v689_v50 = vmax.f32 %v561_v36, 0.0  ;;  %v563_v1 = vadd.f32 %v1379_v48, %v428_v37  ;;  %812 = vst [vmem:[%s979_s25 + $0x380] sm:$0xff] %v684_v41  ;;  %813 = vst [vmem:[%s979_s25 + $0x388] sm:$0xff] %v685_v42  ;;  %v429_v54 = vmul.f32 %v1389_v51, %v294_v38  ;;  %v430_v55 = vmul.f32 %v1389_v51, %v295_v39 }
  0x6c   : > { %814 = vst [vmem:[%s979_s25 + $0x390] sm:$0xff] %v686_v43  ;;  %v690_v53 = vmax.f32 %v562_v44, 0.0  ;;  %v431_v56 = vmul.f32 %v1389_v51, %v296_v40  ;;  %815 = vst [vmem:[%s979_s25 + $0x398] sm:$0xff] %v687_v47  ;;  %v432_v59 = vmul.f32 %v1389_v51, %v297_v45  ;;  %v433_v60 = vmul.f32 %v1389_v51, %v298_v46 }
  0x6d   : > { %816 = vst [vmem:[%s979_s25 + $0x3a0] sm:$0xff] %v688_v49  ;;  %817 = vst [vmem:[%s979_s25 + $0x3a8] sm:$0xff] %v689_v50  ;;  %v691_v58 = vmax.f32 %v563_v1, 0.0  ;;  %v434_v61 = vmul.f32 %v1389_v51, %v299_v0  ;;  %v564_v62 = vadd.f32 %v1379_v48, %v429_v54  ;;  %v565_v63 = vadd.f32 %v1379_v48, %v430_v55 }
  0x6e   : > { %818 = vst [vmem:[%s979_s25 + $0x3b0] sm:$0xff] %v690_v53  ;;  %v566_v2 = vadd.f32 %v1379_v48, %v431_v56  ;;  %v435_v3 = vmul.f32 %v1389_v51, %v300_v52  ;;  %v567_v4 = vadd.f32 %v1379_v48, %v432_v59  ;;  %v568_v5 = vadd.f32 %v1379_v48, %v433_v60 }
  0x6f   : > { %819 = vst [vmem:[%s979_s25 + $0x3b8] sm:$0xff] %v691_v58  ;;  %v569_v6 = vadd.f32 %v1379_v48, %v434_v61  ;;  %v436_v7 = vmul.f32 %v1389_v51, %v301_v57  ;;  %v692_v8 = vmax.f32 %v564_v62, 0.0  ;;  %v693_v9 = vmax.f32 %v565_v63, 0.0 }
  0x70   : > { %v694_v10 = vmax.f32 %v566_v2, 0.0  ;;  %v570_v11 = vadd.f32 %v1379_v48, %v435_v3  ;;  %v695_v12 = vmax.f32 %v567_v4, 0.0  ;;  %v696_v13 = vmax.f32 %v568_v5, 0.0 }
  0x71   : > { %v697_v14 = vmax.f32 %v569_v6, 0.0  ;;  %v571_v15 = vadd.f32 %v1379_v48, %v436_v7  ;;  %820 = vst [vmem:[%s979_s25 + $0x3c0] sm:$0xff] %v692_v8  ;;  %821 = vst [vmem:[%s979_s25 + $0x3c8] sm:$0xff] %v693_v9 }
  0x72   : > { %822 = vst [vmem:[%s979_s25 + $0x3d0] sm:$0xff] %v694_v10  ;;  %v698_v16 = vmax.f32 %v570_v11, 0.0  ;;  %823 = vst [vmem:[%s979_s25 + $0x3d8] sm:$0xff] %v695_v12 }
  0x73   : > { %824 = vst [vmem:[%s979_s25 + $0x3e0] sm:$0xff] %v696_v13  ;;  %825 = vst [vmem:[%s979_s25 + $0x3e8] sm:$0xff] %v697_v14  ;;  %v699_v51 = vmax.f32 %v571_v15, 0.0 }
  0x74   : > { %826 = vst [vmem:[%s979_s25 + $0x3f0] sm:$0xff] %v698_v16 }
  0x75   : > { %827 = vst [vmem:[%s979_s25 + $0x3f8] sm:$0xff] %v699_v51 }
  0x76 PF: > { %s13_s12 = sadd.s32 1, %s913_s12  }
  0x77   : > { %p10_p4 = scmp.ge.s32.totalorder %s13_s12, 4  }
  0x79   :  { %12 = sbr.rel (!%p10_p4) target bundleno = 1 (0x1), region = 62 }

// kernel: model_forward.12
= control target key start
LH: loop header
LB: loop body
LE: loop exit
PB: predicated region body
PF: predicated region fallthrough
CT: control target
= control target key end

     0   :  { %s896_s0 = inlined_call_operand.vmem [shape: f32[512,128], index: 0, kind: input, shape index: {}]   ;;  %s897_s1 = inlined_call_operand.vmem [shape: f32[1,128], index: 1, kind: input, shape index: {}]   ;;  %s898_s2 = inlined_call_operand.vmem [shape: f32[1,128], index: 2, kind: input, shape index: {}]   ;;  %s899_s3 = inlined_call_operand.vmem [shape: f32[512,128], index: 3, kind: output, shape index: {}]  }
   0x1   :  { %v14_v0 = vld [vmem:[%s896_s0] sm:$0xff]  ;;  %v15_v4 = vld [vmem:[%s896_s0 + $0x8] sm:$0xff]  ;;  %v16_v5 = vld [vmem:[%s896_s0 + $0x10] sm:$0xff] }
   0x2   :  { %v380_v1 = vld [vmem:[%s897_s1] ss:$0 sm:$0xff]  ;;  %v17_v6 = vld [vmem:[%s896_s0 + $0x18] sm:$0xff]  ;;  %v19_v11 = vld [vmem:[%s896_s0 + $0x28] sm:$0xff] }
   0x3   :  { %v385_v2 = vld [vmem:[%s898_s2] ss:$0 sm:$0xff]  ;;  %v85_v3 = vmul.f32 %v380_v1, %v14_v0  ;;  %v86_v7 = vmul.f32 %v380_v1, %v15_v4  ;;  %v87_v8 = vmul.f32 %v380_v1, %v16_v5  ;;  %v88_v9 = vmul.f32 %v380_v1, %v17_v6  ;;  %v20_v12 = vld [vmem:[%s896_s0 + $0x30] sm:$0xff]  ;;  %v21_v17 = vld [vmem:[%s896_s0 + $0x38] sm:$0xff] }
   0x4   :  { %v18_v10 = vld [vmem:[%s896_s0 + $0x20] sm:$0xff]  ;;  %v90_v15 = vmul.f32 %v380_v1, %v19_v11  ;;  %v91_v16 = vmul.f32 %v380_v1, %v20_v12  ;;  %v92_v21 = vmul.f32 %v380_v1, %v21_v17  ;;  %v23_v27 = vld [vmem:[%s896_s0 + $0x48] sm:$0xff]  ;;  %v24_v28 = vld [vmem:[%s896_s0 + $0x50] sm:$0xff] }
   0x5   :  { %v156_v13 = vadd.f32 %v385_v2, %v85_v3  ;;  %v89_v14 = vmul.f32 %v380_v1, %v18_v10  ;;  %v157_v18 = vadd.f32 %v385_v2, %v86_v7  ;;  %v158_v19 = vadd.f32 %v385_v2, %v87_v8  ;;  %v22_v22 = vld [vmem:[%s896_s0 + $0x40] sm:$0xff]  ;;  %v25_v29 = vld [vmem:[%s896_s0 + $0x58] sm:$0xff]  ;;  %v27_v35 = vld [vmem:[%s896_s0 + $0x68] sm:$0xff] }
   0x6   :  { %v159_v20 = vadd.f32 %v385_v2, %v88_v9  ;;  %v161_v25 = vadd.f32 %v385_v2, %v90_v15  ;;  %v162_v26 = vadd.f32 %v385_v2, %v91_v16  ;;  %v163_v33 = vadd.f32 %v385_v2, %v92_v21  ;;  %v26_v34 = vld [vmem:[%s896_s0 + $0x60] sm:$0xff]  ;;  %v28_v36 = vld [vmem:[%s896_s0 + $0x70] sm:$0xff]  ;;  %v29_v41 = vld [vmem:[%s896_s0 + $0x78] sm:$0xff] }
   0x7   :  { %v220_v23 = vmax.f32 %v156_v13, 0.0  ;;  %v160_v24 = vadd.f32 %v385_v2, %v89_v14  ;;  %v221_v30 = vmax.f32 %v157_v18, 0.0  ;;  %v222_v31 = vmax.f32 %v158_v19, 0.0  ;;  %v30_v54 = vld [vmem:[%s896_s0 + $0x80] sm:$0xff]  ;;  %v31_v59 = vld [vmem:[%s896_s0 + $0x88] sm:$0xff]  ;;  %v32_v60 = vld [vmem:[%s896_s0 + $0x90] sm:$0xff] }
   0x8   :  { %v223_v32 = vmax.f32 %v159_v20, 0.0  ;;  %v225_v38 = vmax.f32 %v161_v25, 0.0  ;;  %v226_v39 = vmax.f32 %v162_v26, 0.0  ;;  %v93_v40 = vmul.f32 %v380_v1, %v22_v22  ;;  %v33_v61 = vld [vmem:[%s896_s0 + $0x98] sm:$0xff]  ;;  %v34_v4 = vld [vmem:[%s896_s0 + $0xa0] sm:$0xff]  ;;  %v35_v5 = vld [vmem:[%s896_s0 + $0xa8] sm:$0xff] }
   0x9   :  { %284 = vst [vmem:[%s899_s3] sm:$0xff] %v220_v23  ;;  %v224_v37 = vmax.f32 %v160_v24, 0.0  ;;  %285 = vst [vmem:[%s899_s3 + $0x8] sm:$0xff] %v221_v30  ;;  %v227_v42 = vmax.f32 %v163_v33, 0.0  ;;  %v94_v43 = vmul.f32 %v380_v1, %v23_v27  ;;  %v95_v44 = vmul.f32 %v380_v1, %v24_v28  ;;  %v36_v6 = vld [vmem:[%s896_s0 + $0xb0] sm:$0xff]  ;;  %v37_v11 = vld [vmem:[%s896_s0 + $0xb8] sm:$0xff] }
   0xa   :  { %286 = vst [vmem:[%s899_s3 + $0x10] sm:$0xff] %v222_v31  ;;  %287 = vst [vmem:[%s899_s3 + $0x18] sm:$0xff] %v223_v32  ;;  %v96_v45 = vmul.f32 %v380_v1, %v25_v29  ;;  %v164_v46 = vadd.f32 %v385_v2, %v93_v40  ;;  %v97_v47 = vmul.f32 %v380_v1, %v26_v34  ;;  %v38_v24 = vld [vmem:[%s896_s0 + $0xc0] sm:$0xff]  ;;  %v39_v29 = vld [vmem:[%s896_s0 + $0xc8] sm:$0xff] }
   0xb   :  { %288 = vst [vmem:[%s899_s3 + $0x20] sm:$0xff] %v224_v37  ;;  %289 = vst [vmem:[%s899_s3 + $0x28] sm:$0xff] %v225_v38  ;;  %v98_v48 = vmul.f32 %v380_v1, %v27_v35  ;;  %v99_v49 = vmul.f32 %v380_v1, %v28_v36  ;;  %v165_v50 = vadd.f32 %v385_v2, %v94_v43  ;;  %v40_v30 = vld [vmem:[%s896_s0 + $0xd0] sm:$0xff]  ;;  %v41_v31 = vld [vmem:[%s896_s0 + $0xd8] sm:$0xff] }
   0xc   :  { %290 = vst [vmem:[%s899_s3 + $0x30] sm:$0xff] %v226_v39  ;;  %291 = vst [vmem:[%s899_s3 + $0x38] sm:$0xff] %v227_v42  ;;  %v166_v51 = vadd.f32 %v385_v2, %v95_v44  ;;  %v167_v52 = vadd.f32 %v385_v2, %v96_v45  ;;  %v100_v53 = vmul.f32 %v380_v1, %v29_v41  ;;  %v228_v55 = vmax.f32 %v164_v46, 0.0  ;;  %v42_v36 = vld [vmem:[%s896_s0 + $0xe0] sm:$0xff]  ;;  %v43_v37 = vld [vmem:[%s896_s0 + $0xe8] sm:$0xff] }
   0xd   :  { %v168_v56 = vadd.f32 %v385_v2, %v97_v47  ;;  %v169_v57 = vadd.f32 %v385_v2, %v98_v48  ;;  %v170_v58 = vadd.f32 %v385_v2, %v99_v49  ;;  %v229_v62 = vmax.f32 %v165_v50, 0.0  ;;  %v44_v38 = vld [vmem:[%s896_s0 + $0xf0] sm:$0xff]  ;;  %v45_v43 = vld [vmem:[%s896_s0 + $0xf8] sm:$0xff] }
   0xe   :  { %v230_v63 = vmax.f32 %v166_v51, 0.0  ;;  %v231_v0 = vmax.f32 %v167_v52, 0.0  ;;  %v171_v3 = vadd.f32 %v385_v2, %v100_v53  ;;  %292 = vst [vmem:[%s899_s3 + $0x40] sm:$0xff] %v228_v55  ;;  %v101_v10 = vmul.f32 %v380_v1, %v30_v54 }
   0xf   :  { %v232_v7 = vmax.f32 %v168_v56, 0.0  ;;  %v233_v8 = vmax.f32 %v169_v57, 0.0  ;;  %v234_v9 = vmax.f32 %v170_v58, 0.0  ;;  %293 = vst [vmem:[%s899_s3 + $0x48] sm:$0xff] %v229_v62  ;;  %v102_v13 = vmul.f32 %v380_v1, %v31_v59  ;;  %v46_v56 = vld [vmem:[%s896_s0 + $0x100] sm:$0xff]  ;;  %v48_v62 = vld [vmem:[%s896_s0 + $0x110] sm:$0xff] }
  0x10   :  { %294 = vst [vmem:[%s899_s3 + $0x50] sm:$0xff] %v230_v63  ;;  %295 = vst [vmem:[%s899_s3 + $0x58] sm:$0xff] %v231_v0  ;;  %v235_v12 = vmax.f32 %v171_v3, 0.0  ;;  %v103_v14 = vmul.f32 %v380_v1, %v32_v60  ;;  %v104_v15 = vmul.f32 %v380_v1, %v33_v61  ;;  %v172_v16 = vadd.f32 %v385_v2, %v101_v10  ;;  %v47_v61 = vld [vmem:[%s896_s0 + $0x108] sm:$0xff]  ;;  %v49_v63 = vld [vmem:[%s896_s0 + $0x118] sm:$0xff] }
  0x11   :  { %296 = vst [vmem:[%s899_s3 + $0x60] sm:$0xff] %v232_v7  ;;  %297 = vst [vmem:[%s899_s3 + $0x68] sm:$0xff] %v233_v8  ;;  %v105_v17 = vmul.f32 %v380_v1, %v34_v4  ;;  %v106_v18 = vmul.f32 %v380_v1, %v35_v5  ;;  %v107_v19 = vmul.f32 %v380_v1, %v36_v6  ;;  %v50_v6 = vld [vmem:[%s896_s0 + $0x120] sm:$0xff]  ;;  %v51_v7 = vld [vmem:[%s896_s0 + $0x128] sm:$0xff] }
  0x12   :  { %298 = vst [vmem:[%s899_s3 + $0x70] sm:$0xff] %v234_v9  ;;  %299 = vst [vmem:[%s899_s3 + $0x78] sm:$0xff] %v235_v12  ;;  %v173_v20 = vadd.f32 %v385_v2, %v102_v13  ;;  %v174_v21 = vadd.f32 %v385_v2, %v103_v14  ;;  %v175_v22 = vadd.f32 %v385_v2, %v104_v15  ;;  %v236_v25 = vmax.f32 %v172_v16, 0.0  ;;  %v52_v8 = vld [vmem:[%s896_s0 + $0x130] sm:$0xff]  ;;  %v53_v13 = vld [vmem:[%s896_s0 + $0x138] sm:$0xff] }
  0x13   :  { %v108_v23 = vmul.f32 %v380_v1, %v37_v11  ;;  %v176_v26 = vadd.f32 %v385_v2, %v105_v17  ;;  %v177_v27 = vadd.f32 %v385_v2, %v106_v18  ;;  %v178_v28 = vadd.f32 %v385_v2, %v107_v19 }
  0x14   :  { %v237_v32 = vmax.f32 %v173_v20, 0.0  ;;  %v238_v33 = vmax.f32 %v174_v21, 0.0  ;;  %v239_v34 = vmax.f32 %v175_v22, 0.0  ;;  %300 = vst [vmem:[%s899_s3 + $0x80] sm:$0xff] %v236_v25  ;;  %v109_v42 = vmul.f32 %v380_v1, %v38_v24 }
  0x15   :  { %v179_v35 = vadd.f32 %v385_v2, %v108_v23  ;;  %v240_v39 = vmax.f32 %v176_v26, 0.0  ;;  %v241_v40 = vmax.f32 %v177_v27, 0.0  ;;  %v242_v41 = vmax.f32 %v178_v28, 0.0  ;;  %v54_v26 = vld [vmem:[%s896_s0 + $0x140] sm:$0xff] }
  0x16   :  { %301 = vst [vmem:[%s899_s3 + $0x88] sm:$0xff] %v237_v32  ;;  %302 = vst [vmem:[%s899_s3 + $0x90] sm:$0xff] %v238_v33  ;;  %v110_v45 = vmul.f32 %v380_v1, %v39_v29  ;;  %v111_v46 = vmul.f32 %v380_v1, %v40_v30  ;;  %v112_v47 = vmul.f32 %v380_v1, %v41_v31  ;;  %v55_v31 = vld [vmem:[%s896_s0 + $0x148] sm:$0xff]  ;;  %v56_v32 = vld [vmem:[%s896_s0 + $0x150] sm:$0xff] }
  0x17   :  { %303 = vst [vmem:[%s899_s3 + $0x98] sm:$0xff] %v239_v34  ;;  %v243_v44 = vmax.f32 %v179_v35, 0.0  ;;  %304 = vst [vmem:[%s899_s3 + $0xa0] sm:$0xff] %v240_v39  ;;  %v180_v48 = vadd.f32 %v385_v2, %v109_v42  ;;  %v113_v49 = vmul.f32 %v380_v1, %v42_v36  ;;  %v114_v50 = vmul.f32 %v380_v1, %v43_v37  ;;  %v57_v33 = vld [vmem:[%s896_s0 + $0x158] sm:$0xff]  ;;  %v59_v39 = vld [vmem:[%s896_s0 + $0x168] sm:$0xff] }
  0x18   :  { %305 = vst [vmem:[%s899_s3 + $0xa8] sm:$0xff] %v241_v40  ;;  %306 = vst [vmem:[%s899_s3 + $0xb0] sm:$0xff] %v242_v41  ;;  %v115_v51 = vmul.f32 %v380_v1, %v44_v38  ;;  %v181_v52 = vadd.f32 %v385_v2, %v110_v45  ;;  %v182_v53 = vadd.f32 %v385_v2, %v111_v46  ;;  %v58_v38 = vld [vmem:[%s896_s0 + $0x160] sm:$0xff]  ;;  %v60_v40 = vld [vmem:[%s896_s0 + $0x170] sm:$0xff] }
  0x19   :  { %307 = vst [vmem:[%s899_s3 + $0xb8] sm:$0xff] %v243_v44  ;;  %v183_v54 = vadd.f32 %v385_v2, %v112_v47  ;;  %v116_v55 = vmul.f32 %v380_v1, %v45_v43  ;;  %v244_v57 = vmax.f32 %v180_v48, 0.0  ;;  %v184_v58 = vadd.f32 %v385_v2, %v113_v49  ;;  %v61_v45 = vld [vmem:[%s896_s0 + $0x178] sm:$0xff] }
  0x1a   :  { %v185_v59 = vadd.f32 %v385_v2, %v114_v50  ;;  %v186_v60 = vadd.f32 %v385_v2, %v115_v51  ;;  %v245_v0 = vmax.f32 %v181_v52, 0.0  ;;  %v246_v3 = vmax.f32 %v182_v53, 0.0 }
  0x1b   :  { %v247_v4 = vmax.f32 %v183_v54, 0.0  ;;  %v187_v5 = vadd.f32 %v385_v2, %v116_v55  ;;  %308 = vst [vmem:[%s899_s3 + $0xc0] sm:$0xff] %v244_v57  ;;  %v248_v9 = vmax.f32 %v184_v58, 0.0  ;;  %v117_v12 = vmul.f32 %v380_v1, %v46_v56  ;;  %v62_v58 = vld [vmem:[%s896_s0 + $0x180] sm:$0xff] }
  0x1c   :  { %v249_v10 = vmax.f32 %v185_v59, 0.0  ;;  %v250_v11 = vmax.f32 %v186_v60, 0.0  ;;  %309 = vst [vmem:[%s899_s3 + $0xc8] sm:$0xff] %v245_v0  ;;  %310 = vst [vmem:[%s899_s3 + $0xd0] sm:$0xff] %v246_v3  ;;  %v118_v15 = vmul.f32 %v380_v1, %v47_v61  ;;  %v119_v16 = vmul.f32 %v380_v1, %v48_v62  ;;  %v64_v0 = vld [vmem:[%s896_s0 + $0x190] sm:$0xff]  ;;  %v65_v3 = vld [vmem:[%s896_s0 + $0x198] sm:$0xff] }
  0x1d   :  { %311 = vst [vmem:[%s899_s3 + $0xd8] sm:$0xff] %v247_v4  ;;  %v251_v14 = vmax.f32 %v187_v5, 0.0  ;;  %v120_v17 = vmul.f32 %v380_v1, %v49_v63  ;;  %312 = vst [vmem:[%s899_s3 + $0xe0] sm:$0xff] %v248_v9  ;;  %v188_v18 = vadd.f32 %v385_v2, %v117_v12  ;;  %v121_v19 = vmul.f32 %v380_v1, %v50_v6  ;;  %v63_v63 = vld [vmem:[%s896_s0 + $0x188] sm:$0xff] }
  0x1e   :  { %313 = vst [vmem:[%s899_s3 + $0xe8] sm:$0xff] %v249_v10  ;;  %314 = vst [vmem:[%s899_s3 + $0xf0] sm:$0xff] %v250_v11  ;;  %v122_v20 = vmul.f32 %v380_v1, %v51_v7  ;;  %v123_v21 = vmul.f32 %v380_v1, %v52_v8  ;;  %v189_v22 = vadd.f32 %v385_v2, %v118_v15  ;;  %v66_v8 = vld [vmem:[%s896_s0 + $0x1a0] sm:$0xff]  ;;  %v67_v9 = vld [vmem:[%s896_s0 + $0x1a8] sm:$0xff] }
  0x1f   :  { %315 = vst [vmem:[%s899_s3 + $0xf8] sm:$0xff] %v251_v14  ;;  %v190_v23 = vadd.f32 %v385_v2, %v119_v16  ;;  %v191_v24 = vadd.f32 %v385_v2, %v120_v17  ;;  %v124_v25 = vmul.f32 %v380_v1, %v53_v13  ;;  %v252_v27 = vmax.f32 %v188_v18, 0.0  ;;  %v68_v10 = vld [vmem:[%s896_s0 + $0x1b0] sm:$0xff]  ;;  %v69_v15 = vld [vmem:[%s896_s0 + $0x1b8] sm:$0xff] }
  0x20   :  { %v192_v28 = vadd.f32 %v385_v2, %v121_v19  ;;  %v193_v29 = vadd.f32 %v385_v2, %v122_v20  ;;  %v194_v30 = vadd.f32 %v385_v2, %v123_v21  ;;  %v253_v34 = vmax.f32 %v189_v22, 0.0 }
  0x21   :  { %v254_v35 = vmax.f32 %v190_v23, 0.0  ;;  %v255_v36 = vmax.f32 %v191_v24, 0.0  ;;  %v195_v37 = vadd.f32 %v385_v2, %v124_v25  ;;  %316 = vst [vmem:[%s899_s3 + $0x100] sm:$0xff] %v252_v27  ;;  %v125_v44 = vmul.f32 %v380_v1, %v54_v26 }
  0x22   :  { %v256_v41 = vmax.f32 %v192_v28, 0.0  ;;  %v257_v42 = vmax.f32 %v193_v29, 0.0  ;;  %v258_v43 = vmax.f32 %v194_v30, 0.0  ;;  %317 = vst [vmem:[%s899_s3 + $0x108] sm:$0xff] %v253_v34  ;;  %v126_v47 = vmul.f32 %v380_v1, %v55_v31  ;;  %v70_v28 = vld [vmem:[%s896_s0 + $0x1c0] sm:$0xff]  ;;  %v72_v34 = vld [vmem:[%s896_s0 + $0x1d0] sm:$0xff] }
  0x23   :  { %318 = vst [vmem:[%s899_s3 + $0x110] sm:$0xff] %v254_v35  ;;  %319 = vst [vmem:[%s899_s3 + $0x118] sm:$0xff] %v255_v36  ;;  %v259_v46 = vmax.f32 %v195_v37, 0.0  ;;  %v127_v48 = vmul.f32 %v380_v1, %v56_v32  ;;  %v128_v49 = vmul.f32 %v380_v1, %v57_v33  ;;  %v196_v50 = vadd.f32 %v385_v2, %v125_v44  ;;  %v71_v33 = vld [vmem:[%s896_s0 + $0x1c8] sm:$0xff]  ;;  %v73_v35 = vld [vmem:[%s896_s0 + $0x1d8] sm:$0xff] }
  0x24   :  { %320 = vst [vmem:[%s899_s3 + $0x120] sm:$0xff] %v256_v41  ;;  %321 = vst [vmem:[%s899_s3 + $0x128] sm:$0xff] %v257_v42  ;;  %v129_v51 = vmul.f32 %v380_v1, %v58_v38  ;;  %v130_v52 = vmul.f32 %v380_v1, %v59_v39  ;;  %v131_v53 = vmul.f32 %v380_v1, %v60_v40  ;;  %v74_v40 = vld [vmem:[%s896_s0 + $0x1e0] sm:$0xff]  ;;  %v75_v41 = vld [vmem:[%s896_s0 + $0x1e8] sm:$0xff] }
  0x25   :  { %322 = vst [vmem:[%s899_s3 + $0x130] sm:$0xff] %v258_v43  ;;  %323 = vst [vmem:[%s899_s3 + $0x138] sm:$0xff] %v259_v46  ;;  %v197_v54 = vadd.f32 %v385_v2, %v126_v47  ;;  %v198_v55 = vadd.f32 %v385_v2, %v127_v48  ;;  %v199_v56 = vadd.f32 %v385_v2, %v128_v49  ;;  %v260_v59 = vmax.f32 %v196_v50, 0.0  ;;  %v76_v42 = vld [vmem:[%s896_s0 + $0x1f0] sm:$0xff]  ;;  %v77_v47 = vld [vmem:[%s896_s0 + $0x1f8] sm:$0xff] }
  0x26   :  { %v132_v57 = vmul.f32 %v380_v1, %v61_v45  ;;  %v200_v60 = vadd.f32 %v385_v2, %v129_v51  ;;  %v201_v61 = vadd.f32 %v385_v2, %v130_v52  ;;  %v202_v62 = vadd.f32 %v385_v2, %v131_v53 }
  0x27   :  { %v261_v4 = vmax.f32 %v197_v54, 0.0  ;;  %v262_v5 = vmax.f32 %v198_v55, 0.0  ;;  %v263_v6 = vmax.f32 %v199_v56, 0.0  ;;  %324 = vst [vmem:[%s899_s3 + $0x140] sm:$0xff] %v260_v59  ;;  %v133_v14 = vmul.f32 %v380_v1, %v62_v58 }
  0x28   :  { %v203_v7 = vadd.f32 %v385_v2, %v132_v57  ;;  %v264_v11 = vmax.f32 %v200_v60, 0.0  ;;  %v265_v12 = vmax.f32 %v201_v61, 0.0  ;;  %v266_v13 = vmax.f32 %v202_v62, 0.0 }
  0x29   :  { %325 = vst [vmem:[%s899_s3 + $0x148] sm:$0xff] %v261_v4  ;;  %326 = vst [vmem:[%s899_s3 + $0x150] sm:$0xff] %v262_v5  ;;  %v134_v17 = vmul.f32 %v380_v1, %v63_v63  ;;  %v135_v18 = vmul.f32 %v380_v1, %v64_v0  ;;  %v136_v19 = vmul.f32 %v380_v1, %v65_v3 }
  0x2a   :  { %327 = vst [vmem:[%s899_s3 + $0x158] sm:$0xff] %v263_v6  ;;  %v267_v16 = vmax.f32 %v203_v7, 0.0  ;;  %328 = vst [vmem:[%s899_s3 + $0x160] sm:$0xff] %v264_v11  ;;  %v204_v20 = vadd.f32 %v385_v2, %v133_v14  ;;  %v137_v21 = vmul.f32 %v380_v1, %v66_v8  ;;  %v138_v22 = vmul.f32 %v380_v1, %v67_v9 }
  0x2b   :  { %329 = vst [vmem:[%s899_s3 + $0x168] sm:$0xff] %v265_v12  ;;  %330 = vst [vmem:[%s899_s3 + $0x170] sm:$0xff] %v266_v13  ;;  %v139_v23 = vmul.f32 %v380_v1, %v68_v10  ;;  %v205_v24 = vadd.f32 %v385_v2, %v134_v17  ;;  %v206_v25 = vadd.f32 %v385_v2, %v135_v18 }
  0x2c   :  { %331 = vst [vmem:[%s899_s3 + $0x178] sm:$0xff] %v267_v16  ;;  %v207_v26 = vadd.f32 %v385_v2, %v136_v19  ;;  %v140_v27 = vmul.f32 %v380_v1, %v69_v15  ;;  %v268_v29 = vmax.f32 %v204_v20, 0.0  ;;  %v208_v30 = vadd.f32 %v385_v2, %v137_v21 }
  0x2d   :  { %v209_v31 = vadd.f32 %v385_v2, %v138_v22  ;;  %v210_v32 = vadd.f32 %v385_v2, %v139_v23  ;;  %v269_v36 = vmax.f32 %v205_v24, 0.0  ;;  %v270_v37 = vmax.f32 %v206_v25, 0.0 }
  0x2e   :  { %v271_v38 = vmax.f32 %v207_v26, 0.0  ;;  %v211_v39 = vadd.f32 %v385_v2, %v140_v27  ;;  %332 = vst [vmem:[%s899_s3 + $0x180] sm:$0xff] %v268_v29  ;;  %v272_v43 = vmax.f32 %v208_v30, 0.0  ;;  %v141_v46 = vmul.f32 %v380_v1, %v70_v28 }
  0x2f   :  { %v273_v44 = vmax.f32 %v209_v31, 0.0  ;;  %v274_v45 = vmax.f32 %v210_v32, 0.0  ;;  %333 = vst [vmem:[%s899_s3 + $0x188] sm:$0xff] %v269_v36  ;;  %334 = vst [vmem:[%s899_s3 + $0x190] sm:$0xff] %v270_v37  ;;  %v142_v49 = vmul.f32 %v380_v1, %v71_v33  ;;  %v143_v50 = vmul.f32 %v380_v1, %v72_v34 }
  0x30   :  { %335 = vst [vmem:[%s899_s3 + $0x198] sm:$0xff] %v271_v38  ;;  %v275_v48 = vmax.f32 %v211_v39, 0.0  ;;  %v144_v51 = vmul.f32 %v380_v1, %v73_v35  ;;  %336 = vst [vmem:[%s899_s3 + $0x1a0] sm:$0xff] %v272_v43  ;;  %v212_v52 = vadd.f32 %v385_v2, %v141_v46  ;;  %v145_v53 = vmul.f32 %v380_v1, %v74_v40 }
  0x31   :  { %337 = vst [vmem:[%s899_s3 + $0x1a8] sm:$0xff] %v273_v44  ;;  %338 = vst [vmem:[%s899_s3 + $0x1b0] sm:$0xff] %v274_v45  ;;  %v146_v54 = vmul.f32 %v380_v1, %v75_v41  ;;  %v147_v55 = vmul.f32 %v380_v1, %v76_v42  ;;  %v213_v56 = vadd.f32 %v385_v2, %v142_v49 }
  0x32   :  { %339 = vst [vmem:[%s899_s3 + $0x1b8] sm:$0xff] %v275_v48  ;;  %v214_v57 = vadd.f32 %v385_v2, %v143_v50  ;;  %v215_v58 = vadd.f32 %v385_v2, %v144_v51  ;;  %v148_v59 = vmul.f32 %v380_v1, %v77_v47  ;;  %v276_v60 = vmax.f32 %v212_v52, 0.0 }
  0x33   :  { %v216_v61 = vadd.f32 %v385_v2, %v145_v53  ;;  %v217_v62 = vadd.f32 %v385_v2, %v146_v54  ;;  %v218_v63 = vadd.f32 %v385_v2, %v147_v55  ;;  %v277_v0 = vmax.f32 %v213_v56, 0.0 }
  0x34   :  { %v278_v3 = vmax.f32 %v214_v57, 0.0  ;;  %v279_v4 = vmax.f32 %v215_v58, 0.0  ;;  %v219_v5 = vadd.f32 %v385_v2, %v148_v59  ;;  %340 = vst [vmem:[%s899_s3 + $0x1c0] sm:$0xff] %v276_v60 }
  0x35   :  { %v280_v6 = vmax.f32 %v216_v61, 0.0  ;;  %v281_v7 = vmax.f32 %v217_v62, 0.0  ;;  %v282_v8 = vmax.f32 %v218_v63, 0.0  ;;  %341 = vst [vmem:[%s899_s3 + $0x1c8] sm:$0xff] %v277_v0 }
  0x36   :  { %342 = vst [vmem:[%s899_s3 + $0x1d0] sm:$0xff] %v278_v3  ;;  %343 = vst [vmem:[%s899_s3 + $0x1d8] sm:$0xff] %v279_v4  ;;  %v283_v1 = vmax.f32 %v219_v5, 0.0 }
  0x37   :  { %344 = vst [vmem:[%s899_s3 + $0x1e0] sm:$0xff] %v280_v6  ;;  %345 = vst [vmem:[%s899_s3 + $0x1e8] sm:$0xff] %v281_v7 }
  0x38   :  { %346 = vst [vmem:[%s899_s3 + $0x1f0] sm:$0xff] %v282_v8  ;;  %347 = vst [vmem:[%s899_s3 + $0x1f8] sm:$0xff] %v283_v1 }

// kernel: model_forward.11
= control target key start
LH: loop header
LB: loop body
LE: loop exit
PB: predicated region body
PF: predicated region fallthrough
CT: control target
= control target key end

     0   :  { %v4304_v0 = vmov 0   ;;  %vm3292_vm0 = vcmask 1040384   ;;  %s5846_s1 = inlined_call_operand.vmem [shape: bf16[896,128], index: 1, kind: input, shape index: {}]   ;;  %s5847_s0 = inlined_call_operand.vmem [shape: bf16[512,896], index: 0, kind: input, shape index: {}]   ;;  %s5848_s2 = inlined_call_operand.vmem [shape: f32[512,128], index: 2, kind: output, shape index: {0}]   ;;  %s5849_s3 = inlined_call_operand.vmem [shape: f32[1,2,128], index: 3, kind: output, shape index: {1}]  }
   0x1   :  { %1870 = vmatprep.subr.bf16.mxu1 %v4304_v0  ;;  %2159 = vmatprep.subr.bf16.mxu0 %v4304_v0  ;;  %v3928_v1 = vld [vmem:[%s5846_s1] sm:$0xff]   ;;  %v3930_v3 = vld [vmem:[%s5846_s1 + $0x8] sm:$0xff]   ;;  %v3932_v5 = vld [vmem:[%s5846_s1 + $0x10] sm:$0xff]  }
   0x2   :  { %v4333_v2 = vld [vmem:[%s5846_s1 + $0x80] sm:$0xff]   ;;  %1871 = vmatpush1.bf16.msra.mxu1 %v3928_v1  ;;  %v4343_v4 = vld [vmem:[%s5846_s1 + $0x88] sm:$0xff]   ;;  %v4354_v6 = vld [vmem:[%s5846_s1 + $0x90] sm:$0xff]  }
   0x3   :  { %2160 = vmatpush1.bf16.msra.mxu0 %v4333_v2  ;;  %1872 = vmatprep.subr.bf16.mxu1 %v4304_v0  ;;  %v3934_v7 = vld [vmem:[%s5846_s1 + $0x18] sm:$0xff]   ;;  %v3936_v9 = vld [vmem:[%s5846_s1 + $0x20] sm:$0xff]   ;;  %v3938_v11 = vld [vmem:[%s5846_s1 + $0x28] sm:$0xff]  }
   0x4   :  { %2161 = vmatprep.subr.bf16.mxu0 %v4304_v0  ;;  %v4365_v8 = vld [vmem:[%s5846_s1 + $0x98] sm:$0xff]   ;;  %v4376_v10 = vld [vmem:[%s5846_s1 + $0xa0] sm:$0xff]   ;;  %v4387_v12 = vld [vmem:[%s5846_s1 + $0xa8] sm:$0xff]  }
   0x5   :  { %v3940_v13 = vld [vmem:[%s5846_s1 + $0x30] sm:$0xff]   ;;  %v3942_v15 = vld [vmem:[%s5846_s1 + $0x38] sm:$0xff]   ;;  %v3944_v17 = vld [vmem:[%s5846_s1 + $0x40] sm:$0xff]  }
   0x6   :  { %1873 = vmatpush1.bf16.msra.mxu1 %v3930_v3  ;;  %v4398_v14 = vld [vmem:[%s5846_s1 + $0xb0] sm:$0xff]   ;;  %v4409_v16 = vld [vmem:[%s5846_s1 + $0xb8] sm:$0xff]   ;;  %v4420_v18 = vld [vmem:[%s5846_s1 + $0xc0] sm:$0xff]  }
   0x7   :  { %2162 = vmatpush1.bf16.msra.mxu0 %v4343_v4  ;;  %1874 = vmatprep.subr.bf16.mxu1 %v4304_v0  ;;  %v3962_v19 = vld [vmem:[%s5847_s0 + $0x4] ss:$28 sps:$4 sm:$0xff]   ;;  %v3946_v20 = vld [vmem:[%s5846_s1 + $0x48] sm:$0xff]   ;;  %v3948_v23 = vld [vmem:[%s5846_s1 + $0x50] sm:$0xff]  }
   0x8   :  { %2163 = vmatprep.subr.bf16.mxu0 %v4304_v0  ;;  %v3965_v21 = vld [vmem:[%s5847_s0 + $0xc] ss:$28 sps:$4 sm:$0xff]   ;;  %1902 = vmatprep.mubr.bf16.mxu1 %v3962_v19  ;;  %v4448_v24 = vld [vmem:[%s5846_s1 + $0xd0] sm:$0xff]   ;;  %v3950_v25 = vld [vmem:[%s5846_s1 + $0x58] sm:$0xff]  }
   0x9   :  { %v4437_v22 = vld [vmem:[%s5846_s1 + $0xc8] sm:$0xff]   ;;  %2191 = vmatprep.mubr.bf16.mxu0 %v3965_v21  ;;  %v4459_v26 = vld [vmem:[%s5846_s1 + $0xd8] sm:$0xff]   ;;  %v3952_v27 = vld [vmem:[%s5846_s1 + $0x60] sm:$0xff]  }
   0xa   :  { %1875 = vmatpush1.bf16.msra.mxu1 %v3932_v5  ;;  %v4470_v28 = vld [vmem:[%s5846_s1 + $0xe0] sm:$0xff]   ;;  %v3954_v29 = vld [vmem:[%s5846_s1 + $0x68] sm:$0xff]   ;;  %v3956_v31 = vld [vmem:[%s5846_s1 + $0x70] sm:$0xff]  }
   0xb   :  { %2164 = vmatpush1.bf16.msra.mxu0 %v4354_v6  ;;  %1876 = vmatprep.subr.bf16.mxu1 %v4304_v0  ;;  %v4481_v30 = vld [vmem:[%s5846_s1 + $0xe8] sm:$0xff]   ;;  %v4492_v32 = vld [vmem:[%s5846_s1 + $0xf0] sm:$0xff]   ;;  %v3958_v33 = vld [vmem:[%s5846_s1 + $0x78] sm:$0xff]  }
   0xc   :  { %2165 = vmatprep.subr.bf16.mxu0 %v4304_v0  ;;  %v4503_v34 = vld [vmem:[%s5846_s1 + $0xf8] sm:$0xff]   ;;  %v3963_v36 = vld [vmem:[%s5847_s0 + $0x8] ss:$28 sps:$4 sm:$0xff]   ;;  %v3973_v43 = vld [vmem:[%s5847_s0 + $0x74] ss:$28 sps:$4 sm:$0xff]  }
   0xd   :  { %v3960_v35 = vld [vmem:[%s5847_s0] ss:$28 sps:$4 sm:$0xff]   ;;  %v3979_v40 = vld [vmem:[%s5846_s1 + $0x108] sm:$0xff]   ;;  %v3971_v41 = vld [vmem:[%s5847_s0 + $0x38] ss:$28 sps:$4 sm:$0xff]  }
   0xe   :  { %1877 = vmatpush1.bf16.msra.mxu1 %v3934_v7  ;;  %v3966_v37 = vld [vmem:[%s5846_s1 + $0x100] sm:$0xff]   ;;  %v3967_v38 = vld [vmem:[%s5847_s0 + $0x3c] ss:$28 sps:$4 sm:$0xff]   ;;  %v3986_v45 = vld [vmem:[%s5846_s1 + $0x110] sm:$0xff]  }
   0xf   :  { %2166 = vmatpush1.bf16.msra.mxu0 %v4365_v8  ;;  %1878 = vmatprep.subr.bf16.mxu1 %v4304_v0  ;;  %v3969_v39 = vld [vmem:[%s5847_s0 + $0x44] ss:$28 sps:$4 sm:$0xff]   ;;  %v3975_v44 = vld [vmem:[%s5847_s0 + $0x7c] ss:$28 sps:$4 sm:$0xff]   ;;  %v3977_v47 = vld [vmem:[%s5847_s0 + $0x70] ss:$28 sps:$4 sm:$0xff]  }
  0x10   :  { %2167 = vmatprep.subr.bf16.mxu0 %v4304_v0  ;;  %v3972_v42 = vld [vmem:[%s5847_s0 + $0x40] ss:$28 sps:$4 sm:$0xff]   ;;  %v3978_v48 = vld [vmem:[%s5847_s0 + $0x78] ss:$28 sps:$4 sm:$0xff]   ;;  %v3980_v49 = vld [vmem:[%s5847_s0 + $0xac] ss:$28 sps:$4 sm:$0xff]  }
  0x11   :  { %v3999_v46 = vld [vmem:[%s5846_s1 + $0x118] sm:$0xff]   ;;  %v3982_v50 = vld [vmem:[%s5847_s0 + $0xb4] ss:$28 sps:$4 sm:$0xff]   ;;  %v4006_v51 = vld [vmem:[%s5846_s1 + $0x120] sm:$0xff]  }
  0x12   :  { %1879 = vmatpush1.bf16.msra.mxu1 %v3936_v9  ;;  %v4019_v52 = vld [vmem:[%s5846_s1 + $0x128] sm:$0xff]   ;;  %v3987_v55 = vld [vmem:[%s5847_s0 + $0xe4] ss:$28 sps:$4 sm:$0xff]   ;;  %v4026_v57 = vld [vmem:[%s5846_s1 + $0x130] sm:$0xff]  }
  0x13   :  { %2168 = vmatpush1.bf16.msra.mxu0 %v4376_v10  ;;  %1880 = vmatprep.subr.bf16.mxu1 %v4304_v0  ;;  %v3984_v53 = vld [vmem:[%s5847_s0 + $0xa8] ss:$28 sps:$4 sm:$0xff]   ;;  %v3985_v54 = vld [vmem:[%s5847_s0 + $0xb0] ss:$28 sps:$4 sm:$0xff]   ;;  %v4039_v58 = vld [vmem:[%s5846_s1 + $0x138] sm:$0xff]  }
  0x14   :  { %2169 = vmatprep.subr.bf16.mxu0 %v4304_v0  ;;  %v3989_v56 = vld [vmem:[%s5847_s0 + $0xec] ss:$28 sps:$4 sm:$0xff]   ;;  %v3991_v59 = vld [vmem:[%s5847_s0 + $0xe0] ss:$28 sps:$4 sm:$0xff]   ;;  %v4005_v9 = vld [vmem:[%s5847_s0 + $0x158] ss:$28 sps:$4 sm:$0xff]  }
  0x15   :  { %v3992_v60 = vld [vmem:[%s5847_s0 + $0xe8] ss:$28 sps:$4 sm:$0xff]   ;;  %v3993_v61 = vld [vmem:[%s5847_s0 + $0x11c] ss:$28 sps:$4 sm:$0xff]   ;;  %v4004_v7 = vld [vmem:[%s5847_s0 + $0x150] ss:$28 sps:$4 sm:$0xff]  }
  0x16   :  { %1881 = vmatpush1.bf16.msra.mxu1 %v3938_v11  ;;  %v3995_v62 = vld [vmem:[%s5847_s0 + $0x124] ss:$28 sps:$4 sm:$0xff]   ;;  %v4059_v1 = vld [vmem:[%s5846_s1 + $0x148] sm:$0xff]   ;;  %v4002_v5 = vld [vmem:[%s5847_s0 + $0x15c] ss:$28 sps:$4 sm:$0xff]  }
  0x17   :  { %2170 = vmatpush1.bf16.msra.mxu0 %v4387_v12  ;;  %1882 = vmatprep.subr.bf16.mxu1 %v4304_v0  ;;  %v4046_v63 = vld [vmem:[%s5846_s1 + $0x140] sm:$0xff]   ;;  %v4009_v11 = vld [vmem:[%s5847_s0 + $0x194] ss:$28 sps:$4 sm:$0xff]  }
  0x18   :  { %2171 = vmatprep.subr.bf16.mxu0 %v4304_v0  ;;  %v3998_v3 = vld [vmem:[%s5847_s0 + $0x120] ss:$28 sps:$4 sm:$0xff]   ;;  %v4018_v21 = vld [vmem:[%s5847_s0 + $0x1c8] ss:$28 sps:$4 sm:$0xff]  }
  0x19   :  { %v4017_v19 = vld [vmem:[%s5847_s0 + $0x1c0] ss:$28 sps:$4 sm:$0xff]  }
  0x1a   :  { %1883 = vmatpush1.bf16.msra.mxu1 %v3940_v13  ;;  %v4011_v13 = vld [vmem:[%s5847_s0 + $0x188] ss:$28 sps:$4 sm:$0xff]  }
  0x1b   :  { %2172 = vmatpush1.bf16.msra.mxu0 %v4398_v14  ;;  %1884 = vmatprep.subr.bf16.mxu1 %v4304_v0 }
  0x1c   :  { %2173 = vmatprep.subr.bf16.mxu0 %v4304_v0 }
  0x1e   :  { %1885 = vmatpush1.bf16.msra.mxu1 %v3942_v15  ;;  %v4012_v15 = vld [vmem:[%s5847_s0 + $0x190] ss:$28 sps:$4 sm:$0xff]  }
  0x1f   :  { %2174 = vmatpush1.bf16.msra.mxu0 %v4409_v16  ;;  %1886 = vmatprep.subr.bf16.mxu1 %v4304_v0 }
  0x20   :  { %2175 = vmatprep.subr.bf16.mxu0 %v4304_v0 }
  0x22   :  { %1887 = vmatpush1.bf16.msra.mxu1 %v3944_v17  ;;  %v4015_v17 = vld [vmem:[%s5847_s0 + $0x1cc] ss:$28 sps:$4 sm:$0xff]  }
  0x23   :  { %2176 = vmatpush1.bf16.msra.mxu0 %v4420_v18  ;;  %1888 = vmatprep.subr.bf16.mxu1 %v4304_v0 }
  0x24   :  { %2177 = vmatprep.subr.bf16.mxu0 %v4304_v0 }
  0x26   :  { %1889 = vmatpush1.bf16.msra.mxu1 %v3946_v20  ;;  %v4119_v20 = vld [vmem:[%s5846_s1 + $0x178] sm:$0xff]  }
  0x27   :  { %2178 = vmatpush1.bf16.msra.mxu0 %v4437_v22  ;;  %1890 = vmatprep.subr.bf16.mxu1 %v4304_v0 }
  0x28   :  { %2179 = vmatprep.subr.bf16.mxu0 %v4304_v0 }
  0x2a   :  { %1891 = vmatpush1.bf16.msra.mxu1 %v3948_v23  ;;  %v4022_v23 = vld [vmem:[%s5847_s0 + $0x204] ss:$28 sps:$4 sm:$0xff]  }
  0x2b   :  { %2180 = vmatpush1.bf16.msra.mxu0 %v4448_v24  ;;  %1892 = vmatprep.subr.bf16.mxu1 %v4304_v0 }
  0x2c   :  { %2181 = vmatprep.subr.bf16.mxu0 %v4304_v0 }
  0x2e   :  { %1893 = vmatpush1.bf16.msra.mxu1 %v3950_v25  ;;  %v4025_v25 = vld [vmem:[%s5847_s0 + $0x200] ss:$28 sps:$4 sm:$0xff]  }
  0x2f   :  { %2182 = vmatpush1.bf16.msra.mxu0 %v4459_v26  ;;  %1894 = vmatprep.subr.bf16.mxu1 %v4304_v0 }
  0x30   :  { %2183 = vmatprep.subr.bf16.mxu0 %v4304_v0 }
  0x32   :  { %1895 = vmatpush1.bf16.msra.mxu1 %v3952_v27  ;;  %v4031_v27 = vld [vmem:[%s5847_s0 + $0x230] ss:$28 sps:$4 sm:$0xff]  }
  0x33   :  { %2184 = vmatpush1.bf16.msra.mxu0 %v4470_v28  ;;  %1896 = vmatprep.subr.bf16.mxu1 %v4304_v0 }
  0x34   :  { %2185 = vmatprep.subr.bf16.mxu0 %v4304_v0 }
  0x36   :  { %1897 = vmatpush1.bf16.msra.mxu1 %v3954_v29  ;;  %v4033_v29 = vld [vmem:[%s5847_s0 + $0x26c] ss:$28 sps:$4 sm:$0xff]  }
  0x37   :  { %2186 = vmatpush1.bf16.msra.mxu0 %v4481_v30  ;;  %1898 = vmatprep.subr.bf16.mxu1 %v4304_v0 }
  0x38   :  { %2187 = vmatprep.subr.bf16.mxu0 %v4304_v0 }
  0x3a   :  { %1899 = vmatpush1.bf16.msra.mxu1 %v3956_v31  ;;  %v4037_v31 = vld [vmem:[%s5847_s0 + $0x268] ss:$28 sps:$4 sm:$0xff]  }
  0x3b   :  { %2188 = vmatpush1.bf16.msra.mxu0 %v4492_v32  ;;  %1900 = vmatprep.subr.bf16.mxu1 %v4304_v0 }
  0x3c   :  { %2189 = vmatprep.subr.bf16.mxu0 %v4304_v0 }
  0x3e   :  { %1901 = vmatpush1.bf16.msra.mxu1 %v3958_v33  ;;  %v4040_v33 = vld [vmem:[%s5847_s0 + $0x2a4] ss:$28 sps:$4 sm:$0xff]  }
  0x3f   :  { %2190 = vmatpush1.bf16.msra.mxu0 %v4503_v34  ;;  %3703 = vmatprep.subr.bf16.mxu1 %v4304_v0 }
  0x40   :  { %2448 = vmatprep.subr.bf16.mxu0 %v4304_v0 }
  0x41   :  { %1903 = vmatmul.mubr.bf16.vlgmr.msra.gmra.mrb[0].mxu1 %v3960_v35  ;;  %v4044_v35 = vld [vmem:[%s5847_s0 + $0x2a0] ss:$28 sps:$4 sm:$0xff]  }
  0x42   :  { %2192 = vmatmul.mubr.bf16.vlgmr.msra.gmra.mrb[0].mxu0 %v3963_v36  ;;  %3719 = vmatpush1.bf16.msra.mxu1 %v4333_v2  ;;  %v3997_v2 = vld [vmem:[%s5847_s0 + $0x118] ss:$28 sps:$4 sm:$0xff]   ;;  %v4045_v36 = vld [vmem:[%s5847_s0 + $0x2a8] ss:$28 sps:$4 sm:$0xff]  }
  0x43   :  { %2449 = vmatpush1.bf16.msra.mxu0 %v3966_v37  ;;  %1910 = vmatprep.mubr.bf16.mxu1 %v3967_v38  ;;  %v4047_v37 = vld [vmem:[%s5847_s0 + $0x2dc] ss:$28 sps:$4 sm:$0xff]   ;;  %v4049_v38 = vld [vmem:[%s5847_s0 + $0x2e4] ss:$28 sps:$4 sm:$0xff]  }
  0x44   :  { %2199 = vmatprep.mubr.bf16.mxu0 %v3969_v39  ;;  %2450 = vmatprep.subr.bf16.mxu0 %v4304_v0  ;;  %v4051_v39 = vld [vmem:[%s5847_s0 + $0x2d8] ss:$28 sps:$4 sm:$0xff]  }
  0x45   :  { %3704 = vmatprep.subr.bf16.mxu1 %v4304_v0 }
  0x46   :  { %3720 = vmatpush1.bf16.msra.mxu1 %v4343_v4  ;;  %v4000_v4 = vld [vmem:[%s5847_s0 + $0x154] ss:$28 sps:$4 sm:$0xff]  }
  0x47   :  { %2451 = vmatpush1.bf16.msra.mxu0 %v3979_v40  ;;  %3705 = vmatprep.subr.bf16.mxu1 %v4304_v0  ;;  %v4052_v40 = vld [vmem:[%s5847_s0 + $0x2e0] ss:$28 sps:$4 sm:$0xff]  }
  0x48   :  { %2452 = vmatprep.subr.bf16.mxu0 %v4304_v0 }
  0x49   :  { %1911 = vmatmul.mubr.bf16.gmra.mrb[4].mxu1 %v3971_v41  ;;  %v4053_v41 = vld [vmem:[%s5847_s0 + $0x314] ss:$28 sps:$4 sm:$0xff]  }
  0x4a   :  { %2200 = vmatmul.mubr.bf16.gmra.mrb[4].mxu0 %v3972_v42  ;;  %1918 = vmatprep.mubr.bf16.mxu1 %v3973_v43  ;;  %v4055_v42 = vld [vmem:[%s5847_s0 + $0x31c] ss:$28 sps:$4 sm:$0xff]   ;;  %v4057_v43 = vld [vmem:[%s5847_s0 + $0x310] ss:$28 sps:$4 sm:$0xff]  }
  0x4b   :  { %2207 = vmatprep.mubr.bf16.mxu0 %v3975_v44  ;;  %2453 = vmatpush1.bf16.msra.mxu0 %v3986_v45  ;;  %v4058_v44 = vld [vmem:[%s5847_s0 + $0x318] ss:$28 sps:$4 sm:$0xff]   ;;  %v4060_v45 = vld [vmem:[%s5847_s0 + $0x34c] ss:$28 sps:$4 sm:$0xff]  }
  0x4c   :  { %3721 = vmatpush1.bf16.msra.mxu1 %v4354_v6  ;;  %2454 = vmatprep.subr.bf16.mxu0 %v4304_v0  ;;  %v4066_v6 = vld [vmem:[%s5846_s1 + $0x150] sm:$0xff]  }
  0x4d   :  { %3706 = vmatprep.subr.bf16.mxu1 %v4304_v0 }
  0x4f   :  { %2455 = vmatpush1.bf16.msra.mxu0 %v3999_v46  ;;  %v4062_v46 = vld [vmem:[%s5847_s0 + $0x354] ss:$28 sps:$4 sm:$0xff]  }
  0x50   :  { %3722 = vmatpush1.bf16.msra.mxu1 %v4365_v8  ;;  %2456 = vmatprep.subr.bf16.mxu0 %v4304_v0  ;;  %v4079_v8 = vld [vmem:[%s5846_s1 + $0x158] sm:$0xff]  }
  0x51   :  { %1919 = vmatmul.mubr.bf16.gmra.mrb[8].mxu1 %v3977_v47  ;;  %3707 = vmatprep.subr.bf16.mxu1 %v4304_v0  ;;  %v4064_v47 = vld [vmem:[%s5847_s0 + $0x348] ss:$28 sps:$4 sm:$0xff]  }
  0x52   :  { %2208 = vmatmul.mubr.bf16.gmra.mrb[8].mxu0 %v3978_v48  ;;  %1926 = vmatprep.mubr.bf16.mxu1 %v3980_v49  ;;  %v4065_v48 = vld [vmem:[%s5847_s0 + $0x350] ss:$28 sps:$4 sm:$0xff]   ;;  %v4067_v49 = vld [vmem:[%s5847_s0 + $0x384] ss:$28 sps:$4 sm:$0xff]  }
  0x53   :  { %2215 = vmatprep.mubr.bf16.mxu0 %v3982_v50  ;;  %2457 = vmatpush1.bf16.msra.mxu0 %v4006_v51  ;;  %v4069_v50 = vld [vmem:[%s5847_s0 + $0x38c] ss:$28 sps:$4 sm:$0xff]   ;;  %v4071_v51 = vld [vmem:[%s5847_s0 + $0x380] ss:$28 sps:$4 sm:$0xff]  }
  0x54   :  { %2458 = vmatprep.subr.bf16.mxu0 %v4304_v0  ;;  %3723 = vmatpush1.bf16.msra.mxu1 %v4376_v10  ;;  %v4007_v10 = vld [vmem:[%s5847_s0 + $0x18c] ss:$28 sps:$4 sm:$0xff]  }
  0x55   :  { %3708 = vmatprep.subr.bf16.mxu1 %v4304_v0 }
  0x57   :  { %2459 = vmatpush1.bf16.msra.mxu0 %v4019_v52  ;;  %v4072_v52 = vld [vmem:[%s5847_s0 + $0x388] ss:$28 sps:$4 sm:$0xff]  }
  0x58   :  { %2460 = vmatprep.subr.bf16.mxu0 %v4304_v0  ;;  %3724 = vmatpush1.bf16.msra.mxu1 %v4387_v12  ;;  %v4086_v12 = vld [vmem:[%s5846_s1 + $0x160] sm:$0xff]  }
  0x59   :  { %1927 = vmatmul.mubr.bf16.gmra.mrb[12].mxu1 %v3984_v53  ;;  %3709 = vmatprep.subr.bf16.mxu1 %v4304_v0  ;;  %v4073_v53 = vld [vmem:[%s5847_s0 + $0x3bc] ss:$28 sps:$4 sm:$0xff]  }
  0x5a   :  { %2216 = vmatmul.mubr.bf16.gmra.mrb[12].mxu0 %v3985_v54  ;;  %1934 = vmatprep.mubr.bf16.mxu1 %v3987_v55  ;;  %v4075_v54 = vld [vmem:[%s5847_s0 + $0x3c4] ss:$28 sps:$4 sm:$0xff]  }
  0x5b   :  { %2223 = vmatprep.mubr.bf16.mxu0 %v3989_v56  ;;  %2461 = vmatpush1.bf16.msra.mxu0 %v4026_v57  ;;  %v4810_v55 = vld [vmem:[%s5846_s1 + $0x180] sm:$0xff]   ;;  %v4077_v56 = vld [vmem:[%s5847_s0 + $0x3b8] ss:$28 sps:$4 sm:$0xff]  }
  0x5c   :  { %2462 = vmatprep.subr.bf16.mxu0 %v4304_v0  ;;  %3725 = vmatpush1.bf16.msra.mxu1 %v4398_v14  ;;  %v4099_v14 = vld [vmem:[%s5846_s1 + $0x168] sm:$0xff]   ;;  %v4078_v57 = vld [vmem:[%s5847_s0 + $0x3c0] ss:$28 sps:$4 sm:$0xff]  }
  0x5d   :  { %3710 = vmatprep.subr.bf16.mxu1 %v4304_v0 }
  0x5f   :  { %2463 = vmatpush1.bf16.msra.mxu0 %v4039_v58  ;;  %v4080_v58 = vld [vmem:[%s5847_s0 + $0x3f4] ss:$28 sps:$4 sm:$0xff]  }
  0x60   :  { %2464 = vmatprep.subr.bf16.mxu0 %v4304_v0  ;;  %3726 = vmatpush1.bf16.msra.mxu1 %v4409_v16  ;;  %v4013_v16 = vld [vmem:[%s5847_s0 + $0x1c4] ss:$28 sps:$4 sm:$0xff]  }
  0x61   :  { %1935 = vmatmul.mubr.bf16.gmra.mrb[16].mxu1 %v3991_v59  ;;  %3711 = vmatprep.subr.bf16.mxu1 %v4304_v0  ;;  %v4082_v59 = vld [vmem:[%s5847_s0 + $0x3fc] ss:$28 sps:$4 sm:$0xff]  }
  0x62   :  { %2224 = vmatmul.mubr.bf16.gmra.mrb[16].mxu0 %v3992_v60  ;;  %1942 = vmatprep.mubr.bf16.mxu1 %v3993_v61  ;;  %v4084_v60 = vld [vmem:[%s5847_s0 + $0x3f0] ss:$28 sps:$4 sm:$0xff]   ;;  %v4085_v61 = vld [vmem:[%s5847_s0 + $0x3f8] ss:$28 sps:$4 sm:$0xff]  }
  0x63   :  { %2231 = vmatprep.mubr.bf16.mxu0 %v3995_v62  ;;  %2465 = vmatpush1.bf16.msra.mxu0 %v4046_v63  ;;  %v4087_v62 = vld [vmem:[%s5847_s0 + $0x42c] ss:$28 sps:$4 sm:$0xff]   ;;  %v4089_v63 = vld [vmem:[%s5847_s0 + $0x434] ss:$28 sps:$4 sm:$0xff]  }
  0x64   :  { %2466 = vmatprep.subr.bf16.mxu0 %v4304_v0  ;;  %3727 = vmatpush1.bf16.msra.mxu1 %v4420_v18  ;;  %v4106_v18 = vld [vmem:[%s5846_s1 + $0x170] sm:$0xff]  }
  0x65   :  { %3712 = vmatprep.subr.bf16.mxu1 %v4304_v0 }
  0x67   :  { %2467 = vmatpush1.bf16.msra.mxu0 %v4059_v1  ;;  %v4091_v1 = vld [vmem:[%s5847_s0 + $0x428] ss:$28 sps:$4 sm:$0xff]  }
  0x68   :  { %2468 = vmatprep.subr.bf16.mxu0 %v4304_v0  ;;  %3728 = vmatpush1.bf16.msra.mxu1 %v4437_v22  ;;  %v4020_v22 = vld [vmem:[%s5847_s0 + $0x1fc] ss:$28 sps:$4 sm:$0xff]  }
  0x69   :  { %1943 = vmatmul.mubr.bf16.gmra.mrb[20].mxu1 %v3997_v2  ;;  %3713 = vmatprep.subr.bf16.mxu1 %v4304_v0  ;;  %v4092_v2 = vld [vmem:[%s5847_s0 + $0x430] ss:$28 sps:$4 sm:$0xff]  }
  0x6a   :  { %2232 = vmatmul.mubr.bf16.gmra.mrb[20].mxu0 %v3998_v3  ;;  %1950 = vmatprep.mubr.bf16.mxu1 %v4000_v4  ;;  %v4093_v3 = vld [vmem:[%s5847_s0 + $0x464] ss:$28 sps:$4 sm:$0xff]   ;;  %v4095_v4 = vld [vmem:[%s5847_s0 + $0x46c] ss:$28 sps:$4 sm:$0xff]  }
  0x6b   :  { %2239 = vmatprep.mubr.bf16.mxu0 %v4002_v5  ;;  %2469 = vmatpush1.bf16.msra.mxu0 %v4066_v6  ;;  %v4097_v5 = vld [vmem:[%s5847_s0 + $0x460] ss:$28 sps:$4 sm:$0xff]   ;;  %v4098_v6 = vld [vmem:[%s5847_s0 + $0x468] ss:$28 sps:$4 sm:$0xff]  }
  0x6c   :  { %2470 = vmatprep.subr.bf16.mxu0 %v4304_v0  ;;  %3729 = vmatpush1.bf16.msra.mxu1 %v4448_v24  ;;  %v4024_v24 = vld [vmem:[%s5847_s0 + $0x1f8] ss:$28 sps:$4 sm:$0xff]  }
  0x6d   :  { %3714 = vmatprep.subr.bf16.mxu1 %v4304_v0 }
  0x6f   :  { %2471 = vmatpush1.bf16.msra.mxu0 %v4079_v8  ;;  %v4102_v8 = vld [vmem:[%s5847_s0 + $0x4a4] ss:$28 sps:$4 sm:$0xff]  }
  0x70   :  { %2472 = vmatprep.subr.bf16.mxu0 %v4304_v0  ;;  %3730 = vmatpush1.bf16.msra.mxu1 %v4459_v26  ;;  %v4027_v26 = vld [vmem:[%s5847_s0 + $0x234] ss:$28 sps:$4 sm:$0xff]  }
  0x71   :  { %1951 = vmatmul.mubr.bf16.gmra.mrb[24].mxu1 %v4004_v7  ;;  %3715 = vmatprep.subr.bf16.mxu1 %v4304_v0  ;;  %v4100_v7 = vld [vmem:[%s5847_s0 + $0x49c] ss:$28 sps:$4 sm:$0xff]  }
  0x72   :  { %2240 = vmatmul.mubr.bf16.gmra.mrb[24].mxu0 %v4005_v9  ;;  %1958 = vmatprep.mubr.bf16.mxu1 %v4007_v10  ;;  %v4104_v9 = vld [vmem:[%s5847_s0 + $0x498] ss:$28 sps:$4 sm:$0xff]   ;;  %v4105_v10 = vld [vmem:[%s5847_s0 + $0x4a0] ss:$28 sps:$4 sm:$0xff]  }
  0x73   :  { %2247 = vmatprep.mubr.bf16.mxu0 %v4009_v11  ;;  %2473 = vmatpush1.bf16.msra.mxu0 %v4086_v12  ;;  %v4107_v11 = vld [vmem:[%s5847_s0 + $0x4d4] ss:$28 sps:$4 sm:$0xff]   ;;  %v4109_v12 = vld [vmem:[%s5847_s0 + $0x4dc] ss:$28 sps:$4 sm:$0xff]  }
  0x74   :  { %2474 = vmatprep.subr.bf16.mxu0 %v4304_v0  ;;  %3731 = vmatpush1.bf16.msra.mxu1 %v4470_v28  ;;  %v4032_v28 = vld [vmem:[%s5847_s0 + $0x238] ss:$28 sps:$4 sm:$0xff]  }
  0x75   :  { %3716 = vmatprep.subr.bf16.mxu1 %v4304_v0 }
  0x77   :  { %2475 = vmatpush1.bf16.msra.mxu0 %v4099_v14  ;;  %v4112_v14 = vld [vmem:[%s5847_s0 + $0x4d8] ss:$28 sps:$4 sm:$0xff]  }
  0x78   :  { %2476 = vmatprep.subr.bf16.mxu0 %v4304_v0  ;;  %3732 = vmatpush1.bf16.msra.mxu1 %v4481_v30  ;;  %v4035_v30 = vld [vmem:[%s5847_s0 + $0x274] ss:$28 sps:$4 sm:$0xff]  }
  0x79   :  { %1959 = vmatmul.mubr.bf16.gmra.mrb[28].mxu1 %v4011_v13  ;;  %3717 = vmatprep.subr.bf16.mxu1 %v4304_v0  ;;  %v4111_v13 = vld [vmem:[%s5847_s0 + $0x4d0] ss:$28 sps:$4 sm:$0xff]  }
  0x7a   :  { %2248 = vmatmul.mubr.bf16.gmra.mrb[28].mxu0 %v4012_v15  ;;  %1966 = vmatprep.mubr.bf16.mxu1 %v4013_v16  ;;  %v4113_v15 = vld [vmem:[%s5847_s0 + $0x50c] ss:$28 sps:$4 sm:$0xff]   ;;  %v4115_v16 = vld [vmem:[%s5847_s0 + $0x514] ss:$28 sps:$4 sm:$0xff]  }
  0x7b   :  { %2255 = vmatprep.mubr.bf16.mxu0 %v4015_v17  ;;  %2477 = vmatpush1.bf16.msra.mxu0 %v4106_v18  ;;  %v4117_v17 = vld [vmem:[%s5847_s0 + $0x508] ss:$28 sps:$4 sm:$0xff]   ;;  %v4118_v18 = vld [vmem:[%s5847_s0 + $0x510] ss:$28 sps:$4 sm:$0xff]  }
  0x7c   :  { %2478 = vmatprep.subr.bf16.mxu0 %v4304_v0  ;;  %3733 = vmatpush1.bf16.msra.mxu1 %v4492_v32  ;;  %v4038_v32 = vld [vmem:[%s5847_s0 + $0x270] ss:$28 sps:$4 sm:$0xff]  }
  0x7d   :  { %3718 = vmatprep.subr.bf16.mxu1 %v4304_v0  ;;  %v4029_v0 = vld [vmem:[%s5847_s0 + $0x23c] ss:$28 sps:$4 sm:$0xff]  }
  0x7f   :  { %2479 = vmatpush1.bf16.msra.mxu0 %v4119_v20  ;;  %v4124_v20 = vld [vmem:[%s5847_s0 + $0x14] ss:$28 sps:$4 sm:$0xff]  }
  0x80   :  { %3734 = vmatpush1.bf16.msra.mxu1 %v4503_v34  ;;  %v4042_v34 = vld [vmem:[%s5847_s0 + $0x2ac] ss:$28 sps:$4 sm:$0xff]  }
  0x81   :  { %1967 = vmatmul.mubr.bf16.gmra.mrb[32].mxu1 %v4017_v19  ;;  %3623 = vmatprep.subr.bf16.mxu1 %v4810_v55  ;;  %v4120_v19 = vld [vmem:[%s5847_s0 + $0x544] ss:$28 sps:$4 sm:$0xff]  }
  0x82   :  { %2256 = vmatmul.mubr.bf16.gmra.mrb[32].mxu0 %v4018_v21  ;;  %1974 = vmatprep.mubr.bf16.mxu1 %v4020_v22  ;;  %v4125_v21 = vld [vmem:[%s5847_s0 + $0x540] ss:$28 sps:$4 sm:$0xff]   ;;  %v4122_v22 = vld [vmem:[%s5847_s0 + $0x10] ss:$28 sps:$4 sm:$0xff]  }
  0x83   :  { %2263 = vmatprep.mubr.bf16.mxu0 %v4022_v23  ;;  %v4126_v23 = vld [vmem:[%s5847_s0 + $0x57c] ss:$28 sps:$4 sm:$0xff]  }
  0x89   :  { %1975 = vmatmul.mubr.bf16.gmra.mrb[36].mxu1 %v4024_v24  ;;  %v4128_v24 = vld [vmem:[%s5847_s0 + $0x4c] ss:$28 sps:$4 sm:$0xff]  }
  0x8a   :  { %2264 = vmatmul.mubr.bf16.gmra.mrb[36].mxu0 %v4025_v25  ;;  %1982 = vmatprep.mubr.bf16.mxu1 %v4027_v26  ;;  %v4130_v25 = vld [vmem:[%s5847_s0 + $0x578] ss:$28 sps:$4 sm:$0xff]   ;;  %v4131_v26 = vld [vmem:[%s5847_s0 + $0x48] ss:$28 sps:$4 sm:$0xff]  }
  0x8b   :  { %2271 = vmatprep.mubr.bf16.mxu0 %v4029_v0  ;;  %v4132_v0 = vld [vmem:[%s5847_s0 + $0x5b4] ss:$28 sps:$4 sm:$0xff]  }
  0x91   :  { %1983 = vmatmul.mubr.bf16.gmra.mrb[40].mxu1 %v4031_v27  ;;  %v4134_v27 = vld [vmem:[%s5847_s0 + $0x84] ss:$28 sps:$4 sm:$0xff]  }
  0x92   :  { %2272 = vmatmul.mubr.bf16.gmra.mrb[40].mxu0 %v4032_v28  ;;  %1990 = vmatprep.mubr.bf16.mxu1 %v4033_v29  ;;  %v4136_v28 = vld [vmem:[%s5847_s0 + $0x5b0] ss:$28 sps:$4 sm:$0xff]   ;;  %v4137_v29 = vld [vmem:[%s5847_s0 + $0x80] ss:$28 sps:$4 sm:$0xff]  }
  0x93   :  { %2279 = vmatprep.mubr.bf16.mxu0 %v4035_v30  ;;  %v4138_v30 = vld [vmem:[%s5847_s0 + $0x5ec] ss:$28 sps:$4 sm:$0xff]  }
  0x99   :  { %1991 = vmatmul.mubr.bf16.gmra.mrb[44].mxu1 %v4037_v31  ;;  %v4140_v31 = vld [vmem:[%s5847_s0 + $0xbc] ss:$28 sps:$4 sm:$0xff]  }
  0x9a   :  { %2280 = vmatmul.mubr.bf16.gmra.mrb[44].mxu0 %v4038_v32  ;;  %1998 = vmatprep.mubr.bf16.mxu1 %v4040_v33 }
  0x9b   :  { %2287 = vmatprep.mubr.bf16.mxu0 %v4042_v34  ;;  %v4142_v34 = vld [vmem:[%s5847_s0 + $0x5e8] ss:$28 sps:$4 sm:$0xff]  }
  0xa1   :  { %1999 = vmatmul.mubr.bf16.gmra.mrb[48].mxu1 %v4044_v35 }
  0xa2   :  { %2288 = vmatmul.mubr.bf16.gmra.mrb[48].mxu0 %v4045_v36  ;;  %2006 = vmatprep.mubr.bf16.mxu1 %v4047_v37  ;;  %v4143_v36 = vld [vmem:[%s5847_s0 + $0xb8] ss:$28 sps:$4 sm:$0xff]   ;;  %v4144_v37 = vld [vmem:[%s5847_s0 + $0x624] ss:$28 sps:$4 sm:$0xff]  }
  0xa3   :  { %2295 = vmatprep.mubr.bf16.mxu0 %v4049_v38 }
  0xa9   :  { %2007 = vmatmul.mubr.bf16.gmra.mrb[52].mxu1 %v4051_v39  ;;  %v4146_v39 = vld [vmem:[%s5847_s0 + $0xf4] ss:$28 sps:$4 sm:$0xff]  }
  0xaa   :  { %2296 = vmatmul.mubr.bf16.gmra.mrb[52].mxu0 %v4052_v40  ;;  %2014 = vmatprep.mubr.bf16.mxu1 %v4053_v41 }
  0xab   :  { %2303 = vmatprep.mubr.bf16.mxu0 %v4055_v42  ;;  %v4148_v42 = vld [vmem:[%s5847_s0 + $0x620] ss:$28 sps:$4 sm:$0xff]  }
  0xb1   :  { %2015 = vmatmul.mubr.bf16.gmra.mrb[56].mxu1 %v4057_v43 }
  0xb2   :  { %2304 = vmatmul.mubr.bf16.gmra.mrb[56].mxu0 %v4058_v44  ;;  %2022 = vmatprep.mubr.bf16.mxu1 %v4060_v45  ;;  %v4149_v44 = vld [vmem:[%s5847_s0 + $0xf0] ss:$28 sps:$4 sm:$0xff]   ;;  %v4150_v45 = vld [vmem:[%s5847_s0 + $0x65c] ss:$28 sps:$4 sm:$0xff]  }
  0xb3   :  { %2311 = vmatprep.mubr.bf16.mxu0 %v4062_v46 }
  0xb9   :  { %2023 = vmatmul.mubr.bf16.gmra.mrb[60].mxu1 %v4064_v47  ;;  %v4152_v47 = vld [vmem:[%s5847_s0 + $0x12c] ss:$28 sps:$4 sm:$0xff]  }
  0xba   :  { %2312 = vmatmul.mubr.bf16.gmra.mrb[60].mxu0 %v4065_v48  ;;  %2030 = vmatprep.mubr.bf16.mxu1 %v4067_v49 }
  0xbb   :  { %2319 = vmatprep.mubr.bf16.mxu0 %v4069_v50  ;;  %v4154_v50 = vld [vmem:[%s5847_s0 + $0x658] ss:$28 sps:$4 sm:$0xff]  }
  0xc1   :  { %2031 = vmatmul.mubr.bf16.gmra.mrb[64].mxu1 %v4071_v51 }
  0xc2   :  { %2320 = vmatmul.mubr.bf16.gmra.mrb[64].mxu0 %v4072_v52  ;;  %2038 = vmatprep.mubr.bf16.mxu1 %v4073_v53  ;;  %v4155_v52 = vld [vmem:[%s5847_s0 + $0x128] ss:$28 sps:$4 sm:$0xff]   ;;  %v4156_v53 = vld [vmem:[%s5847_s0 + $0x694] ss:$28 sps:$4 sm:$0xff]  }
  0xc3   :  { %2327 = vmatprep.mubr.bf16.mxu0 %v4075_v54 }
  0xc9   :  { %2039 = vmatmul.mubr.bf16.gmra.mrb[68].mxu1 %v4077_v56  ;;  %v4158_v56 = vld [vmem:[%s5847_s0 + $0x164] ss:$28 sps:$4 sm:$0xff]  }
  0xca   :  { %2328 = vmatmul.mubr.bf16.gmra.mrb[68].mxu0 %v4078_v57  ;;  %2046 = vmatprep.mubr.bf16.mxu1 %v4080_v58 }
  0xcb   :  { %2335 = vmatprep.mubr.bf16.mxu0 %v4082_v59  ;;  %v4160_v59 = vld [vmem:[%s5847_s0 + $0x690] ss:$28 sps:$4 sm:$0xff]  }
  0xd1   :  { %2047 = vmatmul.mubr.bf16.gmra.mrb[72].mxu1 %v4084_v60 }
  0xd2   :  { %2336 = vmatmul.mubr.bf16.gmra.mrb[72].mxu0 %v4085_v61  ;;  %2054 = vmatprep.mubr.bf16.mxu1 %v4087_v62  ;;  %v4161_v61 = vld [vmem:[%s5847_s0 + $0x160] ss:$28 sps:$4 sm:$0xff]   ;;  %v4162_v62 = vld [vmem:[%s5847_s0 + $0x6cc] ss:$28 sps:$4 sm:$0xff]  }
  0xd3   :  { %2343 = vmatprep.mubr.bf16.mxu0 %v4089_v63 }
  0xd9   :  { %2055 = vmatmul.mubr.bf16.gmra.mrb[76].mxu1 %v4091_v1  ;;  %v4164_v1 = vld [vmem:[%s5847_s0 + $0x19c] ss:$28 sps:$4 sm:$0xff]  }
  0xda   :  { %2344 = vmatmul.mubr.bf16.gmra.mrb[76].mxu0 %v4092_v2  ;;  %2062 = vmatprep.mubr.bf16.mxu1 %v4093_v3 }
  0xdb   :  { %2351 = vmatprep.mubr.bf16.mxu0 %v4095_v4  ;;  %v4166_v4 = vld [vmem:[%s5847_s0 + $0x6c8] ss:$28 sps:$4 sm:$0xff]  }
  0xe1   :  { %2063 = vmatmul.mubr.bf16.gmra.mrb[80].mxu1 %v4097_v5 }
  0xe2   :  { %2352 = vmatmul.mubr.bf16.gmra.mrb[80].mxu0 %v4098_v6  ;;  %2070 = vmatprep.mubr.bf16.mxu1 %v4100_v7  ;;  %v4167_v6 = vld [vmem:[%s5847_s0 + $0x198] ss:$28 sps:$4 sm:$0xff]   ;;  %v4170_v7 = vld [vmem:[%s5847_s0 + $0x54c] ss:$28 sps:$4 sm:$0xff]  }
  0xe3   :  { %2359 = vmatprep.mubr.bf16.mxu0 %v4102_v8 }
  0xe9   :  { %2071 = vmatmul.mubr.bf16.gmra.mrb[84].mxu1 %v4104_v9  ;;  %v4171_v9 = vld [vmem:[%s5847_s0 + $0x1d4] ss:$28 sps:$4 sm:$0xff]  }
  0xea   :  { %2360 = vmatmul.mubr.bf16.gmra.mrb[84].mxu0 %v4105_v10  ;;  %2078 = vmatprep.mubr.bf16.mxu1 %v4107_v11 }
  0xeb   :  { %2367 = vmatprep.mubr.bf16.mxu0 %v4109_v12  ;;  %v4168_v12 = vld [vmem:[%s5847_s0 + $0x548] ss:$28 sps:$4 sm:$0xff]  }
  0xf1   :  { %2079 = vmatmul.mubr.bf16.gmra.mrb[88].mxu1 %v4111_v13 }
  0xf2   :  { %2368 = vmatmul.mubr.bf16.gmra.mrb[88].mxu0 %v4112_v14  ;;  %2086 = vmatprep.mubr.bf16.mxu1 %v4113_v15  ;;  %v4173_v14 = vld [vmem:[%s5847_s0 + $0x1d0] ss:$28 sps:$4 sm:$0xff]  }
  0xf3   :  { %2375 = vmatprep.mubr.bf16.mxu0 %v4115_v16  ;;  %v4175_v16 = vld [vmem:[%s5847_s0 + $0x584] ss:$28 sps:$4 sm:$0xff]  }
  0xf9   :  { %2087 = vmatmul.mubr.bf16.gmra.mrb[92].mxu1 %v4117_v17  ;;  %v4177_v17 = vld [vmem:[%s5847_s0 + $0x20c] ss:$28 sps:$4 sm:$0xff]  }
  0xfa   :  { %2376 = vmatmul.mubr.bf16.gmra.mrb[92].mxu0 %v4118_v18  ;;  %2094 = vmatprep.mubr.bf16.mxu1 %v4120_v19  ;;  %v4181_v18 = vld [vmem:[%s5846_s1 + $0x188] sm:$0xff]   ;;  %v4188_v19 = vld [vmem:[%s5846_s1 + $0x190] sm:$0xff]  }
  0xfb   :  { %2480 = vmatprep.mubr.bf16.mxu0 %v4124_v20 }
 0x101   :  { %2095 = vmatmul.mubr.bf16.gmra.mrb[96].mxu1 %v4125_v21 }
 0x102   :  { %2481 = vmatmul.mubr.bf16.vlgmr.msra.gmra.mrb[0].mxu0 %v4122_v22  ;;  %2102 = vmatprep.mubr.bf16.mxu1 %v4126_v23  ;;  %v4179_v22 = vld [vmem:[%s5847_s0 + $0x580] ss:$28 sps:$4 sm:$0xff]  }
 0x103   :  { %2488 = vmatprep.mubr.bf16.mxu0 %v4128_v24  ;;  %v4182_v24 = vld [vmem:[%s5847_s0 + $0x5bc] ss:$28 sps:$4 sm:$0xff]  }
 0x109   :  { %2103 = vmatmul.mubr.bf16.gmra.mrb[100].mxu1 %v4130_v25 }
 0x10a   :  { %2489 = vmatmul.mubr.bf16.gmra.mrb[4].mxu0 %v4131_v26  ;;  %2110 = vmatprep.mubr.bf16.mxu1 %v4132_v0  ;;  %v4184_v26 = vld [vmem:[%s5847_s0 + $0x244] ss:$28 sps:$4 sm:$0xff]   ;;  %v4195_v0 = vld [vmem:[%s5846_s1 + $0x198] sm:$0xff]  }
 0x10b   :  { %2496 = vmatprep.mubr.bf16.mxu0 %v4134_v27 }
 0x111   :  { %2111 = vmatmul.mubr.bf16.gmra.mrb[104].mxu1 %v4136_v28  ;;  %v4202_v28 = vld [vmem:[%s5846_s1 + $0x1a0] sm:$0xff]  }
 0x112   :  { %2497 = vmatmul.mubr.bf16.gmra.mrb[8].mxu0 %v4137_v29  ;;  %2118 = vmatprep.mubr.bf16.mxu1 %v4138_v30  ;;  %v4186_v30 = vld [vmem:[%s5847_s0 + $0x5b8] ss:$28 sps:$4 sm:$0xff]  }
 0x113   :  { %2504 = vmatprep.mubr.bf16.mxu0 %v4140_v31 }
 0x114   :  { %v4933_v32 = vpop.f32.mrb[0].mxu1 }
 0x115   :  { %v1906_v33 = vpop.f32.mrb[1].mxu1 }
 0x116   :  { %v4938_v35 = vpop.f32.mrb[2].mxu1  ;;  %v4187_v33 = vld [vmem:[%s5847_s0 + $0x240] ss:$28 sps:$4 sm:$0xff]  }
 0x117   :  { %v1909_v38 = vpop.f32.mrb[3].mxu1 }
 0x118   :  { %v4209_v38 = vld [vmem:[%s5846_s1 + $0x1a8] sm:$0xff]  }
 0x119   :  { %2119 = vmatmul.mubr.bf16.gmra.mrb[108].mxu1 %v4142_v34  ;;  %v4189_v34 = vld [vmem:[%s5847_s0 + $0x5f4] ss:$28 sps:$4 sm:$0xff]  }
 0x11a   :  { %2505 = vmatmul.mubr.bf16.gmra.mrb[12].mxu0 %v4143_v36  ;;  %2126 = vmatprep.mubr.bf16.mxu1 %v4144_v37  ;;  %v4191_v37 = vld [vmem:[%s5847_s0 + $0x27c] ss:$28 sps:$4 sm:$0xff]  }
 0x11b   :  { %2512 = vmatprep.mubr.bf16.mxu0 %v4146_v39 }
 0x11c   :  { %v4949_v40 = vpop.f32.mrb[4].mxu1 }
 0x11d   :  { %v1914_v41 = vpop.f32.mrb[5].mxu1 }
 0x11e   :  { %v4954_v43 = vpop.f32.mrb[6].mxu1  ;;  %v4216_v41 = vld [vmem:[%s5846_s1 + $0x1b0] sm:$0xff]  }
 0x11f   :  { %v1917_v46 = vpop.f32.mrb[7].mxu1 }
 0x120   :  { %v4194_v46 = vld [vmem:[%s5847_s0 + $0x278] ss:$28 sps:$4 sm:$0xff]  }
 0x121   :  { %2127 = vmatmul.mubr.bf16.gmra.mrb[112].mxu1 %v4148_v42 }
 0x122   :  { %2513 = vmatmul.mubr.bf16.gmra.mrb[16].mxu0 %v4149_v44  ;;  %2134 = vmatprep.mubr.bf16.mxu1 %v4150_v45  ;;  %v4193_v44 = vld [vmem:[%s5847_s0 + $0x5f0] ss:$28 sps:$4 sm:$0xff]  }
 0x123   :  { %2520 = vmatprep.mubr.bf16.mxu0 %v4152_v47  ;;  %v4196_v47 = vld [vmem:[%s5847_s0 + $0x62c] ss:$28 sps:$4 sm:$0xff]  }
 0x124   :  { %v4965_v48 = vpop.f32.mrb[8].mxu1 }
 0x125   :  { %v1922_v49 = vpop.f32.mrb[9].mxu1 }
 0x126   :  { %v4970_v51 = vpop.f32.mrb[10].mxu1 }
 0x127   :  { %v1925_v54 = vpop.f32.mrb[11].mxu1 }
 0x129   :  { %2135 = vmatmul.mubr.bf16.gmra.mrb[116].mxu1 %v4154_v50  ;;  %v4198_v50 = vld [vmem:[%s5847_s0 + $0x2b4] ss:$28 sps:$4 sm:$0xff]  }
 0x12a   :  { %2521 = vmatmul.mubr.bf16.gmra.mrb[20].mxu0 %v4155_v52  ;;  %2142 = vmatprep.mubr.bf16.mxu1 %v4156_v53  ;;  %v4223_v52 = vld [vmem:[%s5846_s1 + $0x1b8] sm:$0xff]  }
 0x12b   :  { %2528 = vmatprep.mubr.bf16.mxu0 %v4158_v56  ;;  %v4200_v56 = vld [vmem:[%s5847_s0 + $0x628] ss:$28 sps:$4 sm:$0xff]  }
 0x12c   :  { %v4981_v57 = vpop.f32.mrb[12].mxu1 }
 0x12d   :  { %v1930_v58 = vpop.f32.mrb[13].mxu1 }
 0x12e   :  { %v4986_v60 = vpop.f32.mrb[14].mxu1 }
 0x12f   :  { %v1933_v63 = vpop.f32.mrb[15].mxu1 }
 0x130   :  { %v4205_v63 = vld [vmem:[%s5847_s0 + $0x2ec] ss:$28 sps:$4 sm:$0xff]  }
 0x131   :  { %2143 = vmatmul.mubr.bf16.gmra.mrb[120].mxu1 %v4160_v59  ;;  %v4201_v59 = vld [vmem:[%s5847_s0 + $0x2b0] ss:$28 sps:$4 sm:$0xff]  }
 0x132   :  { %2529 = vmatmul.mubr.bf16.gmra.mrb[24].mxu0 %v4161_v61  ;;  %2150 = vmatprep.mubr.bf16.mxu1 %v4162_v62  ;;  %v4203_v61 = vld [vmem:[%s5847_s0 + $0x664] ss:$28 sps:$4 sm:$0xff]  }
 0x133   :  { %2536 = vmatprep.mubr.bf16.mxu0 %v4164_v1 }
 0x134   :  { %v4997_v2 = vpop.f32.mrb[16].mxu1 }
 0x135   :  { %v1938_v3 = vpop.f32.mrb[17].mxu1 }
 0x136   :  { %v5002_v5 = vpop.f32.mrb[18].mxu1 }
 0x137   :  { %v1941_v8 = vpop.f32.mrb[19].mxu1 }
 0x138   :  { %v4210_v8 = vld [vmem:[%s5847_s0 + $0x69c] ss:$28 sps:$4 sm:$0xff]  }
 0x139   :  { %2151 = vmatmul.mubr.bf16.gmra.mrb[124].mxu1 %v4166_v4  ;;  %v4207_v4 = vld [vmem:[%s5847_s0 + $0x660] ss:$28 sps:$4 sm:$0xff]  }
 0x13a   :  { %2537 = vmatmul.mubr.bf16.gmra.mrb[28].mxu0 %v4167_v6  ;;  %2383 = vmatprep.mubr.bf16.mxu1 %v4170_v7  ;;  %v4208_v7 = vld [vmem:[%s5847_s0 + $0x2e8] ss:$28 sps:$4 sm:$0xff]  }
 0x13b   :  { %2544 = vmatprep.mubr.bf16.mxu0 %v4171_v9 }
 0x13c   :  { %v5013_v10 = vpop.f32.mrb[20].mxu1 }
 0x13d   :  { %v1946_v11 = vpop.f32.mrb[21].mxu1 }
 0x13e   :  { %v5018_v13 = vpop.f32.mrb[22].mxu1  ;;  %v4212_v11 = vld [vmem:[%s5847_s0 + $0x324] ss:$28 sps:$4 sm:$0xff]  }
 0x13f   :  { %v1949_v15 = vpop.f32.mrb[23].mxu1 }
 0x140   :  { %v4214_v15 = vld [vmem:[%s5847_s0 + $0x698] ss:$28 sps:$4 sm:$0xff]  }
 0x141   :  { %2384 = vmatmul.mubr.bf16.vlgmr.msra.gmra.mrb[96].mxu1 %v4168_v12 }
 0x142   :  { %2545 = vmatmul.mubr.bf16.gmra.mrb[32].mxu0 %v4173_v14  ;;  %3624 = vmatpush3.bf16.msra.mxu1 %v4810_v55  ;;  %v4180_v55 = vld [vmem:[%s5847_s0 + $0x208] ss:$28 sps:$4 sm:$0xff]  }
 0x143   :  { %2391 = vmatprep.mubr.bf16.mxu1 %v4175_v16  ;;  %2552 = vmatprep.mubr.bf16.mxu0 %v4177_v17  ;;  %v4215_v17 = vld [vmem:[%s5847_s0 + $0x320] ss:$28 sps:$4 sm:$0xff]  }
 0x144   :  { %v5036_v20 = vpop.f32.mrb[24].mxu1  ;;  %3625 = vmatprep.subr.bf16.mxu1 %v4181_v18 }
 0x145   :  { %v1954_v21 = vpop.f32.mrb[25].mxu1 }
 0x146   :  { %v5041_v23 = vpop.f32.mrb[26].mxu1  ;;  %3626 = vmatpush3.bf16.msra.mxu1 %v4181_v18  ;;  %v4217_v18 = vld [vmem:[%s5847_s0 + $0x6d4] ss:$28 sps:$4 sm:$0xff]   ;;  %v4219_v21 = vld [vmem:[%s5847_s0 + $0x35c] ss:$28 sps:$4 sm:$0xff]  }
 0x147   :  { %v1957_v25 = vpop.f32.mrb[27].mxu1  ;;  %3627 = vmatprep.subr.bf16.mxu1 %v4188_v19 }
 0x149   :  { %2392 = vmatmul.mubr.bf16.gmra.mrb[100].mxu1 %v4179_v22 }
 0x14a   :  { %2553 = vmatmul.mubr.bf16.gmra.mrb[36].mxu0 %v4180_v55  ;;  %2399 = vmatprep.mubr.bf16.mxu1 %v4182_v24  ;;  %v4221_v24 = vld [vmem:[%s5847_s0 + $0x6d0] ss:$28 sps:$4 sm:$0xff]  }
 0x14b   :  { %2560 = vmatprep.mubr.bf16.mxu0 %v4184_v26  ;;  %3628 = vmatpush3.bf16.msra.mxu1 %v4188_v19  ;;  %v4222_v26 = vld [vmem:[%s5847_s0 + $0x358] ss:$28 sps:$4 sm:$0xff]  }
 0x14c   :  { %v5055_v27 = vpop.f32.mrb[28].mxu1  ;;  %3629 = vmatprep.subr.bf16.mxu1 %v4195_v0 }
 0x14d   :  { %v1962_v29 = vpop.f32.mrb[29].mxu1 }
 0x14e   :  { %v5063_v31 = vpop.f32.mrb[30].mxu1  ;;  %v4224_v29 = vld [vmem:[%s5847_s0 + $0x394] ss:$28 sps:$4 sm:$0xff]  }
 0x14f   :  { %v1965_v36 = vpop.f32.mrb[31].mxu1  ;;  %3630 = vmatpush3.bf16.msra.mxu1 %v4195_v0  ;;  %v4226_v0 = vld [vmem:[%s5847_s0 + $0x18] ss:$28 sps:$4 sm:$0xff]  }
 0x150   :  { %3631 = vmatprep.subr.bf16.mxu1 %v4202_v28 }
 0x151   :  { %2400 = vmatmul.mubr.bf16.gmra.mrb[104].mxu1 %v4186_v30 }
 0x152   :  { %2561 = vmatmul.mubr.bf16.gmra.mrb[40].mxu0 %v4187_v33  ;;  %2407 = vmatprep.mubr.bf16.mxu1 %v4189_v34  ;;  %v4228_v34 = vld [vmem:[%s5847_s0 + $0x50] ss:$28 sps:$4 sm:$0xff]  }
 0x153   :  { %2568 = vmatprep.mubr.bf16.mxu0 %v4191_v37  ;;  %3632 = vmatpush3.bf16.msra.mxu1 %v4202_v28  ;;  %v4227_v37 = vld [vmem:[%s5847_s0 + $0x390] ss:$28 sps:$4 sm:$0xff]  }
 0x154   :  { %v5077_v39 = vpop.f32.mrb[32].mxu1  ;;  %3633 = vmatprep.subr.bf16.mxu1 %v4209_v38 }
 0x155   :  { %v1970_v42 = vpop.f32.mrb[33].mxu1 }
 0x156   :  { %v5085_v45 = vpop.f32.mrb[34].mxu1  ;;  %v4229_v42 = vld [vmem:[%s5847_s0 + $0x3cc] ss:$28 sps:$4 sm:$0xff]  }
 0x157   :  { %v1973_v49 = vpop.f32.mrb[35].mxu1  ;;  %3634 = vmatpush3.bf16.msra.mxu1 %v4209_v38  ;;  %v4231_v38 = vld [vmem:[%s5847_s0 + $0x88] ss:$28 sps:$4 sm:$0xff]  }
 0x158   :  { %3635 = vmatprep.subr.bf16.mxu1 %v4216_v41 }
 0x159   :  { %2408 = vmatmul.mubr.bf16.gmra.mrb[108].mxu1 %v4193_v44 }
 0x15a   :  { %2569 = vmatmul.mubr.bf16.gmra.mrb[44].mxu0 %v4194_v46  ;;  %2415 = vmatprep.mubr.bf16.mxu1 %v4196_v47  ;;  %v4233_v47 = vld [vmem:[%s5847_s0 + $0xc0] ss:$28 sps:$4 sm:$0xff]  }
 0x15b   :  { %2576 = vmatprep.mubr.bf16.mxu0 %v4198_v50  ;;  %3636 = vmatpush3.bf16.msra.mxu1 %v4216_v41  ;;  %v4232_v50 = vld [vmem:[%s5847_s0 + $0x3c8] ss:$28 sps:$4 sm:$0xff]  }
 0x15c   :  { %v5099_v53 = vpop.f32.mrb[36].mxu1  ;;  %3637 = vmatprep.subr.bf16.mxu1 %v4223_v52 }
 0x15d   :  { %v1978_v54 = vpop.f32.mrb[37].mxu1 }
 0x15e   :  { %v5104_v58 = vpop.f32.mrb[38].mxu1 }
 0x15f   :  { %v1981_v62 = vpop.f32.mrb[39].mxu1  ;;  %3638 = vmatpush3.bf16.msra.mxu1 %v4223_v52  ;;  %v4236_v52 = vld [vmem:[%s5847_s0 + $0xf8] ss:$28 sps:$4 sm:$0xff]  }
 0x160   :  { %v4238_v62 = vld [vmem:[%s5847_s0 + $0x130] ss:$28 sps:$4 sm:$0xff]  }
 0x161   :  { %2416 = vmatmul.mubr.bf16.gmra.mrb[112].mxu1 %v4200_v56  ;;  %v4234_v56 = vld [vmem:[%s5847_s0 + $0x404] ss:$28 sps:$4 sm:$0xff]  }
 0x162   :  { %2577 = vmatmul.mubr.bf16.gmra.mrb[48].mxu0 %v4201_v59  ;;  %2423 = vmatprep.mubr.bf16.mxu1 %v4203_v61 }
 0x163   :  { %2584 = vmatprep.mubr.bf16.mxu0 %v4205_v63 }
 0x164   :  { %v5115_v1 = vpop.f32.mrb[40].mxu1 }
 0x165   :  { %v1986_v3 = vpop.f32.mrb[41].mxu1 }
 0x166   :  { %v5120_v6 = vpop.f32.mrb[42].mxu1  ;;  %v4237_v3 = vld [vmem:[%s5847_s0 + $0x400] ss:$28 sps:$4 sm:$0xff]  }
 0x167   :  { %v1989_v9 = vpop.f32.mrb[43].mxu1 }
 0x169   :  { %2424 = vmatmul.mubr.bf16.gmra.mrb[116].mxu1 %v4207_v4  ;;  %v4241_v4 = vld [vmem:[%s5847_s0 + $0x168] ss:$28 sps:$4 sm:$0xff]  }
 0x16a   :  { %2585 = vmatmul.mubr.bf16.gmra.mrb[52].mxu0 %v4208_v7  ;;  %2431 = vmatprep.mubr.bf16.mxu1 %v4210_v8  ;;  %v4239_v8 = vld [vmem:[%s5847_s0 + $0x43c] ss:$28 sps:$4 sm:$0xff]  }
 0x16b   :  { %2592 = vmatprep.mubr.bf16.mxu0 %v4212_v11 }
 0x16c   :  { %v5131_v12 = vpop.f32.mrb[44].mxu1 }
 0x16d   :  { %v1994_v14 = vpop.f32.mrb[45].mxu1 }
 0x16e   :  { %v5136_v16 = vpop.f32.mrb[46].mxu1  ;;  %v4243_v14 = vld [vmem:[%s5847_s0 + $0x1a0] ss:$28 sps:$4 sm:$0xff]  }
 0x16f   :  { %v1997_v19 = vpop.f32.mrb[47].mxu1 }
 0x171   :  { %2432 = vmatmul.mubr.bf16.gmra.mrb[120].mxu1 %v4214_v15 }
 0x172   :  { %2593 = vmatmul.mubr.bf16.gmra.mrb[56].mxu0 %v4215_v17  ;;  %2439 = vmatprep.mubr.bf16.mxu1 %v4217_v18  ;;  %v4242_v17 = vld [vmem:[%s5847_s0 + $0x438] ss:$28 sps:$4 sm:$0xff]  }
 0x173   :  { %2600 = vmatprep.mubr.bf16.mxu0 %v4219_v21  ;;  %v4246_v18 = vld [vmem:[%s5847_s0 + $0x1d8] ss:$28 sps:$4 sm:$0xff]  }
 0x174   :  { %v5147_v22 = vpop.f32.mrb[48].mxu1  ;;  %v4244_v21 = vld [vmem:[%s5847_s0 + $0x474] ss:$28 sps:$4 sm:$0xff]  }
 0x175   :  { %v2002_v55 = vpop.f32.mrb[49].mxu1 }
 0x176   :  { %v5152_v25 = vpop.f32.mrb[50].mxu1 }
 0x177   :  { %v2005_v28 = vpop.f32.mrb[51].mxu1 }
 0x178   :  { %v4247_v28 = vld [vmem:[%s5847_s0 + $0x470] ss:$28 sps:$4 sm:$0xff]  }
 0x179   :  { %2440 = vmatmul.mubr.bf16.gmra.mrb[124].mxu1 %v4221_v24 }
 0x17a   :  { %2601 = vmatmul.mubr.bf16.gmra.mrb[60].mxu0 %v4222_v26  ;;  %3639 = vmatprep.mubr.bf16.mxu1 %v4226_v0  ;;  %v4248_v26 = vld [vmem:[%s5847_s0 + $0x210] ss:$28 sps:$4 sm:$0xff]  }
 0x17b   :  { %2608 = vmatprep.mubr.bf16.mxu0 %v4224_v29  ;;  %v4251_v29 = vld [vmem:[%s5847_s0 + $0x248] ss:$28 sps:$4 sm:$0xff]  }
 0x17c   :  { %v5163_v30 = vpop.f32.mrb[52].mxu1 }
 0x17d   :  { %v2010_v33 = vpop.f32.mrb[53].mxu1 }
 0x17e   :  { %v5168_v36 = vpop.f32.mrb[54].mxu1 }
 0x17f   :  { %v2013_v41 = vpop.f32.mrb[55].mxu1 }
 0x180   :  { %v4253_v41 = vld [vmem:[%s5847_s0 + $0x280] ss:$28 sps:$4 sm:$0xff]  }
 0x181   :  { %3640 = vmatmul.mubr.bf16.vlgmr.msra.gmra.mrb[128].mxu1 %v4228_v34  ;;  %v4249_v34 = vld [vmem:[%s5847_s0 + $0x4ac] ss:$28 sps:$4 sm:$0xff]  }
 0x182   :  { %2609 = vmatmul.mubr.bf16.gmra.mrb[64].mxu0 %v4227_v37  ;;  %3643 = vmatprep.mubr.bf16.mxu1 %v4231_v38 }
 0x183   :  { %2616 = vmatprep.mubr.bf16.mxu0 %v4229_v42 }
 0x184   :  { %v5179_v44 = vpop.f32.mrb[56].mxu1 }
 0x185   :  { %v2018_v46 = vpop.f32.mrb[57].mxu1 }
 0x186   :  { %v5184_v49 = vpop.f32.mrb[58].mxu1  ;;  %v4252_v46 = vld [vmem:[%s5847_s0 + $0x4a8] ss:$28 sps:$4 sm:$0xff]  }
 0x187   :  { %v2021_v54 = vpop.f32.mrb[59].mxu1 }
 0x189   :  { %3644 = vmatmul.mubr.bf16.gmra.mrb[132].mxu1 %v4233_v47  ;;  %v4256_v47 = vld [vmem:[%s5847_s0 + $0x2b8] ss:$28 sps:$4 sm:$0xff]  }
 0x18a   :  { %2617 = vmatmul.mubr.bf16.gmra.mrb[68].mxu0 %v4232_v50  ;;  %3647 = vmatprep.mubr.bf16.mxu1 %v4236_v52  ;;  %v4254_v52 = vld [vmem:[%s5847_s0 + $0x4e4] ss:$28 sps:$4 sm:$0xff]  }
 0x18b   :  { %2624 = vmatprep.mubr.bf16.mxu0 %v4234_v56 }
 0x18c   :  { %v5195_v59 = vpop.f32.mrb[60].mxu1 }
 0x18d   :  { %v2026_v61 = vpop.f32.mrb[61].mxu1 }
 0x18e   :  { %v5200_v63 = vpop.f32.mrb[62].mxu1  ;;  %v4258_v61 = vld [vmem:[%s5847_s0 + $0x2f0] ss:$28 sps:$4 sm:$0xff]  }
 0x18f   :  { %v2029_v7 = vpop.f32.mrb[63].mxu1 }
 0x191   :  { %3648 = vmatmul.mubr.bf16.gmra.mrb[136].mxu1 %v4238_v62 }
 0x192   :  { %2625 = vmatmul.mubr.bf16.gmra.mrb[72].mxu0 %v4237_v3  ;;  %3651 = vmatprep.mubr.bf16.mxu1 %v4241_v4  ;;  %v4257_v3 = vld [vmem:[%s5847_s0 + $0x4e0] ss:$28 sps:$4 sm:$0xff]   ;;  %v4261_v4 = vld [vmem:[%s5847_s0 + $0x328] ss:$28 sps:$4 sm:$0xff]  }
 0x193   :  { %2632 = vmatprep.mubr.bf16.mxu0 %v4239_v8  ;;  %v4259_v8 = vld [vmem:[%s5847_s0 + $0x51c] ss:$28 sps:$4 sm:$0xff]  }
 0x194   :  { %v5211_v9 = vpop.f32.mrb[64].mxu1 }
 0x195   :  { %v2034_v11 = vpop.f32.mrb[65].mxu1 }
 0x196   :  { %v5216_v15 = vpop.f32.mrb[66].mxu1 }
 0x197   :  { %v2037_v19 = vpop.f32.mrb[67].mxu1 }
 0x198   :  { %v4262_v19 = vld [vmem:[%s5847_s0 + $0x518] ss:$28 sps:$4 sm:$0xff]  }
 0x199   :  { %3652 = vmatmul.mubr.bf16.gmra.mrb[140].mxu1 %v4243_v14 }
 0x19a   :  { %2633 = vmatmul.mubr.bf16.gmra.mrb[76].mxu0 %v4242_v17  ;;  %3655 = vmatprep.mubr.bf16.mxu1 %v4246_v18  ;;  %v4263_v17 = vld [vmem:[%s5847_s0 + $0x360] ss:$28 sps:$4 sm:$0xff]  }
 0x19b   :  { %2640 = vmatprep.mubr.bf16.mxu0 %v4244_v21  ;;  %v4266_v21 = vld [vmem:[%s5847_s0 + $0x398] ss:$28 sps:$4 sm:$0xff]  }
 0x19c   :  { %v5227_v55 = vpop.f32.mrb[68].mxu1 }
 0x19d   :  { %v2042_v24 = vpop.f32.mrb[69].mxu1 }
 0x19e   :  { %v5232_v0 = vpop.f32.mrb[70].mxu1 }
 0x19f   :  { %v2045_v33 = vpop.f32.mrb[71].mxu1 }
 0x1a0   :  { %v4268_v33 = vld [vmem:[%s5847_s0 + $0x3d0] ss:$28 sps:$4 sm:$0xff]  }
 0x1a1   :  { %3656 = vmatmul.mubr.bf16.gmra.mrb[144].mxu1 %v4248_v26  ;;  %v4264_v26 = vld [vmem:[%s5847_s0 + $0x554] ss:$28 sps:$4 sm:$0xff]  }
 0x1a2   :  { %2641 = vmatmul.mubr.bf16.gmra.mrb[80].mxu0 %v4247_v28  ;;  %3659 = vmatprep.mubr.bf16.mxu1 %v4251_v29 }
 0x1a3   :  { %2648 = vmatprep.mubr.bf16.mxu0 %v4249_v34 }
 0x1a4   :  { %v5243_v37 = vpop.f32.mrb[72].mxu1 }
 0x1a5   :  { %v2050_v38 = vpop.f32.mrb[73].mxu1 }
 0x1a6   :  { %v5248_v42 = vpop.f32.mrb[74].mxu1  ;;  %v4267_v38 = vld [vmem:[%s5847_s0 + $0x550] ss:$28 sps:$4 sm:$0xff]  }
 0x1a7   :  { %v2053_v50 = vpop.f32.mrb[75].mxu1 }
 0x1a9   :  { %3660 = vmatmul.mubr.bf16.gmra.mrb[148].mxu1 %v4253_v41  ;;  %v4271_v41 = vld [vmem:[%s5847_s0 + $0x408] ss:$28 sps:$4 sm:$0xff]  }
 0x1aa   :  { %2649 = vmatmul.mubr.bf16.gmra.mrb[84].mxu0 %v4252_v46  ;;  %3663 = vmatprep.mubr.bf16.mxu1 %v4256_v47  ;;  %v4269_v47 = vld [vmem:[%s5847_s0 + $0x58c] ss:$28 sps:$4 sm:$0xff]  }
 0x1ab   :  { %2656 = vmatprep.mubr.bf16.mxu0 %v4254_v52 }
 0x1ac   :  { %v5259_v54 = vpop.f32.mrb[76].mxu1 }
 0x1ad   :  { %v2058_v56 = vpop.f32.mrb[77].mxu1 }
 0x1ae   :  { %v5264_v62 = vpop.f32.mrb[78].mxu1  ;;  %v4273_v56 = vld [vmem:[%s5847_s0 + $0x440] ss:$28 sps:$4 sm:$0xff]  }
 0x1af   :  { %v2061_v7 = vpop.f32.mrb[79].mxu1 }
 0x1b1   :  { %3664 = vmatmul.mubr.bf16.gmra.mrb[152].mxu1 %v4258_v61 }
 0x1b2   :  { %2657 = vmatmul.mubr.bf16.gmra.mrb[88].mxu0 %v4257_v3  ;;  %3667 = vmatprep.mubr.bf16.mxu1 %v4261_v4  ;;  %v4272_v3 = vld [vmem:[%s5847_s0 + $0x588] ss:$28 sps:$4 sm:$0xff]   ;;  %v4276_v4 = vld [vmem:[%s5847_s0 + $0x478] ss:$28 sps:$4 sm:$0xff]  }
 0x1b3   :  { %2664 = vmatprep.mubr.bf16.mxu0 %v4259_v8  ;;  %v4274_v8 = vld [vmem:[%s5847_s0 + $0x5c4] ss:$28 sps:$4 sm:$0xff]  }
 0x1b4   :  { %v5275_v11 = vpop.f32.mrb[80].mxu1 }
 0x1b5   :  { %v2066_v14 = vpop.f32.mrb[81].mxu1 }
 0x1b6   :  { %v5280_v18 = vpop.f32.mrb[82].mxu1 }
 0x1b7   :  { %v2069_v24 = vpop.f32.mrb[83].mxu1 }
 0x1b8   :  { %v4277_v24 = vld [vmem:[%s5847_s0 + $0x5c0] ss:$28 sps:$4 sm:$0xff]  }
 0x1b9   :  { %3668 = vmatmul.mubr.bf16.gmra.mrb[156].mxu1 %v4263_v17 }
 0x1ba   :  { %2665 = vmatmul.mubr.bf16.gmra.mrb[92].mxu0 %v4262_v19  ;;  %3671 = vmatprep.mubr.bf16.mxu1 %v4266_v21  ;;  %v4278_v19 = vld [vmem:[%s5847_s0 + $0x4b0] ss:$28 sps:$4 sm:$0xff]  }
 0x1bb   :  { %2672 = vmatprep.mubr.bf16.mxu0 %v4264_v26  ;;  %v4281_v26 = vld [vmem:[%s5847_s0 + $0x4e8] ss:$28 sps:$4 sm:$0xff]  }
 0x1bc   :  { %v5291_v28 = vpop.f32.mrb[84].mxu1 }
 0x1bd   :  { %v2074_v29 = vpop.f32.mrb[85].mxu1 }
 0x1be   :  { %v5296_v34 = vpop.f32.mrb[86].mxu1 }
 0x1bf   :  { %v2077_v46 = vpop.f32.mrb[87].mxu1 }
 0x1c1   :  { %3672 = vmatmul.mubr.bf16.gmra.mrb[160].mxu1 %v4268_v33  ;;  %v4279_v33 = vld [vmem:[%s5847_s0 + $0x5fc] ss:$28 sps:$4 sm:$0xff]  }
 0x1c2   :  { %2673 = vmatmul.mubr.bf16.gmra.mrb[96].mxu0 %v4267_v38  ;;  %3675 = vmatprep.mubr.bf16.mxu1 %v4271_v41  ;;  %v4283_v41 = vld [vmem:[%s5847_s0 + $0x520] ss:$28 sps:$4 sm:$0xff]  }
 0x1c3   :  { %2680 = vmatprep.mubr.bf16.mxu0 %v4269_v47 }
 0x1c4   :  { %v5307_v50 = vpop.f32.mrb[88].mxu1 }
 0x1c5   :  { %v2082_v52 = vpop.f32.mrb[89].mxu1 }
 0x1c6   :  { %v5312_v61 = vpop.f32.mrb[90].mxu1  ;;  %v4282_v52 = vld [vmem:[%s5847_s0 + $0x5f8] ss:$28 sps:$4 sm:$0xff]  }
 0x1c7   :  { %v2085_v7 = vpop.f32.mrb[91].mxu1 }
 0x1c9   :  { %3676 = vmatmul.mubr.bf16.gmra.mrb[164].mxu1 %v4273_v56  ;;  %v4286_v56 = vld [vmem:[%s5847_s0 + $0x558] ss:$28 sps:$4 sm:$0xff]  }
 0x1ca   :  { %2681 = vmatmul.mubr.bf16.gmra.mrb[100].mxu0 %v4272_v3  ;;  %3679 = vmatprep.mubr.bf16.mxu1 %v4276_v4  ;;  %v4284_v4 = vld [vmem:[%s5847_s0 + $0x634] ss:$28 sps:$4 sm:$0xff]  }
 0x1cb   :  { %2688 = vmatprep.mubr.bf16.mxu0 %v4274_v8 }
 0x1cc   :  { %v5323_v14 = vpop.f32.mrb[92].mxu1 }
 0x1cd   :  { %v2090_v17 = vpop.f32.mrb[93].mxu1 }
 0x1ce   :  { %v5328_v21 = vpop.f32.mrb[94].mxu1  ;;  %v4288_v17 = vld [vmem:[%s5847_s0 + $0x590] ss:$28 sps:$4 sm:$0xff]  }
 0x1cf   :  { %v2093_v29 = vpop.f32.mrb[95].mxu1 }
 0x1d1   :  { %3680 = vmatmul.mubr.bf16.gmra.mrb[168].mxu1 %v4278_v19 }
 0x1d2   :  { %2689 = vmatmul.mubr.bf16.gmra.mrb[104].mxu0 %v4277_v24  ;;  %3683 = vmatprep.mubr.bf16.mxu1 %v4281_v26  ;;  %v4287_v26 = vld [vmem:[%s5847_s0 + $0x630] ss:$28 sps:$4 sm:$0xff]  }
 0x1d3   :  { %2696 = vmatprep.mubr.bf16.mxu0 %v4279_v33  ;;  %v4289_v33 = vld [vmem:[%s5847_s0 + $0x66c] ss:$28 sps:$4 sm:$0xff]  }
 0x1d5   :  { %v2482_v38 = vpop.f32.mrb[0].mxu0 }
 0x1d6   :  { %v5343_v46 = vadd.f32 %v2482_v38, %v4933_v32  ;;  %v2484_v47 = vpop.f32.mrb[1].mxu0 }
 0x1d7   :  { %v2485_v3 = vpop.f32.mrb[2].mxu0  ;;  %v4293_v47 = vld [vmem:[%s5847_s0 + $0x600] ss:$28 sps:$4 sm:$0xff]  }
 0x1d8   :  { %v5355_v7 = vadd.f32 %v2485_v3, %v4938_v35  ;;  %v2487_v8 = vpop.f32.mrb[3].mxu0  ;;  %v4291_v35 = vld [vmem:[%s5847_s0 + $0x5c8] ss:$28 sps:$4 sm:$0xff]  }
 0x1d9   :  { %3684 = vmatmul.mubr.bf16.gmra.mrb[172].mxu1 %v4283_v41  ;;  %v4292_v3 = vld [vmem:[%s5847_s0 + $0x668] ss:$28 sps:$4 sm:$0xff]  }
 0x1da   :  { %2697 = vmatmul.mubr.bf16.gmra.mrb[108].mxu0 %v4282_v52  ;;  %3687 = vmatprep.mubr.bf16.mxu1 %v4286_v56  ;;  %v4294_v8 = vld [vmem:[%s5847_s0 + $0x6a4] ss:$28 sps:$4 sm:$0xff]  }
 0x1db   :  { %2704 = vmatprep.mubr.bf16.mxu0 %v4284_v4 }
 0x1dd   :  { %v2490_v32 = vpop.f32.mrb[4].mxu0 }
 0x1de   :  { %v5361_v19 = vadd.f32 %v2490_v32, %v4949_v40  ;;  %v2492_v24 = vpop.f32.mrb[5].mxu0 }
 0x1df   :  { %v2493_v29 = vpop.f32.mrb[6].mxu0  ;;  %v4298_v24 = vld [vmem:[%s5847_s0 + $0x670] ss:$28 sps:$4 sm:$0xff]  }
 0x1e0   :  { %v5373_v38 = vadd.f32 %v2493_v29, %v4954_v43  ;;  %v2495_v41 = vpop.f32.mrb[7].mxu0  ;;  %v4296_v43 = vld [vmem:[%s5847_s0 + $0x638] ss:$28 sps:$4 sm:$0xff]   ;;  %v4297_v29 = vld [vmem:[%s5847_s0 + $0x6a0] ss:$28 sps:$4 sm:$0xff]  }
 0x1e1   :  { %3688 = vmatmul.mubr.bf16.gmra.mrb[176].mxu1 %v4288_v17  ;;  %v4299_v41 = vld [vmem:[%s5847_s0 + $0x6dc] ss:$28 sps:$4 sm:$0xff]  }
 0x1e2   :  { %2705 = vmatmul.mubr.bf16.gmra.mrb[112].mxu0 %v4287_v26  ;;  %3691 = vmatprep.mubr.bf16.mxu1 %v4291_v35 }
 0x1e3   :  { %2712 = vmatprep.mubr.bf16.mxu0 %v4289_v33 }
 0x1e5   :  { %v2498_v40 = vpop.f32.mrb[8].mxu0 }
 0x1e6   :  { %v5379_v52 = vadd.f32 %v2498_v40, %v4965_v48  ;;  %v2500_v56 = vpop.f32.mrb[9].mxu0 }
 0x1e7   :  { %v2501_v4 = vpop.f32.mrb[10].mxu0  ;;  %v4303_v56 = vld [vmem:[%s5847_s0 + $0x6e0] ss:$28 sps:$4 sm:$0xff]  }
 0x1e8   :  { %v5391_v32 = vadd.f32 %v2501_v4, %v4970_v51  ;;  %v2503_v17 = vpop.f32.mrb[11].mxu0  ;;  %v4301_v51 = vld [vmem:[%s5847_s0 + $0x6a8] ss:$28 sps:$4 sm:$0xff]   ;;  %v4302_v4 = vld [vmem:[%s5847_s0 + $0x6d8] ss:$28 sps:$4 sm:$0xff]  }
 0x1e9   :  { %3692 = vmatmul.mubr.bf16.gmra.mrb[180].mxu1 %v4293_v47 }
 0x1ea   :  { %2713 = vmatmul.mubr.bf16.gmra.mrb[116].mxu0 %v4292_v3  ;;  %3695 = vmatprep.mubr.bf16.mxu1 %v4296_v43 }
 0x1eb   :  { %2720 = vmatprep.mubr.bf16.mxu0 %v4294_v8 }
 0x1ed   :  { %v2506_v48 = vpop.f32.mrb[12].mxu0 }
 0x1ee   :  { %v5397_v26 = vadd.f32 %v2506_v48, %v4981_v57  ;;  %v2508_v35 = vpop.f32.mrb[13].mxu0 }
 0x1ef   :  { %v2509_v33 = vpop.f32.mrb[14].mxu0 }
 0x1f0   :  { %v5409_v40 = vadd.f32 %v2509_v33, %v4986_v60  ;;  %v2511_v47 = vpop.f32.mrb[15].mxu0 }
 0x1f1   :  { %3696 = vmatmul.mubr.bf16.gmra.mrb[184].mxu1 %v4298_v24 }
 0x1f2   :  { %2721 = vmatmul.mubr.bf16.gmra.mrb[120].mxu0 %v4297_v29  ;;  %3699 = vmatprep.mubr.bf16.mxu1 %v4301_v51 }
 0x1f3   :  { %2728 = vmatprep.mubr.bf16.mxu0 %v4299_v41 }
 0x1f5   :  { %v2514_v57 = vpop.f32.mrb[16].mxu0 }
 0x1f6   :  { %v5415_v3 = vadd.f32 %v2514_v57, %v4997_v2  ;;  %v2516_v43 = vpop.f32.mrb[17].mxu0 }
 0x1f7   :  { %v2517_v60 = vpop.f32.mrb[18].mxu0 }
 0x1f8   :  { %v5421_v8 = vadd.f32 %v2517_v60, %v5002_v5  ;;  %v2519_v17 = vpop.f32.mrb[19].mxu0 }
 0x1f9   :  { %3700 = vmatmul.mubr.bf16.gmra.mrb[188].mxu1 %v4303_v56 }
 0x1fa   :  { %2729 = vmatmul.mubr.bf16.gmra.mrb[124].mxu0 %v4302_v4 }
 0x1fd   :  { %v2522_v48 = vpop.f32.mrb[20].mxu0 }
 0x1fe   :  { %v5424_v24 = vadd.f32 %v2522_v48, %v5013_v10  ;;  %v2524_v35 = vpop.f32.mrb[21].mxu0 }
 0x1ff   :  { %v2525_v29 = vpop.f32.mrb[22].mxu0 }
 0x200   :  { %v5427_v2 = vadd.f32 %v2525_v29, %v5018_v13  ;;  %v2527_v51 = vpop.f32.mrb[23].mxu0 }
 0x205   :  { %v2530_v33 = vpop.f32.mrb[24].mxu0 }
 0x206   :  { %v5430_v41 = vadd.f32 %v2530_v33, %v5036_v20  ;;  %v2532_v47 = vpop.f32.mrb[25].mxu0 }
 0x207   :  { %v2533_v5 = vpop.f32.mrb[26].mxu0 }
 0x208   :  { %v5433_v57 = vadd.f32 %v2533_v5, %v5041_v23  ;;  %v2535_v56 = vpop.f32.mrb[27].mxu0 }
 0x20d   :  { %v2538_v43 = vpop.f32.mrb[28].mxu0 }
 0x20e   :  { %v5436_v10 = vadd.f32 %v2538_v43, %v5055_v27  ;;  %v2540_v4 = vpop.f32.mrb[29].mxu0 }
 0x20f   :  { %v2541_v60 = vpop.f32.mrb[30].mxu0 }
 0x210   :  { %v5439_v13 = vadd.f32 %v2541_v60, %v5063_v31  ;;  %v2543_v17 = vpop.f32.mrb[31].mxu0 }
 0x214   :  { %v5441_v48 = vpop.f32.mrb[96].mxu1 }
 0x215   :  { %v2546_v20 = vpop.f32.mrb[32].mxu0  ;;  %v2387_v35 = vpop.f32.mrb[97].mxu1 }
 0x216   :  { %v5444_v29 = vadd.f32 %v2546_v20, %v5077_v39  ;;  %v2548_v23 = vpop.f32.mrb[33].mxu0  ;;  %v5446_v51 = vpop.f32.mrb[98].mxu1 }
 0x217   :  { %5850 = vst [vmem:[#allocation2_spill] sm:$0xff] %v5446_v51  ;;  %v2549_v33 = vpop.f32.mrb[34].mxu0  ;;  %v2390_v47 = vpop.f32.mrb[99].mxu1 }
 0x218   :  { %v5449_v27 = vadd.f32 %v2549_v33, %v5085_v45  ;;  %v2551_v5 = vpop.f32.mrb[35].mxu0 }
 0x21c   :  { %v5451_v56 = vpop.f32.mrb[100].mxu1 }
 0x21d   :  { %5851 = vst [vmem:[#allocation3_spill] sm:$0xff] %v5451_v56  ;;  %v2554_v31 = vpop.f32.mrb[36].mxu0  ;;  %v2395_v43 = vpop.f32.mrb[101].mxu1 }
 0x21e   :  { %v5454_v4 = vadd.f32 %v2554_v31, %v5099_v53  ;;  %v2556_v60 = vpop.f32.mrb[37].mxu0  ;;  %v5456_v17 = vpop.f32.mrb[102].mxu1 }
 0x21f   :  { %5852 = vst [vmem:[#allocation4_spill] sm:$0xff] %v5456_v17  ;;  %v2557_v39 = vpop.f32.mrb[38].mxu0  ;;  %v2398_v20 = vpop.f32.mrb[103].mxu1 }
 0x220   :  { %v5459_v35 = vadd.f32 %v2557_v39, %v5104_v58  ;;  %v2559_v23 = vpop.f32.mrb[39].mxu0 }
 0x224   :  { %v5461_v47 = vpop.f32.mrb[104].mxu1 }
 0x225   :  { %5853 = vst [vmem:[#allocation5_spill] sm:$0xff] %v5461_v47  ;;  %v2562_v45 = vpop.f32.mrb[40].mxu0  ;;  %v2403_v33 = vpop.f32.mrb[105].mxu1 }
 0x226   :  { %v5464_v5 = vadd.f32 %v2562_v45, %v5115_v1  ;;  %v2564_v43 = vpop.f32.mrb[41].mxu0  ;;  %v5466_v56 = vpop.f32.mrb[106].mxu1 }
 0x227   :  { %5854 = vst [vmem:[#allocation6_spill] sm:$0xff] %v5466_v56  ;;  %v2565_v53 = vpop.f32.mrb[42].mxu0  ;;  %v2406_v31 = vpop.f32.mrb[107].mxu1 }
 0x228   :  { %v5469_v60 = vadd.f32 %v2565_v53, %v5120_v6  ;;  %v2567_v20 = vpop.f32.mrb[43].mxu0 }
 0x22c   :  { %v5471_v17 = vpop.f32.mrb[108].mxu1 }
 0x22d   :  { %5855 = vst [vmem:[#allocation7_spill] sm:$0xff] %v5471_v17  ;;  %v2570_v58 = vpop.f32.mrb[44].mxu0  ;;  %v2411_v39 = vpop.f32.mrb[109].mxu1 }
 0x22e   :  { %v5474_v23 = vadd.f32 %v2570_v58, %v5131_v12  ;;  %v2572_v33 = vpop.f32.mrb[45].mxu0  ;;  %v5476_v47 = vpop.f32.mrb[110].mxu1 }
 0x22f   :  { %5856 = vst [vmem:[#allocation8_spill] sm:$0xff] %v5476_v47  ;;  %v2573_v1 = vpop.f32.mrb[46].mxu0  ;;  %v2414_v45 = vpop.f32.mrb[111].mxu1 }
 0x230   :  { %v5479_v43 = vadd.f32 %v2573_v1, %v5136_v16  ;;  %v2575_v31 = vpop.f32.mrb[47].mxu0 }
 0x234   :  { %v5481_v56 = vpop.f32.mrb[112].mxu1 }
 0x235   :  { %5857 = vst [vmem:[#allocation9_spill] sm:$0xff] %v5481_v56  ;;  %v2578_v6 = vpop.f32.mrb[48].mxu0  ;;  %v2419_v53 = vpop.f32.mrb[113].mxu1 }
 0x236   :  { %v5484_v20 = vadd.f32 %v2578_v6, %v5147_v22  ;;  %v2580_v39 = vpop.f32.mrb[49].mxu0  ;;  %v5486_v17 = vpop.f32.mrb[114].mxu1 }
 0x237   :  { %5858 = vst [vmem:[#allocation10_spill] sm:$0xff] %v5486_v17  ;;  %v2581_v12 = vpop.f32.mrb[50].mxu0  ;;  %v2422_v58 = vpop.f32.mrb[115].mxu1 }
 0x238   :  { %v5489_v33 = vadd.f32 %v2581_v12, %v5152_v25  ;;  %v2583_v45 = vpop.f32.mrb[51].mxu0 }
 0x23c   :  { %v5491_v47 = vpop.f32.mrb[116].mxu1 }
 0x23d   :  { %5859 = vst [vmem:[#allocation11_spill] sm:$0xff] %v5491_v47  ;;  %v2586_v16 = vpop.f32.mrb[52].mxu0  ;;  %v2427_v1 = vpop.f32.mrb[117].mxu1 }
 0x23e   :  { %v5494_v31 = vadd.f32 %v2586_v16, %v5163_v30  ;;  %v2588_v53 = vpop.f32.mrb[53].mxu0  ;;  %v5496_v56 = vpop.f32.mrb[118].mxu1 }
 0x23f   :  { %5860 = vst [vmem:[#allocation12_spill] sm:$0xff] %v5496_v56  ;;  %v2589_v22 = vpop.f32.mrb[54].mxu0  ;;  %v2430_v6 = vpop.f32.mrb[119].mxu1 }
 0x240   :  { %v5499_v39 = vadd.f32 %v2589_v22, %v5168_v36  ;;  %v2591_v58 = vpop.f32.mrb[55].mxu0 }
 0x244   :  { %v5501_v17 = vpop.f32.mrb[120].mxu1 }
 0x245   :  { %5861 = vst [vmem:[#allocation13_spill] sm:$0xff] %v5501_v17  ;;  %v2594_v25 = vpop.f32.mrb[56].mxu0  ;;  %v2435_v12 = vpop.f32.mrb[121].mxu1 }
 0x246   :  { %v5504_v45 = vadd.f32 %v2594_v25, %v5179_v44  ;;  %v2596_v1 = vpop.f32.mrb[57].mxu0  ;;  %v5506_v47 = vpop.f32.mrb[122].mxu1 }
 0x247   :  { %5862 = vst [vmem:[#allocation14_spill] sm:$0xff] %v5506_v47  ;;  %v2597_v30 = vpop.f32.mrb[58].mxu0  ;;  %v2438_v16 = vpop.f32.mrb[123].mxu1 }
 0x248   :  { %v5509_v53 = vadd.f32 %v2597_v30, %v5184_v49  ;;  %v2599_v6 = vpop.f32.mrb[59].mxu0 }
 0x24c   :  { %v5511_v56 = vpop.f32.mrb[124].mxu1 }
 0x24d   :  { %5863 = vst [vmem:[#allocation15_spill] sm:$0xff] %v5511_v56  ;;  %v2602_v36 = vpop.f32.mrb[60].mxu0  ;;  %v2443_v22 = vpop.f32.mrb[125].mxu1 }
 0x24e   :  { %v5514_v58 = vadd.f32 %v2602_v36, %v5195_v59  ;;  %v2604_v12 = vpop.f32.mrb[61].mxu0  ;;  %v5516_v17 = vpop.f32.mrb[126].mxu1 }
 0x24f   :  { %5864 = vst [vmem:[#allocation16_spill] sm:$0xff] %v5516_v17  ;;  %v2605_v44 = vpop.f32.mrb[62].mxu0  ;;  %v2446_v25 = vpop.f32.mrb[127].mxu1 }
 0x250   :  { %v5519_v1 = vadd.f32 %v2605_v44, %v5200_v63  ;;  %v2607_v16 = vpop.f32.mrb[63].mxu0 }
 0x254   :  { %v3641_v47 = vpop.f32.mrb[128].mxu1 }
 0x255   :  { %v2610_v49 = vpop.f32.mrb[64].mxu0  ;;  %v2780_v30 = vadd.f32 %v5361_v19, %v3641_v47  ;;  %v2771_v6 = vpop.f32.mrb[129].mxu1 }
 0x256   :  { %v5523_v56 = vadd.f32 %v2610_v49, %v5211_v9  ;;  %v2612_v22 = vpop.f32.mrb[65].mxu0  ;;  %v2772_v59 = vadd.f32 %v5343_v46, %v2771_v6  ;;  %v3642_v36 = vpop.f32.mrb[130].mxu1 }
 0x257   :  { %3028 = vst [vmem:[%s5848_s2 + $0x10] sm:$0xff] %v2780_v30  ;;  %v2613_v12 = vpop.f32.mrb[66].mxu0  ;;  %v2783_v63 = vadd.f32 %v5373_v38, %v3642_v36  ;;  %v2774_v44 = vpop.f32.mrb[131].mxu1  ;;  %v3161_v16 = vmul.f32 %v2780_v30, %v2780_v30 }
 0x258   :  { %5865 = vst [vmem:[#allocation17_spill] sm:$0xff] %v5523_v56  ;;  %3026 = vst [vmem:[%s5848_s2] sm:$0xff] %v2772_v59  ;;  %v5534_v19 = vadd.f32 %v2613_v12, %v5216_v15  ;;  %v2615_v9 = vpop.f32.mrb[67].mxu0  ;;  %v2775_v47 = vadd.f32 %v5355_v7, %v2774_v44  ;;  %v3159_v46 = vmul.f32 %v2772_v59, %v2772_v59 }
 0x259   :  { %3029 = vst [vmem:[%s5848_s2 + $0x18] sm:$0xff] %v2783_v63  ;;  %v3162_v15 = vmul.f32 %v2783_v63, %v2783_v63 }
 0x25a   :  { %5866 = vst [vmem:[#allocation18_spill] sm:$0xff] %v5534_v19  ;;  %3027 = vst [vmem:[%s5848_s2 + $0x8] sm:$0xff] %v2775_v47  ;;  %v3090_v38 = vadd.f32 %v2775_v47, %v2772_v59  ;;  %v3160_v25 = vmul.f32 %v2775_v47, %v2775_v47 }
 0x25c   :  { %v3091_v49 = vadd.f32 %v3090_v38, %v2780_v30  ;;  %v3223_v6 = vadd.f32 %v3160_v25, %v3159_v46  ;;  %v3645_v22 = vpop.f32.mrb[132].mxu1 }
 0x25d   :  { %v2618_v36 = vpop.f32.mrb[68].mxu0  ;;  %v2796_v12 = vadd.f32 %v5397_v26, %v3645_v22  ;;  %v2787_v7 = vpop.f32.mrb[133].mxu1 }
 0x25e   :  { %v3224_v44 = vadd.f32 %v3223_v6, %v3161_v16  ;;  %v5545_v9 = vadd.f32 %v2618_v36, %v5227_v55  ;;  %v2620_v17 = vpop.f32.mrb[69].mxu0  ;;  %v2788_v19 = vadd.f32 %v5379_v52, %v2787_v7  ;;  %v3092_v51 = vadd.f32 %v3091_v49, %v2783_v63  ;;  %v3646_v56 = vpop.f32.mrb[134].mxu1 }
 0x25f   :  { %3032 = vst [vmem:[%s5848_s2 + $0x30] sm:$0xff] %v2796_v12  ;;  %v2621_v30 = vpop.f32.mrb[70].mxu0  ;;  %v2799_v59 = vadd.f32 %v5409_v40, %v3646_v56  ;;  %v2790_v47 = vpop.f32.mrb[135].mxu1 }
 0x260   :  { %3030 = vst [vmem:[%s5848_s2 + $0x20] sm:$0xff] %v2788_v19  ;;  %v3093_v26 = vadd.f32 %v3092_v51, %v2788_v19  ;;  %v3163_v55 = vmul.f32 %v2788_v19, %v2788_v19  ;;  %v3225_v46 = vadd.f32 %v3224_v44, %v3162_v15  ;;  %v5556_v17 = vadd.f32 %v2621_v30, %v5232_v0  ;;  %v2623_v52 = vpop.f32.mrb[71].mxu0 }
 0x261   :  { %3033 = vst [vmem:[%s5848_s2 + $0x38] sm:$0xff] %v2799_v59  ;;  %v2791_v63 = vadd.f32 %v5391_v32, %v2790_v47  ;;  %v3165_v19 = vmul.f32 %v2796_v12, %v2796_v12  ;;  %v3166_v7 = vmul.f32 %v2799_v59, %v2799_v59 }
 0x262   :  { %v3226_v38 = vadd.f32 %v3225_v46, %v3163_v55 }
 0x263   :  { %3031 = vst [vmem:[%s5848_s2 + $0x28] sm:$0xff] %v2791_v63  ;;  %v3094_v40 = vadd.f32 %v3093_v26, %v2791_v63  ;;  %v3164_v56 = vmul.f32 %v2791_v63, %v2791_v63 }
 0x264   :  { %v3649_v51 = vpop.f32.mrb[136].mxu1 }
 0x265   :  { %v3095_v25 = vadd.f32 %v3094_v40, %v2796_v12  ;;  %v3227_v16 = vadd.f32 %v3226_v38, %v3164_v56  ;;  %v2626_v0 = vpop.f32.mrb[72].mxu0  ;;  %v2812_v49 = vadd.f32 %v5424_v24, %v3649_v51  ;;  %v2803_v6 = vpop.f32.mrb[137].mxu1 }
 0x266   :  { %v5567_v22 = vadd.f32 %v2626_v0, %v5243_v37  ;;  %v2628_v15 = vpop.f32.mrb[73].mxu0  ;;  %v2804_v32 = vadd.f32 %v5415_v3, %v2803_v6  ;;  %v3650_v36 = vpop.f32.mrb[138].mxu1 }
 0x267   :  { %v3228_v44 = vadd.f32 %v3227_v16, %v3165_v19  ;;  %3036 = vst [vmem:[%s5848_s2 + $0x50] sm:$0xff] %v2812_v49  ;;  %v3096_v30 = vadd.f32 %v3095_v25, %v2799_v59  ;;  %v2629_v12 = vpop.f32.mrb[74].mxu0  ;;  %v2815_v47 = vadd.f32 %v5427_v2, %v3650_v36  ;;  %v2806_v26 = vpop.f32.mrb[139].mxu1  ;;  %v3169_v40 = vmul.f32 %v2812_v49, %v2812_v49 }
 0x268   :  { %3034 = vst [vmem:[%s5848_s2 + $0x40] sm:$0xff] %v2804_v32  ;;  %v3167_v37 = vmul.f32 %v2804_v32, %v2804_v32  ;;  %v5578_v24 = vadd.f32 %v2629_v12, %v5248_v42  ;;  %v2631_v3 = vpop.f32.mrb[75].mxu0  ;;  %v2807_v55 = vadd.f32 %v5421_v8, %v2806_v26 }
 0x269   :  { %v3097_v46 = vadd.f32 %v3096_v30, %v2804_v32  ;;  %v3229_v52 = vadd.f32 %v3228_v44, %v3166_v7  ;;  %3037 = vst [vmem:[%s5848_s2 + $0x58] sm:$0xff] %v2815_v47  ;;  %v3170_v15 = vmul.f32 %v2815_v47, %v2815_v47 }
 0x26a   :  { %3035 = vst [vmem:[%s5848_s2 + $0x48] sm:$0xff] %v2807_v55  ;;  %v3168_v2 = vmul.f32 %v2807_v55, %v2807_v55 }
 0x26b   :  { %v3230_v59 = vadd.f32 %v3229_v52, %v3167_v37  ;;  %v3098_v63 = vadd.f32 %v3097_v46, %v2807_v55 }
 0x26c   :  { %v3653_v38 = vpop.f32.mrb[140].mxu1 }
 0x26d   :  { %v3099_v42 = vadd.f32 %v3098_v63, %v2812_v49  ;;  %v3231_v56 = vadd.f32 %v3230_v59, %v3168_v2  ;;  %v2634_v51 = vpop.f32.mrb[76].mxu0  ;;  %v2828_v8 = vadd.f32 %v5436_v10, %v3653_v38  ;;  %v2819_v19 = vpop.f32.mrb[141].mxu1 }
 0x26e   :  { %v5589_v25 = vadd.f32 %v2634_v51, %v5259_v54  ;;  %v2636_v16 = vpop.f32.mrb[77].mxu0  ;;  %v2820_v0 = vadd.f32 %v5430_v41, %v2819_v19  ;;  %v3654_v6 = vpop.f32.mrb[142].mxu1 }
 0x26f   :  { %v3232_v32 = vadd.f32 %v3231_v56, %v3169_v40  ;;  %3040 = vst [vmem:[%s5848_s2 + $0x70] sm:$0xff] %v2828_v8  ;;  %v3100_v36 = vadd.f32 %v3099_v42, %v2815_v47  ;;  %v2637_v49 = vpop.f32.mrb[78].mxu0  ;;  %v2831_v7 = vadd.f32 %v5439_v13, %v3654_v6  ;;  %v2822_v44 = vpop.f32.mrb[143].mxu1  ;;  %v3173_v55 = vmul.f32 %v2828_v8, %v2828_v8 }
 0x270   :  { %3038 = vst [vmem:[%s5848_s2 + $0x60] sm:$0xff] %v2820_v0  ;;  %v3171_v54 = vmul.f32 %v2820_v0, %v2820_v0  ;;  %v5600_v10 = vadd.f32 %v2637_v49, %v5264_v62  ;;  %v2639_v41 = vpop.f32.mrb[79].mxu0  ;;  %v2823_v30 = vadd.f32 %v5433_v57, %v2822_v44 }
 0x271   :  { %v3101_v12 = vadd.f32 %v3100_v36, %v2820_v0  ;;  %v3233_v26 = vadd.f32 %v3232_v32, %v3170_v15  ;;  %3041 = vst [vmem:[%s5848_s2 + $0x78] sm:$0xff] %v2831_v7  ;;  %v3174_v42 = vmul.f32 %v2831_v7, %v2831_v7 }
 0x272   :  { %3039 = vst [vmem:[%s5848_s2 + $0x68] sm:$0xff] %v2823_v30  ;;  %v3172_v13 = vmul.f32 %v2823_v30, %v2823_v30 }
 0x273   :  { %v3234_v47 = vadd.f32 %v3233_v26, %v3171_v54  ;;  %v3102_v37 = vadd.f32 %v3101_v12, %v2823_v30 }
 0x274   :  { %v3657_v3 = vpop.f32.mrb[144].mxu1 }
 0x275   :  { %v3103_v62 = vadd.f32 %v3102_v37, %v2828_v8  ;;  %v3235_v46 = vadd.f32 %v3234_v47, %v3172_v13  ;;  %v2642_v52 = vpop.f32.mrb[80].mxu0  ;;  %v2844_v57 = vadd.f32 %v5454_v4, %v3657_v3  ;;  %v2835_v2 = vpop.f32.mrb[145].mxu1 }
 0x276   :  { %v5611_v59 = vadd.f32 %v2642_v52, %v5275_v11  ;;  %v2644_v63 = vpop.f32.mrb[81].mxu0  ;;  %v2836_v38 = vadd.f32 %v5444_v29, %v2835_v2  ;;  %v3658_v40 = vpop.f32.mrb[146].mxu1 }
 0x277   :  { %v3236_v56 = vadd.f32 %v3235_v46, %v3173_v55  ;;  %3044 = vst [vmem:[%s5848_s2 + $0x90] sm:$0xff] %v2844_v57  ;;  %v3104_v51 = vadd.f32 %v3103_v62, %v2831_v7  ;;  %v2645_v8 = vpop.f32.mrb[82].mxu0  ;;  %v2847_v19 = vadd.f32 %v5459_v35, %v3658_v40  ;;  %v2838_v16 = vpop.f32.mrb[147].mxu1  ;;  %v3177_v7 = vmul.f32 %v2844_v57, %v2844_v57 }
 0x278   :  { %3042 = vst [vmem:[%s5848_s2 + $0x80] sm:$0xff] %v2836_v38  ;;  %v3175_v11 = vmul.f32 %v2836_v38, %v2836_v38  ;;  %v5622_v4 = vadd.f32 %v2645_v8, %v5280_v18  ;;  %v2647_v29 = vpop.f32.mrb[83].mxu0  ;;  %v2839_v0 = vadd.f32 %v5449_v27, %v2838_v16 }
 0x279   :  { %v3105_v6 = vadd.f32 %v3104_v51, %v2836_v38  ;;  %v3237_v15 = vadd.f32 %v3236_v56, %v3174_v42  ;;  %3045 = vst [vmem:[%s5848_s2 + $0x98] sm:$0xff] %v2847_v19  ;;  %v3178_v47 = vmul.f32 %v2847_v19, %v2847_v19 }
 0x27a   :  { %3043 = vst [vmem:[%s5848_s2 + $0x88] sm:$0xff] %v2839_v0  ;;  %v3176_v35 = vmul.f32 %v2839_v0, %v2839_v0 }
 0x27b   :  { %v3238_v32 = vadd.f32 %v3237_v15, %v3175_v11  ;;  %v3106_v36 = vadd.f32 %v3105_v6, %v2839_v0 }
 0x27c   :  { %v3661_v49 = vpop.f32.mrb[148].mxu1 }
 0x27d   :  { %v3107_v18 = vadd.f32 %v3106_v36, %v2844_v57  ;;  %v3239_v44 = vadd.f32 %v3238_v32, %v3176_v35  ;;  %v2650_v54 = vpop.f32.mrb[84].mxu0  ;;  %v2860_v27 = vadd.f32 %v5474_v23, %v3661_v49  ;;  %v2851_v41 = vpop.f32.mrb[149].mxu1 }
 0x27e   :  { %v5633_v30 = vadd.f32 %v2650_v54, %v5291_v28  ;;  %v2652_v12 = vpop.f32.mrb[85].mxu0  ;;  %v2852_v26 = vadd.f32 %v5464_v5, %v2851_v41  ;;  %v3662_v13 = vpop.f32.mrb[150].mxu1 }
 0x27f   :  { %v3240_v37 = vadd.f32 %v3239_v44, %v3177_v7  ;;  %3048 = vst [vmem:[%s5848_s2 + $0xb0] sm:$0xff] %v2860_v27  ;;  %v3108_v3 = vadd.f32 %v3107_v18, %v2847_v19  ;;  %v2653_v55 = vpop.f32.mrb[86].mxu0  ;;  %v2863_v62 = vadd.f32 %v5479_v43, %v3662_v13  ;;  %v2854_v46 = vpop.f32.mrb[151].mxu1  ;;  %v3181_v42 = vmul.f32 %v2860_v27, %v2860_v27 }
 0x280   :  { %3046 = vst [vmem:[%s5848_s2 + $0xa0] sm:$0xff] %v2852_v26  ;;  %v3179_v28 = vmul.f32 %v2852_v26, %v2852_v26  ;;  %v5644_v23 = vadd.f32 %v2653_v55, %v5296_v34  ;;  %v2655_v5 = vpop.f32.mrb[87].mxu0  ;;  %v2855_v52 = vadd.f32 %v5469_v60, %v2854_v46 }
 0x281   :  { %v3109_v57 = vadd.f32 %v3108_v3, %v2852_v26  ;;  %v3241_v2 = vadd.f32 %v3240_v37, %v3178_v47  ;;  %3049 = vst [vmem:[%s5848_s2 + $0xb8] sm:$0xff] %v2863_v62  ;;  %v3182_v0 = vmul.f32 %v2863_v62, %v2863_v62 }
 0x282   :  { %3047 = vst [vmem:[%s5848_s2 + $0xa8] sm:$0xff] %v2855_v52  ;;  %v3180_v43 = vmul.f32 %v2855_v52, %v2855_v52 }
 0x283   :  { %v3242_v63 = vadd.f32 %v3241_v2, %v3179_v28  ;;  %v3110_v38 = vadd.f32 %v3109_v57, %v2855_v52 }
 0x284   :  { %v3665_v40 = vpop.f32.mrb[152].mxu1 }
 0x285   :  { %v3111_v34 = vadd.f32 %v3110_v38, %v2860_v27  ;;  %v3243_v56 = vadd.f32 %v3242_v63, %v3180_v43  ;;  %v2658_v51 = vpop.f32.mrb[88].mxu0  ;;  %v2876_v60 = vadd.f32 %v5494_v31, %v3665_v40  ;;  %v2867_v8 = vpop.f32.mrb[153].mxu1 }
 0x286   :  { %v5655_v19 = vadd.f32 %v2658_v51, %v5307_v50  ;;  %v2660_v16 = vpop.f32.mrb[89].mxu0  ;;  %v2868_v11 = vadd.f32 %v5484_v20, %v2867_v8  ;;  %v3666_v29 = vpop.f32.mrb[154].mxu1 }
 0x287   :  { %v3244_v6 = vadd.f32 %v3243_v56, %v3181_v42  ;;  %3052 = vst [vmem:[%s5848_s2 + $0xd0] sm:$0xff] %v2876_v60  ;;  %v3112_v15 = vadd.f32 %v3111_v34, %v2863_v62  ;;  %v2661_v35 = vpop.f32.mrb[90].mxu0  ;;  %v2879_v32 = vadd.f32 %v5499_v39, %v3666_v29  ;;  %v2870_v36 = vpop.f32.mrb[155].mxu1  ;;  %v3185_v41 = vmul.f32 %v2876_v60, %v2876_v60 }
 0x288   :  { %3050 = vst [vmem:[%s5848_s2 + $0xc0] sm:$0xff] %v2868_v11  ;;  %v3183_v50 = vmul.f32 %v2868_v11, %v2868_v11  ;;  %v5666_v31 = vadd.f32 %v2661_v35, %v5312_v61  ;;  %v2663_v20 = vpop.f32.mrb[91].mxu0  ;;  %v2871_v49 = vadd.f32 %v5489_v33, %v2870_v36 }
 0x289   :  { %v3113_v7 = vadd.f32 %v3112_v15, %v2868_v11  ;;  %v3245_v18 = vadd.f32 %v3244_v6, %v3182_v0  ;;  %3053 = vst [vmem:[%s5848_s2 + $0xd8] sm:$0xff] %v2879_v32  ;;  %v3186_v62 = vmul.f32 %v2879_v32, %v2879_v32  ;;  %v5867_v11 = vld [vmem:[#allocation17_spill] sm:$0xff] }
 0x28a   :  { %3051 = vst [vmem:[%s5848_s2 + $0xc8] sm:$0xff] %v2871_v49  ;;  %v3184_v39 = vmul.f32 %v2871_v49, %v2871_v49 }
 0x28b   :  { %v3246_v44 = vadd.f32 %v3245_v18, %v3183_v50  ;;  %v3114_v54 = vadd.f32 %v3113_v7, %v2871_v49  ;;  %v5869_v49 = vld [vmem:[#allocation18_spill] sm:$0xff] }
 0x28c   :  { %v3669_v27 = vpop.f32.mrb[156].mxu1 }
 0x28d   :  { %v3115_v61 = vadd.f32 %v3114_v54, %v2876_v60  ;;  %v3247_v12 = vadd.f32 %v3246_v44, %v3184_v39  ;;  %v2666_v26 = vpop.f32.mrb[92].mxu0  ;;  %v2892_v33 = vadd.f32 %v5514_v58, %v3669_v27  ;;  %v2883_v13 = vpop.f32.mrb[157].mxu1 }
 0x28e   :  { %v5677_v47 = vadd.f32 %v2666_v26, %v5323_v14  ;;  %v2668_v37 = vpop.f32.mrb[93].mxu0  ;;  %v2884_v3 = vadd.f32 %v5504_v45, %v2883_v13  ;;  %v3670_v55 = vpop.f32.mrb[158].mxu1 }
 0x28f   :  { %v3248_v46 = vadd.f32 %v3247_v12, %v3185_v41  ;;  %3056 = vst [vmem:[%s5848_s2 + $0xf0] sm:$0xff] %v2892_v33  ;;  %v3116_v28 = vadd.f32 %v3115_v61, %v2879_v32  ;;  %v2669_v5 = vpop.f32.mrb[94].mxu0  ;;  %v2895_v52 = vadd.f32 %v5519_v1, %v3670_v55  ;;  %v2886_v57 = vpop.f32.mrb[159].mxu1  ;;  %v3189_v34 = vmul.f32 %v2892_v33, %v2892_v33 }
 0x290   :  { %3054 = vst [vmem:[%s5848_s2 + $0xe0] sm:$0xff] %v2884_v3  ;;  %v3187_v14 = vmul.f32 %v2884_v3, %v2884_v3  ;;  %v5688_v58 = vadd.f32 %v2669_v5, %v5328_v21  ;;  %v2671_v45 = vpop.f32.mrb[95].mxu0  ;;  %v2887_v2 = vadd.f32 %v5509_v53, %v2886_v57 }
 0x291   :  { %v3117_v43 = vadd.f32 %v3116_v28, %v2884_v3  ;;  %v3249_v63 = vadd.f32 %v3248_v46, %v3186_v62  ;;  %3057 = vst [vmem:[%s5848_s2 + $0xf8] sm:$0xff] %v2895_v52  ;;  %v3190_v6 = vmul.f32 %v2895_v52, %v2895_v52  ;;  %v5870_v3 = vld [vmem:[#allocation3_spill] sm:$0xff] }
 0x292   :  { %3055 = vst [vmem:[%s5848_s2 + $0xe8] sm:$0xff] %v2887_v2  ;;  %v3188_v1 = vmul.f32 %v2887_v2, %v2887_v2 }
 0x293   :  { %v3250_v38 = vadd.f32 %v3249_v63, %v3187_v14  ;;  %v3118_v40 = vadd.f32 %v3117_v43, %v2887_v2  ;;  %v5871_v43 = vld [vmem:[#allocation4_spill] sm:$0xff] }
 0x294   :  { %v3673_v42 = vpop.f32.mrb[160].mxu1 }
 0x295   :  { %v3119_v21 = vadd.f32 %v3118_v40, %v2892_v33  ;;  %v3251_v56 = vadd.f32 %v3250_v38, %v3188_v1  ;;  %v2674_v51 = vpop.f32.mrb[96].mxu0  ;;  %v2908_v53 = vadd.f32 %v5545_v9, %v3673_v42  ;;  %v2899_v60 = vpop.f32.mrb[161].mxu1  ;;  %v5868_v9 = vld [vmem:[#allocation2_spill] sm:$0xff] }
 0x296   :  { %v5699_v8 = vadd.f32 %v2674_v51, %v5441_v48  ;;  %v2676_v16 = vpop.f32.mrb[97].mxu0  ;;  %v2900_v29 = vadd.f32 %v5867_v11, %v2899_v60  ;;  %v3674_v0 = vpop.f32.mrb[162].mxu1  ;;  %v5872_v11 = vld [vmem:[#allocation5_spill] sm:$0xff] }
 0x297   :  { %v3252_v15 = vadd.f32 %v3251_v56, %v3189_v34  ;;  %3060 = vst [vmem:[%s5848_s2 + $0x110] sm:$0xff] %v2908_v53  ;;  %v3120_v35 = vadd.f32 %v3119_v21, %v2895_v52  ;;  %v2677_v32 = vpop.f32.mrb[98].mxu0  ;;  %v2911_v36 = vadd.f32 %v5556_v17, %v3674_v0  ;;  %v2902_v50 = vpop.f32.mrb[163].mxu1  ;;  %v3193_v61 = vmul.f32 %v2908_v53, %v2908_v53 }
 0x298   :  { %3058 = vst [vmem:[%s5848_s2 + $0x100] sm:$0xff] %v2900_v29  ;;  %v3191_v48 = vmul.f32 %v2900_v29, %v2900_v29  ;;  %v5710_v20 = vadd.f32 %v2677_v32, %v5868_v9  ;;  %v2903_v7 = vadd.f32 %v5869_v49, %v2902_v50  ;;  %v2679_v18 = vpop.f32.mrb[99].mxu0  ;;  %v5873_v49 = vld [vmem:[#allocation6_spill] sm:$0xff] }
 0x299   :  { %v3121_v39 = vadd.f32 %v3120_v35, %v2900_v29  ;;  %v3253_v44 = vadd.f32 %v3252_v15, %v3190_v6  ;;  %3061 = vst [vmem:[%s5848_s2 + $0x118] sm:$0xff] %v2911_v36  ;;  %v3194_v5 = vmul.f32 %v2911_v36, %v2911_v36 }
 0x29a   :  { %3059 = vst [vmem:[%s5848_s2 + $0x108] sm:$0xff] %v2903_v7  ;;  %v3192_v17 = vmul.f32 %v2903_v7, %v2903_v7 }
 0x29b   :  { %v3254_v54 = vadd.f32 %v3253_v44, %v3191_v48  ;;  %v3122_v27 = vadd.f32 %v3121_v39, %v2903_v7 }
 0x29c   :  { %v3677_v41 = vpop.f32.mrb[164].mxu1 }
 0x29d   :  { %v3123_v12 = vadd.f32 %v3122_v27, %v2908_v53  ;;  %v3255_v26 = vadd.f32 %v3254_v54, %v3192_v17  ;;  %v2682_v33 = vpop.f32.mrb[100].mxu0  ;;  %v2924_v13 = vadd.f32 %v5589_v25, %v3677_v41  ;;  %v2915_v37 = vpop.f32.mrb[165].mxu1 }
 0x29e   :  { %v5721_v55 = vadd.f32 %v2682_v33, %v5870_v3  ;;  %v2684_v62 = vpop.f32.mrb[101].mxu0  ;;  %v2916_v46 = vadd.f32 %v5567_v22, %v2915_v37  ;;  %v3678_v28 = vpop.f32.mrb[166].mxu1 }
 0x29f   :  { %v3256_v52 = vadd.f32 %v3255_v26, %v3193_v61  ;;  %3064 = vst [vmem:[%s5848_s2 + $0x130] sm:$0xff] %v2924_v13  ;;  %v3124_v57 = vadd.f32 %v3123_v12, %v2911_v36  ;;  %v2685_v14 = vpop.f32.mrb[102].mxu0  ;;  %v2927_v45 = vadd.f32 %v5600_v10, %v3678_v28  ;;  %v2918_v2 = vpop.f32.mrb[167].mxu1  ;;  %v3197_v56 = vmul.f32 %v2924_v13, %v2924_v13 }
 0x2a0   :  { %3062 = vst [vmem:[%s5848_s2 + $0x120] sm:$0xff] %v2916_v46  ;;  %v3195_v25 = vmul.f32 %v2916_v46, %v2916_v46  ;;  %v5732_v63 = vadd.f32 %v2685_v14, %v5871_v43  ;;  %v2919_v22 = vadd.f32 %v5578_v24, %v2918_v2  ;;  %v2687_v1 = vpop.f32.mrb[103].mxu0  ;;  %v5875_v2 = vld [vmem:[#allocation8_spill] sm:$0xff] }
 0x2a1   :  { %v3125_v38 = vadd.f32 %v3124_v57, %v2916_v46  ;;  %v3257_v40 = vadd.f32 %v3256_v52, %v3194_v5  ;;  %3065 = vst [vmem:[%s5848_s2 + $0x138] sm:$0xff] %v2927_v45  ;;  %v3198_v35 = vmul.f32 %v2927_v45, %v2927_v45 }
 0x2a2   :  { %3063 = vst [vmem:[%s5848_s2 + $0x128] sm:$0xff] %v2919_v22  ;;  %v3196_v10 = vmul.f32 %v2919_v22, %v2919_v22 }
 0x2a3   :  { %v3258_v42 = vadd.f32 %v3257_v40, %v3195_v25  ;;  %v3126_v34 = vadd.f32 %v3125_v38, %v2919_v22 }
 0x2a4   :  { %v3681_v21 = vpop.f32.mrb[168].mxu1 }
 0x2a5   :  { %v3127_v51 = vadd.f32 %v3126_v34, %v2924_v13  ;;  %v3259_v53 = vadd.f32 %v3258_v42, %v3196_v10  ;;  %v2690_v60 = vpop.f32.mrb[104].mxu0  ;;  %v2940_v24 = vadd.f32 %v5633_v30, %v3681_v21  ;;  %v2931_v16 = vpop.f32.mrb[169].mxu1  ;;  %v5874_v13 = vld [vmem:[#allocation7_spill] sm:$0xff] }
 0x2a6   :  { %v5743_v29 = vadd.f32 %v2690_v60, %v5872_v11  ;;  %v2692_v0 = vpop.f32.mrb[105].mxu0  ;;  %v2932_v6 = vadd.f32 %v5611_v59, %v2931_v16  ;;  %v3682_v15 = vpop.f32.mrb[170].mxu1 }
 0x2a7   :  { %v3260_v32 = vadd.f32 %v3259_v53, %v3197_v56  ;;  %3068 = vst [vmem:[%s5848_s2 + $0x150] sm:$0xff] %v2940_v24  ;;  %v3128_v36 = vadd.f32 %v3127_v51, %v2927_v45  ;;  %v2693_v50 = vpop.f32.mrb[106].mxu0  ;;  %v2943_v48 = vadd.f32 %v5644_v23, %v3682_v15  ;;  %v2934_v9 = vpop.f32.mrb[171].mxu1  ;;  %v3201_v41 = vmul.f32 %v2940_v24, %v2940_v24  ;;  %v5876_v53 = vld [vmem:[#allocation9_spill] sm:$0xff] }
 0x2a8   :  { %3066 = vst [vmem:[%s5848_s2 + $0x140] sm:$0xff] %v2932_v6  ;;  %v3199_v30 = vmul.f32 %v2932_v6, %v2932_v6  ;;  %v5754_v7 = vadd.f32 %v2693_v50, %v5873_v49  ;;  %v2935_v59 = vadd.f32 %v5622_v4, %v2934_v9  ;;  %v2695_v18 = vpop.f32.mrb[107].mxu0  ;;  %v5877_v50 = vld [vmem:[#allocation10_spill] sm:$0xff] }
 0x2a9   :  { %v3129_v39 = vadd.f32 %v3128_v36, %v2932_v6  ;;  %v3261_v44 = vadd.f32 %v3260_v32, %v3198_v35  ;;  %3069 = vst [vmem:[%s5848_s2 + $0x158] sm:$0xff] %v2943_v48  ;;  %v3202_v28 = vmul.f32 %v2943_v48, %v2943_v48 }
 0x2aa   :  { %3067 = vst [vmem:[%s5848_s2 + $0x148] sm:$0xff] %v2935_v59  ;;  %v3200_v23 = vmul.f32 %v2935_v59, %v2935_v59 }
 0x2ab   :  { %v3262_v17 = vadd.f32 %v3261_v44, %v3199_v30  ;;  %v3130_v54 = vadd.f32 %v3129_v39, %v2935_v59 }
 0x2ac   :  { %v3685_v27 = vpop.f32.mrb[172].mxu1 }
 0x2ad   :  { %v3131_v61 = vadd.f32 %v3130_v54, %v2940_v24  ;;  %v3263_v12 = vadd.f32 %v3262_v17, %v3200_v23  ;;  %v2698_v26 = vpop.f32.mrb[108].mxu0  ;;  %v2956_v4 = vadd.f32 %v5677_v47, %v3685_v27  ;;  %v2947_v33 = vpop.f32.mrb[173].mxu1 }
 0x2ae   :  { %v3789_v37 = vadd.f32 %v2698_v26, %v5874_v13  ;;  %v2700_v3 = vpop.f32.mrb[109].mxu0  ;;  %v2948_v62 = vadd.f32 %v5655_v19, %v2947_v33  ;;  %v3686_v46 = vpop.f32.mrb[174].mxu1 }
 0x2af   :  { %v3264_v5 = vadd.f32 %v3263_v12, %v3201_v41  ;;  %3072 = vst [vmem:[%s5848_s2 + $0x170] sm:$0xff] %v2956_v4  ;;  %v3132_v52 = vadd.f32 %v3131_v61, %v2943_v48  ;;  %v2701_v57 = vpop.f32.mrb[110].mxu0  ;;  %v2959_v14 = vadd.f32 %v5688_v58, %v3686_v46  ;;  %v2950_v45 = vpop.f32.mrb[175].mxu1  ;;  %v3205_v42 = vmul.f32 %v2956_v4, %v2956_v4  ;;  %v5878_v41 = vld [vmem:[#allocation11_spill] sm:$0xff] }
 0x2b0   :  { %3070 = vst [vmem:[%s5848_s2 + $0x160] sm:$0xff] %v2948_v62  ;;  %v3203_v47 = vmul.f32 %v2948_v62, %v2948_v62  ;;  %v3790_v25 = vadd.f32 %v2701_v57, %v5875_v2  ;;  %v2951_v19 = vadd.f32 %v5666_v31, %v2950_v45  ;;  %v2703_v43 = vpop.f32.mrb[111].mxu0 }
 0x2b1   :  { %v3133_v22 = vadd.f32 %v3132_v52, %v2948_v62  ;;  %v3265_v1 = vadd.f32 %v3264_v5, %v3202_v28  ;;  %3073 = vst [vmem:[%s5848_s2 + $0x178] sm:$0xff] %v2959_v14  ;;  %v3206_v0 = vmul.f32 %v2959_v14, %v2959_v14  ;;  %v5879_v5 = vld [vmem:[#allocation12_spill] sm:$0xff] }
 0x2b2   :  { %3071 = vst [vmem:[%s5848_s2 + $0x168] sm:$0xff] %v2951_v19  ;;  %v3204_v58 = vmul.f32 %v2951_v19, %v2951_v19 }
 0x2b3   :  { %v3266_v38 = vadd.f32 %v3265_v1, %v3203_v47  ;;  %v3134_v40 = vadd.f32 %v3133_v22, %v2951_v19 }
 0x2b4   :  { %v3689_v10 = vpop.f32.mrb[176].mxu1 }
 0x2b5   :  { %v3135_v34 = vadd.f32 %v3134_v40, %v2956_v4  ;;  %v3267_v21 = vadd.f32 %v3266_v38, %v3204_v58  ;;  %v2706_v56 = vpop.f32.mrb[112].mxu0  ;;  %v2972_v31 = vadd.f32 %v5721_v55, %v3689_v10  ;;  %v2963_v51 = vpop.f32.mrb[177].mxu1  ;;  %v5880_v40 = vld [vmem:[#allocation13_spill] sm:$0xff] }
 0x2b6   :  { %v3791_v60 = vadd.f32 %v2706_v56, %v5876_v53  ;;  %v2708_v24 = vpop.f32.mrb[113].mxu0  ;;  %v2964_v16 = vadd.f32 %v5699_v8, %v2963_v51  ;;  %v3690_v11 = vpop.f32.mrb[178].mxu1 }
 0x2b7   :  { %v3268_v6 = vadd.f32 %v3267_v21, %v3205_v42  ;;  %3076 = vst [vmem:[%s5848_s2 + $0x190] sm:$0xff] %v2972_v31  ;;  %v3136_v15 = vadd.f32 %v3135_v34, %v2959_v14  ;;  %v2709_v35 = vpop.f32.mrb[114].mxu0  ;;  %v2975_v32 = vadd.f32 %v5732_v63, %v3690_v11  ;;  %v2966_v36 = vpop.f32.mrb[179].mxu1  ;;  %v3209_v44 = vmul.f32 %v2972_v31, %v2972_v31 }
 0x2b8   :  { %3074 = vst [vmem:[%s5848_s2 + $0x180] sm:$0xff] %v2964_v16  ;;  %v3207_v55 = vmul.f32 %v2964_v16, %v2964_v16  ;;  %v3792_v48 = vadd.f32 %v2709_v35, %v5877_v50  ;;  %v2967_v8 = vadd.f32 %v5710_v20, %v2966_v36  ;;  %v2711_v9 = vpop.f32.mrb[115].mxu0 }
 0x2b9   :  { %v3137_v30 = vadd.f32 %v3136_v15, %v2964_v16  ;;  %v3269_v49 = vadd.f32 %v3268_v6, %v3206_v0  ;;  %3077 = vst [vmem:[%s5848_s2 + $0x198] sm:$0xff] %v2975_v32  ;;  %v3210_v33 = vmul.f32 %v2975_v32, %v2975_v32  ;;  %v5881_v0 = vld [vmem:[#allocation14_spill] sm:$0xff] }
 0x2ba   :  { %3075 = vst [vmem:[%s5848_s2 + $0x188] sm:$0xff] %v2967_v8  ;;  %v3208_v63 = vmul.f32 %v2967_v8, %v2967_v8 }
 0x2bb   :  { %v3270_v59 = vadd.f32 %v3269_v49, %v3207_v55  ;;  %v3138_v18 = vadd.f32 %v3137_v30, %v2967_v8 }
 0x2bc   :  { %v3693_v39 = vpop.f32.mrb[180].mxu1 }
 0x2bd   :  { %v3139_v23 = vadd.f32 %v3138_v18, %v2972_v31  ;;  %v3271_v17 = vadd.f32 %v3270_v59, %v3208_v63  ;;  %v2714_v54 = vpop.f32.mrb[116].mxu0  ;;  %v2988_v20 = vadd.f32 %v3789_v37, %v3693_v39  ;;  %v2979_v27 = vpop.f32.mrb[181].mxu1  ;;  %v5882_v59 = vld [vmem:[#allocation15_spill] sm:$0xff] }
 0x2be   :  { %v3793_v61 = vadd.f32 %v2714_v54, %v5878_v41  ;;  %v2716_v12 = vpop.f32.mrb[117].mxu0  ;;  %v2980_v26 = vadd.f32 %v5743_v29, %v2979_v27  ;;  %v3694_v4 = vpop.f32.mrb[182].mxu1 }
 0x2bf   :  { %v3272_v13 = vadd.f32 %v3271_v17, %v3209_v44  ;;  %3080 = vst [vmem:[%s5848_s2 + $0x1b0] sm:$0xff] %v2988_v20  ;;  %v3140_v3 = vadd.f32 %v3139_v23, %v2975_v32  ;;  %v2717_v62 = vpop.f32.mrb[118].mxu0  ;;  %v2991_v46 = vadd.f32 %v3790_v25, %v3694_v4  ;;  %v2982_v28 = vpop.f32.mrb[183].mxu1  ;;  %v3213_v43 = vmul.f32 %v2988_v20, %v2988_v20 }
 0x2c0   :  { %3078 = vst [vmem:[%s5848_s2 + $0x1a0] sm:$0xff] %v2980_v26  ;;  %v3211_v37 = vmul.f32 %v2980_v26, %v2980_v26  ;;  %v3794_v52 = vadd.f32 %v2717_v62, %v5879_v5  ;;  %v2983_v29 = vadd.f32 %v5754_v7, %v2982_v28  ;;  %v2719_v57 = vpop.f32.mrb[119].mxu0 }
 0x2c1   :  { %v3141_v14 = vadd.f32 %v3140_v3, %v2980_v26  ;;  %v3273_v45 = vadd.f32 %v3272_v13, %v3210_v33  ;;  %3081 = vst [vmem:[%s5848_s2 + $0x1b8] sm:$0xff] %v2991_v46  ;;  %v3214_v56 = vmul.f32 %v2991_v46, %v2991_v46  ;;  %v5883_v26 = vld [vmem:[#allocation16_spill] sm:$0xff] }
 0x2c2   :  { %3079 = vst [vmem:[%s5848_s2 + $0x1a8] sm:$0xff] %v2983_v29  ;;  %v3212_v47 = vmul.f32 %v2983_v29, %v2983_v29 }
 0x2c3   :  { %v3274_v2 = vadd.f32 %v3273_v45, %v3211_v37  ;;  %v3142_v25 = vadd.f32 %v3141_v14, %v2983_v29 }
 0x2c4   :  { %v3697_v19 = vpop.f32.mrb[184].mxu1 }
 0x2c5   :  { %v3143_v22 = vadd.f32 %v3142_v25, %v2988_v20  ;;  %v3275_v1 = vadd.f32 %v3274_v2, %v3212_v47  ;;  %v2722_v58 = vpop.f32.mrb[120].mxu0  ;;  %v3004_v7 = vadd.f32 %v3793_v61, %v3697_v19  ;;  %v2995_v38 = vpop.f32.mrb[185].mxu1 }
 0x2c6   :  { %v3795_v10 = vadd.f32 %v2722_v58, %v5880_v40  ;;  %v2724_v42 = vpop.f32.mrb[121].mxu0  ;;  %v2996_v34 = vadd.f32 %v3791_v60, %v2995_v38  ;;  %v3698_v21 = vpop.f32.mrb[186].mxu1 }
 0x2c7   :  { %v3276_v31 = vadd.f32 %v3275_v1, %v3213_v43  ;;  %3084 = vst [vmem:[%s5848_s2 + $0x1d0] sm:$0xff] %v3004_v7  ;;  %v3144_v51 = vadd.f32 %v3143_v22, %v2991_v46  ;;  %v2725_v53 = vpop.f32.mrb[122].mxu0  ;;  %v3007_v24 = vadd.f32 %v3794_v52, %v3698_v21  ;;  %v2998_v16 = vpop.f32.mrb[187].mxu1  ;;  %v3217_v9 = vmul.f32 %v3004_v7, %v3004_v7 }
 0x2c8   :  { %3082 = vst [vmem:[%s5848_s2 + $0x1c0] sm:$0xff] %v2996_v34  ;;  %v3215_v11 = vmul.f32 %v2996_v34, %v2996_v34  ;;  %v3796_v6 = vadd.f32 %v2725_v53, %v5881_v0  ;;  %v2999_v15 = vadd.f32 %v3792_v48, %v2998_v16  ;;  %v2727_v60 = vpop.f32.mrb[123].mxu0 }
 0x2c9   :  { %v3145_v35 = vadd.f32 %v3144_v51, %v2996_v34  ;;  %v3277_v32 = vadd.f32 %v3276_v31, %v3214_v56  ;;  %3085 = vst [vmem:[%s5848_s2 + $0x1d8] sm:$0xff] %v3007_v24  ;;  %v3218_v17 = vmul.f32 %v3007_v24, %v3007_v24 }
 0x2ca   :  { %3083 = vst [vmem:[%s5848_s2 + $0x1c8] sm:$0xff] %v2999_v15  ;;  %v3216_v36 = vmul.f32 %v2999_v15, %v2999_v15 }
 0x2cb   :  { %v3278_v55 = vadd.f32 %v3277_v32, %v3215_v11  ;;  %v3146_v50 = vadd.f32 %v3145_v35, %v2999_v15 }
 0x2cc   :  { %v3701_v8 = vpop.f32.mrb[188].mxu1 }
 0x2cd   :  { %v3147_v30 = vadd.f32 %v3146_v50, %v3004_v7  ;;  %v3279_v49 = vadd.f32 %v3278_v55, %v3216_v36  ;;  %v2730_v63 = vpop.f32.mrb[124].mxu0  ;;  %v3011_v48 = vpop.f32.mrb[189].mxu1 }
 0x2ce   :  { %v3797_v18 = vadd.f32 %v2730_v63, %v5882_v59  ;;  %v2732_v39 = vpop.f32.mrb[125].mxu0  ;;  %v3012_v44 = vadd.f32 %v3795_v10, %v3011_v48  ;;  %v3702_v23 = vpop.f32.mrb[190].mxu1 }
 0x2cf   :  { %v3280_v54 = vadd.f32 %v3279_v49, %v3217_v9  ;;  %v3148_v20 = vadd.f32 %v3147_v30, %v3007_v24  ;;  %v2733_v27 = vpop.f32.mrb[126].mxu0  ;;  %v3014_v41 = vpop.f32.mrb[191].mxu1 }
 0x2d0   :  { %v3020_v61 = vadd.f32 %v3797_v18, %v3701_v8  ;;  %3086 = vst [vmem:[%s5848_s2 + $0x1e0] sm:$0xff] %v3012_v44  ;;  %v3219_v12 = vmul.f32 %v3012_v44, %v3012_v44  ;;  %v3798_v4 = vadd.f32 %v2733_v27, %v5883_v26  ;;  %v3015_v33 = vadd.f32 %v3796_v6, %v3014_v41  ;;  %v2735_v13 = vpop.f32.mrb[127].mxu0 }
 0x2d1   :  { %v3149_v3 = vadd.f32 %v3148_v20, %v3012_v44  ;;  %v3281_v62 = vadd.f32 %v3280_v54, %v3218_v17 }
 0x2d2   :  { %3088 = vst [vmem:[%s5848_s2 + $0x1f0] sm:$0xff] %v3020_v61  ;;  %v3023_v46 = vadd.f32 %v3798_v4, %v3702_v23  ;;  %3087 = vst [vmem:[%s5848_s2 + $0x1e8] sm:$0xff] %v3015_v33  ;;  %v3220_v28 = vmul.f32 %v3015_v33, %v3015_v33  ;;  %v3221_v52 = vmul.f32 %v3020_v61, %v3020_v61 }
 0x2d3   :  { %v3282_v37 = vadd.f32 %v3281_v62, %v3219_v12  ;;  %v3150_v5 = vadd.f32 %v3149_v3, %v3015_v33 }
 0x2d4   :  { %3089 = vst [vmem:[%s5848_s2 + $0x1f8] sm:$0xff] %v3023_v46  ;;  %v3222_v14 = vmul.f32 %v3023_v46, %v3023_v46 }
 0x2d5   :  { %v3151_v29 = vadd.f32 %v3150_v5, %v3020_v61  ;;  %v3283_v57 = vadd.f32 %v3282_v37, %v3220_v28 }
 0x2d7   :  { %v3152_v45 = vadd.f32 %v3151_v29, %v3023_v46  ;;  %v3284_v47 = vadd.f32 %v3283_v57, %v3221_v52 }
 0x2d9   :  { %v3153_v2 = vrot.slane %v3152_v45, 4  ;;  %v3285_v25 = vadd.f32 %v3284_v47, %v3222_v14 }
 0x2db   :  { %v3154_v19 = vadd.f32 %v3153_v2, %v3152_v45  ;;  %v3286_v43 = vrot.slane %v3285_v25, 4 }
 0x2dd   :  { %v3155_v22 = vrot.slane %v3154_v19, 2  ;;  %v3287_v1 = vadd.f32 %v3286_v43, %v3285_v25 }
 0x2df   :  { %v3156_v58 = vadd.f32 %v3155_v22, %v3154_v19  ;;  %v3288_v7 = vrot.slane %v3287_v1, 2 }
 0x2e1   :  { %v3157_v38 = vrot.slane %v3156_v58, 1  ;;  %v3289_v40 = vadd.f32 %v3288_v7, %v3287_v1 }
 0x2e3   :  { %v3290_v10 = vrot.slane %v3289_v40, 1  ;;  %v3158_v42 = vadd.f32 %v3157_v38, %v3156_v58 }
 0x2e5   :  { %v3291_v34 = vadd.f32 %v3290_v10, %v3289_v40 }
 0x2e7   :  { %v3293_v21 = vsel %vm3292_vm0, %v3158_v42, %v3291_v34 }
 0x2e8   :  { %3294 = vst [vmem:[%s5849_s3] sm:$0x3] %v3293_v21 }

// kernel: model_forward.13
= control target key start
LH: loop header
LB: loop body
LE: loop exit
PB: predicated region body
PF: predicated region fallthrough
CT: control target
= control target key end

     0   :  { %vm730_vm0 = vcmask 1040384   ;;  %s1276_s1 = inlined_call_operand.vmem [shape: bf16[512,128], index: 1, kind: input, shape index: {}]   ;;  %s1277_s0 = inlined_call_operand.vmem [shape: bf16[128,512], index: 0, kind: input, shape index: {}]   ;;  %s1278_s2 = inlined_call_operand.vmem [shape: f32[128,128], index: 2, kind: output, shape index: {0}]   ;;  %s1279_s3 = inlined_call_operand.vmem [shape: f32[1,2,128], index: 3, kind: output, shape index: {1}]  }
   0x1   :  { %v933_v0 = vld [vmem:[%s1276_s1 + $0x40] sm:$0xff]   ;;  %v937_v4 = vld [vmem:[%s1276_s1 + $0x48] sm:$0xff]   ;;  %v941_v8 = vld [vmem:[%s1276_s1 + $0x50] sm:$0xff]  }
   0x2   :  { %v934_v1 = vld [vmem:[%s1276_s1 + $0xc0] sm:$0xff]   ;;  %805 = vmatprep.subr.bf16.mxu0 %v933_v0  ;;  %v938_v5 = vld [vmem:[%s1276_s1 + $0xc8] sm:$0xff]   ;;  %v942_v9 = vld [vmem:[%s1276_s1 + $0xd0] sm:$0xff]  }
   0x3   :  { %v935_v2 = vld [vmem:[%s1276_s1] sm:$0xff]   ;;  %869 = vmatprep.subr.bf16.mxu1 %v934_v1  ;;  %v939_v6 = vld [vmem:[%s1276_s1 + $0x8] sm:$0xff]   ;;  %v943_v10 = vld [vmem:[%s1276_s1 + $0x10] sm:$0xff]  }
   0x4   :  { %v936_v3 = vld [vmem:[%s1276_s1 + $0x80] sm:$0xff]   ;;  %806 = vmatpush3.bf16.msra.mxu0 %v935_v2  ;;  %v940_v7 = vld [vmem:[%s1276_s1 + $0x88] sm:$0xff]   ;;  %v944_v11 = vld [vmem:[%s1276_s1 + $0x90] sm:$0xff]  }
   0x5   :  { %870 = vmatpush3.bf16.msra.mxu1 %v936_v3  ;;  %807 = vmatprep.subr.bf16.mxu0 %v937_v4  ;;  %v945_v12 = vld [vmem:[%s1276_s1 + $0x58] sm:$0xff]   ;;  %v949_v16 = vld [vmem:[%s1276_s1 + $0x60] sm:$0xff]   ;;  %v953_v20 = vld [vmem:[%s1276_s1 + $0x68] sm:$0xff]  }
   0x6   :  { %871 = vmatprep.subr.bf16.mxu1 %v938_v5  ;;  %v946_v13 = vld [vmem:[%s1276_s1 + $0xd8] sm:$0xff]   ;;  %v950_v17 = vld [vmem:[%s1276_s1 + $0xe0] sm:$0xff]   ;;  %v954_v21 = vld [vmem:[%s1276_s1 + $0xe8] sm:$0xff]  }
   0x7   :  { %v947_v14 = vld [vmem:[%s1276_s1 + $0x18] sm:$0xff]   ;;  %v951_v18 = vld [vmem:[%s1276_s1 + $0x20] sm:$0xff]   ;;  %v955_v22 = vld [vmem:[%s1276_s1 + $0x28] sm:$0xff]  }
   0x8   :  { %808 = vmatpush3.bf16.msra.mxu0 %v939_v6  ;;  %v948_v15 = vld [vmem:[%s1276_s1 + $0x98] sm:$0xff]   ;;  %v952_v19 = vld [vmem:[%s1276_s1 + $0xa0] sm:$0xff]   ;;  %v956_v23 = vld [vmem:[%s1276_s1 + $0xa8] sm:$0xff]  }
   0x9   :  { %872 = vmatpush3.bf16.msra.mxu1 %v940_v7  ;;  %809 = vmatprep.subr.bf16.mxu0 %v941_v8  ;;  %v957_v24 = vld [vmem:[%s1276_s1 + $0x70] sm:$0xff]   ;;  %v961_v28 = vld [vmem:[%s1276_s1 + $0x78] sm:$0xff]  }
   0xa   :  { %873 = vmatprep.subr.bf16.mxu1 %v942_v9  ;;  %v958_v25 = vld [vmem:[%s1276_s1 + $0xf0] sm:$0xff]   ;;  %v962_v29 = vld [vmem:[%s1276_s1 + $0xf8] sm:$0xff]  }
   0xb   :  { %v959_v26 = vld [vmem:[%s1276_s1 + $0x30] sm:$0xff]   ;;  %v963_v30 = vld [vmem:[%s1276_s1 + $0x38] sm:$0xff]  }
   0xc   :  { %810 = vmatpush3.bf16.msra.mxu0 %v943_v10  ;;  %v960_v27 = vld [vmem:[%s1276_s1 + $0xb0] sm:$0xff]   ;;  %v964_v31 = vld [vmem:[%s1276_s1 + $0xb8] sm:$0xff]  }
   0xd   :  { %874 = vmatpush3.bf16.msra.mxu1 %v944_v11  ;;  %811 = vmatprep.subr.bf16.mxu0 %v945_v12  ;;  %v965_v32 = vld [vmem:[%s1277_s0] ss:$16 sps:$4 sm:$0xff]   ;;  %v967_v33 = vld [vmem:[%s1277_s0 + $0x4] ss:$16 sps:$4 sm:$0xff]   ;;  %v968_v34 = vld [vmem:[%s1277_s0 + $0x8] ss:$16 sps:$4 sm:$0xff]  }
   0xe   :  { %875 = vmatprep.subr.bf16.mxu1 %v946_v13  ;;  %v970_v35 = vld [vmem:[%s1277_s0 + $0xc] ss:$16 sps:$4 sm:$0xff]   ;;  %494 = vmatprep.mubr.bf16.mxu0 %v967_v33  ;;  %v971_v36 = vld [vmem:[%s1277_s0 + $0x24] ss:$16 sps:$4 sm:$0xff]   ;;  %v975_v38 = vld [vmem:[%s1277_s0 + $0x20] ss:$16 sps:$4 sm:$0xff]  }
   0xf   :  { %591 = vmatprep.mubr.bf16.mxu1 %v970_v35  ;;  %v973_v37 = vld [vmem:[%s1277_s0 + $0x2c] ss:$16 sps:$4 sm:$0xff]   ;;  %v976_v39 = vld [vmem:[%s1277_s0 + $0x28] ss:$16 sps:$4 sm:$0xff]   ;;  %v977_v40 = vld [vmem:[%s1277_s0 + $0x44] ss:$16 sps:$4 sm:$0xff]  }
  0x10   :  { %812 = vmatpush3.bf16.msra.mxu0 %v947_v14  ;;  %v979_v41 = vld [vmem:[%s1277_s0 + $0x4c] ss:$16 sps:$4 sm:$0xff]   ;;  %v981_v42 = vld [vmem:[%s1277_s0 + $0x40] ss:$16 sps:$4 sm:$0xff]   ;;  %v982_v43 = vld [vmem:[%s1277_s0 + $0x48] ss:$16 sps:$4 sm:$0xff]  }
  0x11   :  { %876 = vmatpush3.bf16.msra.mxu1 %v948_v15  ;;  %813 = vmatprep.subr.bf16.mxu0 %v949_v16  ;;  %v983_v44 = vld [vmem:[%s1277_s0 + $0x64] ss:$16 sps:$4 sm:$0xff]   ;;  %v985_v45 = vld [vmem:[%s1277_s0 + $0x6c] ss:$16 sps:$4 sm:$0xff]   ;;  %v987_v46 = vld [vmem:[%s1277_s0 + $0x60] ss:$16 sps:$4 sm:$0xff]  }
  0x12   :  { %877 = vmatprep.subr.bf16.mxu1 %v950_v17  ;;  %v988_v47 = vld [vmem:[%s1277_s0 + $0x68] ss:$16 sps:$4 sm:$0xff]   ;;  %v989_v48 = vld [vmem:[%s1277_s0 + $0x84] ss:$16 sps:$4 sm:$0xff]   ;;  %v991_v49 = vld [vmem:[%s1277_s0 + $0x8c] ss:$16 sps:$4 sm:$0xff]  }
  0x13   :  { %v993_v50 = vld [vmem:[%s1277_s0 + $0x80] ss:$16 sps:$4 sm:$0xff]   ;;  %v994_v51 = vld [vmem:[%s1277_s0 + $0x88] ss:$16 sps:$4 sm:$0xff]   ;;  %v995_v52 = vld [vmem:[%s1277_s0 + $0xa4] ss:$16 sps:$4 sm:$0xff]  }
  0x14   :  { %814 = vmatpush3.bf16.msra.mxu0 %v951_v18  ;;  %v997_v53 = vld [vmem:[%s1277_s0 + $0xac] ss:$16 sps:$4 sm:$0xff]   ;;  %v999_v54 = vld [vmem:[%s1277_s0 + $0xa0] ss:$16 sps:$4 sm:$0xff]   ;;  %v1000_v55 = vld [vmem:[%s1277_s0 + $0xa8] ss:$16 sps:$4 sm:$0xff]  }
  0x15   :  { %878 = vmatpush3.bf16.msra.mxu1 %v952_v19  ;;  %815 = vmatprep.subr.bf16.mxu0 %v953_v20  ;;  %v1001_v56 = vld [vmem:[%s1277_s0 + $0xc4] ss:$16 sps:$4 sm:$0xff]   ;;  %v1003_v57 = vld [vmem:[%s1277_s0 + $0xcc] ss:$16 sps:$4 sm:$0xff]   ;;  %v1005_v58 = vld [vmem:[%s1277_s0 + $0xc0] ss:$16 sps:$4 sm:$0xff]  }
  0x16   :  { %879 = vmatprep.subr.bf16.mxu1 %v954_v21  ;;  %v1006_v59 = vld [vmem:[%s1277_s0 + $0xc8] ss:$16 sps:$4 sm:$0xff]   ;;  %v1007_v60 = vld [vmem:[%s1277_s0 + $0xe4] ss:$16 sps:$4 sm:$0xff]   ;;  %v1009_v61 = vld [vmem:[%s1277_s0 + $0xec] ss:$16 sps:$4 sm:$0xff]  }
  0x17   :  { %v1011_v62 = vld [vmem:[%s1277_s0 + $0xe0] ss:$16 sps:$4 sm:$0xff]   ;;  %v1012_v63 = vld [vmem:[%s1277_s0 + $0xe8] ss:$16 sps:$4 sm:$0xff]  }
  0x18   :  { %816 = vmatpush3.bf16.msra.mxu0 %v955_v22 }
  0x19   :  { %880 = vmatpush3.bf16.msra.mxu1 %v956_v23  ;;  %817 = vmatprep.subr.bf16.mxu0 %v957_v24 }
  0x1a   :  { %881 = vmatprep.subr.bf16.mxu1 %v958_v25 }
  0x1c   :  { %818 = vmatpush3.bf16.msra.mxu0 %v959_v26 }
  0x1d   :  { %882 = vmatpush3.bf16.msra.mxu1 %v960_v27  ;;  %819 = vmatprep.subr.bf16.mxu0 %v961_v28 }
  0x1e   :  { %883 = vmatprep.subr.bf16.mxu1 %v962_v29 }
  0x20   :  { %820 = vmatpush3.bf16.msra.mxu0 %v963_v30 }
  0x21   :  { %884 = vmatpush3.bf16.msra.mxu1 %v964_v31 }
  0x23   :  { %495 = vmatmul.mubr.bf16.vlgmr.msra.gmra.mrb[0].mxu0 %v965_v32 }
  0x24   :  { %592 = vmatmul.mubr.bf16.vlgmr.msra.gmra.mrb[0].mxu1 %v968_v34  ;;  %502 = vmatprep.mubr.bf16.mxu0 %v971_v36 }
  0x25   :  { %599 = vmatprep.mubr.bf16.mxu1 %v973_v37 }
  0x2b   :  { %503 = vmatmul.mubr.bf16.gmra.mrb[4].mxu0 %v975_v38 }
  0x2c   :  { %600 = vmatmul.mubr.bf16.gmra.mrb[4].mxu1 %v976_v39  ;;  %510 = vmatprep.mubr.bf16.mxu0 %v977_v40 }
  0x2d   :  { %607 = vmatprep.mubr.bf16.mxu1 %v979_v41 }
  0x33   :  { %511 = vmatmul.mubr.bf16.gmra.mrb[8].mxu0 %v981_v42 }
  0x34   :  { %608 = vmatmul.mubr.bf16.gmra.mrb[8].mxu1 %v982_v43  ;;  %518 = vmatprep.mubr.bf16.mxu0 %v983_v44 }
  0x35   :  { %615 = vmatprep.mubr.bf16.mxu1 %v985_v45 }
  0x3b   :  { %519 = vmatmul.mubr.bf16.gmra.mrb[12].mxu0 %v987_v46 }
  0x3c   :  { %616 = vmatmul.mubr.bf16.gmra.mrb[12].mxu1 %v988_v47  ;;  %526 = vmatprep.mubr.bf16.mxu0 %v989_v48 }
  0x3d   :  { %623 = vmatprep.mubr.bf16.mxu1 %v991_v49 }
  0x43   :  { %527 = vmatmul.mubr.bf16.gmra.mrb[16].mxu0 %v993_v50 }
  0x44   :  { %624 = vmatmul.mubr.bf16.gmra.mrb[16].mxu1 %v994_v51  ;;  %534 = vmatprep.mubr.bf16.mxu0 %v995_v52 }
  0x45   :  { %631 = vmatprep.mubr.bf16.mxu1 %v997_v53 }
  0x4b   :  { %535 = vmatmul.mubr.bf16.gmra.mrb[20].mxu0 %v999_v54 }
  0x4c   :  { %632 = vmatmul.mubr.bf16.gmra.mrb[20].mxu1 %v1000_v55  ;;  %542 = vmatprep.mubr.bf16.mxu0 %v1001_v56 }
  0x4d   :  { %639 = vmatprep.mubr.bf16.mxu1 %v1003_v57 }
  0x53   :  { %543 = vmatmul.mubr.bf16.gmra.mrb[24].mxu0 %v1005_v58 }
  0x54   :  { %640 = vmatmul.mubr.bf16.gmra.mrb[24].mxu1 %v1006_v59  ;;  %550 = vmatprep.mubr.bf16.mxu0 %v1007_v60 }
  0x55   :  { %647 = vmatprep.mubr.bf16.mxu1 %v1009_v61 }
  0x5b   :  { %551 = vmatmul.mubr.bf16.gmra.mrb[28].mxu0 %v1011_v62 }
  0x5c   :  { %648 = vmatmul.mubr.bf16.gmra.mrb[28].mxu1 %v1012_v63 }
  0xf6   :  { %v821_v0 = vpop.f32.mrb[0].mxu0 }
  0xf7   :  { %v885_v1 = vpop.f32.mrb[0].mxu1  ;;  %v822_v2 = vpop.f32.mrb[1].mxu0 }
  0xf8   :  { %v823_v3 = vadd.f32 %v822_v2, %v821_v0  ;;  %v886_v4 = vpop.f32.mrb[1].mxu1  ;;  %v824_v5 = vpop.f32.mrb[2].mxu0 }
  0xf9   :  { %v887_v6 = vadd.f32 %v886_v4, %v885_v1  ;;  %v888_v7 = vpop.f32.mrb[2].mxu1  ;;  %v825_v8 = vpop.f32.mrb[3].mxu0 }
  0xfa   :  { %v826_v9 = vadd.f32 %v825_v8, %v824_v5  ;;  %v889_v10 = vpop.f32.mrb[3].mxu1 }
  0xfb   :  { %v594_v11 = vadd.f32 %v887_v6, %v823_v3  ;;  %v890_v12 = vadd.f32 %v889_v10, %v888_v7 }
  0xfd   :  { %656 = vst [vmem:[%s1278_s2] sm:$0xff] %v594_v11  ;;  %v597_v13 = vadd.f32 %v890_v12, %v826_v9  ;;  %v693_v15 = vmul.f32 %v594_v11, %v594_v11 }
  0xfe   :  { %v827_v14 = vpop.f32.mrb[4].mxu0 }
  0xff   :  { %657 = vst [vmem:[%s1278_s2 + $0x8] sm:$0xff] %v597_v13  ;;  %v672_v16 = vadd.f32 %v597_v13, %v594_v11  ;;  %v694_v17 = vmul.f32 %v597_v13, %v597_v13  ;;  %v891_v18 = vpop.f32.mrb[4].mxu1  ;;  %v828_v19 = vpop.f32.mrb[5].mxu0 }
 0x100   :  { %v829_v20 = vadd.f32 %v828_v19, %v827_v14  ;;  %v892_v21 = vpop.f32.mrb[5].mxu1  ;;  %v830_v22 = vpop.f32.mrb[6].mxu0 }
 0x101   :  { %v709_v23 = vadd.f32 %v694_v17, %v693_v15  ;;  %v893_v24 = vadd.f32 %v892_v21, %v891_v18  ;;  %v894_v25 = vpop.f32.mrb[6].mxu1  ;;  %v831_v26 = vpop.f32.mrb[7].mxu0 }
 0x102   :  { %v832_v27 = vadd.f32 %v831_v26, %v830_v22  ;;  %v895_v28 = vpop.f32.mrb[7].mxu1 }
 0x103   :  { %v602_v29 = vadd.f32 %v893_v24, %v829_v20  ;;  %v896_v30 = vadd.f32 %v895_v28, %v894_v25 }
 0x105   :  { %658 = vst [vmem:[%s1278_s2 + $0x10] sm:$0xff] %v602_v29  ;;  %v673_v31 = vadd.f32 %v672_v16, %v602_v29  ;;  %v695_v32 = vmul.f32 %v602_v29, %v602_v29  ;;  %v605_v33 = vadd.f32 %v896_v30, %v832_v27 }
 0x106   :  { %v833_v34 = vpop.f32.mrb[8].mxu0 }
 0x107   :  { %v710_v35 = vadd.f32 %v709_v23, %v695_v32  ;;  %659 = vst [vmem:[%s1278_s2 + $0x18] sm:$0xff] %v605_v33  ;;  %v674_v36 = vadd.f32 %v673_v31, %v605_v33  ;;  %v696_v37 = vmul.f32 %v605_v33, %v605_v33  ;;  %v897_v38 = vpop.f32.mrb[8].mxu1  ;;  %v834_v39 = vpop.f32.mrb[9].mxu0 }
 0x108   :  { %v835_v40 = vadd.f32 %v834_v39, %v833_v34  ;;  %v898_v41 = vpop.f32.mrb[9].mxu1  ;;  %v836_v42 = vpop.f32.mrb[10].mxu0 }
 0x109   :  { %v711_v43 = vadd.f32 %v710_v35, %v696_v37  ;;  %v899_v44 = vadd.f32 %v898_v41, %v897_v38  ;;  %v900_v45 = vpop.f32.mrb[10].mxu1  ;;  %v837_v46 = vpop.f32.mrb[11].mxu0 }
 0x10a   :  { %v838_v47 = vadd.f32 %v837_v46, %v836_v42  ;;  %v901_v48 = vpop.f32.mrb[11].mxu1 }
 0x10b   :  { %v610_v49 = vadd.f32 %v899_v44, %v835_v40  ;;  %v902_v50 = vadd.f32 %v901_v48, %v900_v45 }
 0x10d   :  { %660 = vst [vmem:[%s1278_s2 + $0x20] sm:$0xff] %v610_v49  ;;  %v675_v51 = vadd.f32 %v674_v36, %v610_v49  ;;  %v697_v52 = vmul.f32 %v610_v49, %v610_v49  ;;  %v613_v53 = vadd.f32 %v902_v50, %v838_v47 }
 0x10e   :  { %v839_v54 = vpop.f32.mrb[12].mxu0 }
 0x10f   :  { %v712_v55 = vadd.f32 %v711_v43, %v697_v52  ;;  %661 = vst [vmem:[%s1278_s2 + $0x28] sm:$0xff] %v613_v53  ;;  %v676_v56 = vadd.f32 %v675_v51, %v613_v53  ;;  %v698_v57 = vmul.f32 %v613_v53, %v613_v53  ;;  %v903_v58 = vpop.f32.mrb[12].mxu1  ;;  %v840_v59 = vpop.f32.mrb[13].mxu0 }
 0x110   :  { %v841_v60 = vadd.f32 %v840_v59, %v839_v54  ;;  %v904_v61 = vpop.f32.mrb[13].mxu1  ;;  %v842_v62 = vpop.f32.mrb[14].mxu0 }
 0x111   :  { %v713_v63 = vadd.f32 %v712_v55, %v698_v57  ;;  %v905_v0 = vadd.f32 %v904_v61, %v903_v58  ;;  %v906_v1 = vpop.f32.mrb[14].mxu1  ;;  %v843_v2 = vpop.f32.mrb[15].mxu0 }
 0x112   :  { %v844_v3 = vadd.f32 %v843_v2, %v842_v62  ;;  %v907_v4 = vpop.f32.mrb[15].mxu1 }
 0x113   :  { %v618_v5 = vadd.f32 %v905_v0, %v841_v60  ;;  %v908_v6 = vadd.f32 %v907_v4, %v906_v1 }
 0x115   :  { %662 = vst [vmem:[%s1278_s2 + $0x30] sm:$0xff] %v618_v5  ;;  %v677_v7 = vadd.f32 %v676_v56, %v618_v5  ;;  %v699_v8 = vmul.f32 %v618_v5, %v618_v5  ;;  %v621_v9 = vadd.f32 %v908_v6, %v844_v3 }
 0x116   :  { %v845_v10 = vpop.f32.mrb[16].mxu0 }
 0x117   :  { %v714_v11 = vadd.f32 %v713_v63, %v699_v8  ;;  %663 = vst [vmem:[%s1278_s2 + $0x38] sm:$0xff] %v621_v9  ;;  %v678_v12 = vadd.f32 %v677_v7, %v621_v9  ;;  %v700_v13 = vmul.f32 %v621_v9, %v621_v9  ;;  %v909_v14 = vpop.f32.mrb[16].mxu1  ;;  %v846_v15 = vpop.f32.mrb[17].mxu0 }
 0x118   :  { %v847_v16 = vadd.f32 %v846_v15, %v845_v10  ;;  %v910_v17 = vpop.f32.mrb[17].mxu1  ;;  %v848_v18 = vpop.f32.mrb[18].mxu0 }
 0x119   :  { %v715_v19 = vadd.f32 %v714_v11, %v700_v13  ;;  %v911_v20 = vadd.f32 %v910_v17, %v909_v14  ;;  %v912_v21 = vpop.f32.mrb[18].mxu1  ;;  %v849_v22 = vpop.f32.mrb[19].mxu0 }
 0x11a   :  { %v850_v23 = vadd.f32 %v849_v22, %v848_v18  ;;  %v913_v24 = vpop.f32.mrb[19].mxu1 }
 0x11b   :  { %v626_v25 = vadd.f32 %v911_v20, %v847_v16  ;;  %v914_v26 = vadd.f32 %v913_v24, %v912_v21 }
 0x11d   :  { %664 = vst [vmem:[%s1278_s2 + $0x40] sm:$0xff] %v626_v25  ;;  %v679_v27 = vadd.f32 %v678_v12, %v626_v25  ;;  %v701_v28 = vmul.f32 %v626_v25, %v626_v25  ;;  %v629_v29 = vadd.f32 %v914_v26, %v850_v23 }
 0x11e   :  { %v851_v30 = vpop.f32.mrb[20].mxu0 }
 0x11f   :  { %v716_v31 = vadd.f32 %v715_v19, %v701_v28  ;;  %665 = vst [vmem:[%s1278_s2 + $0x48] sm:$0xff] %v629_v29  ;;  %v680_v32 = vadd.f32 %v679_v27, %v629_v29  ;;  %v702_v33 = vmul.f32 %v629_v29, %v629_v29  ;;  %v915_v34 = vpop.f32.mrb[20].mxu1  ;;  %v852_v35 = vpop.f32.mrb[21].mxu0 }
 0x120   :  { %v853_v36 = vadd.f32 %v852_v35, %v851_v30  ;;  %v916_v37 = vpop.f32.mrb[21].mxu1  ;;  %v854_v38 = vpop.f32.mrb[22].mxu0 }
 0x121   :  { %v717_v39 = vadd.f32 %v716_v31, %v702_v33  ;;  %v917_v40 = vadd.f32 %v916_v37, %v915_v34  ;;  %v918_v41 = vpop.f32.mrb[22].mxu1  ;;  %v855_v42 = vpop.f32.mrb[23].mxu0 }
 0x122   :  { %v856_v43 = vadd.f32 %v855_v42, %v854_v38  ;;  %v919_v44 = vpop.f32.mrb[23].mxu1 }
 0x123   :  { %v634_v45 = vadd.f32 %v917_v40, %v853_v36  ;;  %v920_v46 = vadd.f32 %v919_v44, %v918_v41 }
 0x125   :  { %666 = vst [vmem:[%s1278_s2 + $0x50] sm:$0xff] %v634_v45  ;;  %v681_v47 = vadd.f32 %v680_v32, %v634_v45  ;;  %v703_v48 = vmul.f32 %v634_v45, %v634_v45  ;;  %v637_v49 = vadd.f32 %v920_v46, %v856_v43 }
 0x126   :  { %v857_v50 = vpop.f32.mrb[24].mxu0 }
 0x127   :  { %v718_v51 = vadd.f32 %v717_v39, %v703_v48  ;;  %667 = vst [vmem:[%s1278_s2 + $0x58] sm:$0xff] %v637_v49  ;;  %v682_v52 = vadd.f32 %v681_v47, %v637_v49  ;;  %v704_v53 = vmul.f32 %v637_v49, %v637_v49  ;;  %v921_v54 = vpop.f32.mrb[24].mxu1  ;;  %v858_v55 = vpop.f32.mrb[25].mxu0 }
 0x128   :  { %v859_v56 = vadd.f32 %v858_v55, %v857_v50  ;;  %v922_v57 = vpop.f32.mrb[25].mxu1  ;;  %v860_v58 = vpop.f32.mrb[26].mxu0 }
 0x129   :  { %v719_v59 = vadd.f32 %v718_v51, %v704_v53  ;;  %v923_v60 = vadd.f32 %v922_v57, %v921_v54  ;;  %v924_v61 = vpop.f32.mrb[26].mxu1  ;;  %v861_v62 = vpop.f32.mrb[27].mxu0 }
 0x12a   :  { %v862_v63 = vadd.f32 %v861_v62, %v860_v58  ;;  %v925_v0 = vpop.f32.mrb[27].mxu1 }
 0x12b   :  { %v642_v1 = vadd.f32 %v923_v60, %v859_v56  ;;  %v926_v2 = vadd.f32 %v925_v0, %v924_v61 }
 0x12d   :  { %668 = vst [vmem:[%s1278_s2 + $0x60] sm:$0xff] %v642_v1  ;;  %v683_v3 = vadd.f32 %v682_v52, %v642_v1  ;;  %v705_v4 = vmul.f32 %v642_v1, %v642_v1  ;;  %v645_v5 = vadd.f32 %v926_v2, %v862_v63 }
 0x12e   :  { %v863_v6 = vpop.f32.mrb[28].mxu0 }
 0x12f   :  { %v720_v7 = vadd.f32 %v719_v59, %v705_v4  ;;  %669 = vst [vmem:[%s1278_s2 + $0x68] sm:$0xff] %v645_v5  ;;  %v684_v8 = vadd.f32 %v683_v3, %v645_v5  ;;  %v706_v9 = vmul.f32 %v645_v5, %v645_v5  ;;  %v927_v10 = vpop.f32.mrb[28].mxu1  ;;  %v864_v11 = vpop.f32.mrb[29].mxu0 }
 0x130   :  { %v865_v12 = vadd.f32 %v864_v11, %v863_v6  ;;  %v928_v13 = vpop.f32.mrb[29].mxu1  ;;  %v866_v14 = vpop.f32.mrb[30].mxu0 }
 0x131   :  { %v721_v15 = vadd.f32 %v720_v7, %v706_v9  ;;  %v929_v16 = vadd.f32 %v928_v13, %v927_v10  ;;  %v930_v17 = vpop.f32.mrb[30].mxu1  ;;  %v867_v18 = vpop.f32.mrb[31].mxu0 }
 0x132   :  { %v868_v19 = vadd.f32 %v867_v18, %v866_v14  ;;  %v931_v20 = vpop.f32.mrb[31].mxu1 }
 0x133   :  { %v650_v21 = vadd.f32 %v929_v16, %v865_v12  ;;  %v932_v22 = vadd.f32 %v931_v20, %v930_v17 }
 0x135   :  { %670 = vst [vmem:[%s1278_s2 + $0x70] sm:$0xff] %v650_v21  ;;  %v685_v23 = vadd.f32 %v684_v8, %v650_v21  ;;  %v707_v24 = vmul.f32 %v650_v21, %v650_v21  ;;  %v653_v25 = vadd.f32 %v932_v22, %v868_v19 }
 0x137   :  { %v722_v26 = vadd.f32 %v721_v15, %v707_v24  ;;  %671 = vst [vmem:[%s1278_s2 + $0x78] sm:$0xff] %v653_v25  ;;  %v686_v27 = vadd.f32 %v685_v23, %v653_v25  ;;  %v708_v28 = vmul.f32 %v653_v25, %v653_v25 }
 0x139   :  { %v687_v29 = vrot.slane %v686_v27, 4  ;;  %v723_v30 = vadd.f32 %v722_v26, %v708_v28 }
 0x13b   :  { %v688_v31 = vadd.f32 %v687_v29, %v686_v27  ;;  %v724_v32 = vrot.slane %v723_v30, 4 }
 0x13d   :  { %v689_v33 = vrot.slane %v688_v31, 2  ;;  %v725_v34 = vadd.f32 %v724_v32, %v723_v30 }
 0x13f   :  { %v690_v35 = vadd.f32 %v689_v33, %v688_v31  ;;  %v726_v36 = vrot.slane %v725_v34, 2 }
 0x141   :  { %v691_v37 = vrot.slane %v690_v35, 1  ;;  %v727_v38 = vadd.f32 %v726_v36, %v725_v34 }
 0x143   :  { %v728_v39 = vrot.slane %v727_v38, 1  ;;  %v692_v40 = vadd.f32 %v691_v37, %v690_v35 }
 0x145   :  { %v729_v41 = vadd.f32 %v728_v39, %v727_v38 }
 0x147   :  { %v731_v42 = vsel %vm730_vm0, %v692_v40, %v729_v41 }
 0x148   :  { %732 = vst [vmem:[%s1279_s3] sm:$0x3] %v731_v42 }

// kernel: model_forward.14
= control target key start
LH: loop header
LB: loop body
LE: loop exit
PB: predicated region body
PF: predicated region fallthrough
CT: control target
= control target key end

     0   :  { %s254_s0 = inlined_call_operand.vmem [shape: f32[128,128], index: 0, kind: input, shape index: {}]   ;;  %s255_s1 = inlined_call_operand.vmem [shape: f32[1,128], index: 1, kind: input, shape index: {}]   ;;  %s256_s2 = inlined_call_operand.vmem [shape: f32[1,128], index: 2, kind: input, shape index: {}]   ;;  %s257_s3 = inlined_call_operand.vmem [shape: f32[128,128], index: 3, kind: output, shape index: {}]  }
   0x1   :  { %v14_v0 = vld [vmem:[%s254_s0] sm:$0xff]  ;;  %v15_v4 = vld [vmem:[%s254_s0 + $0x8] sm:$0xff]  ;;  %v16_v5 = vld [vmem:[%s254_s0 + $0x10] sm:$0xff] }
   0x2   :  { %v112_v1 = vld [vmem:[%s255_s1] ss:$0 sm:$0xff]  ;;  %v17_v6 = vld [vmem:[%s254_s0 + $0x18] sm:$0xff]  ;;  %v19_v11 = vld [vmem:[%s254_s0 + $0x28] sm:$0xff] }
   0x3   :  { %v143_v2 = vld [vmem:[%s256_s2] ss:$0 sm:$0xff]  ;;  %v37_v3 = vmul.f32 %v112_v1, %v14_v0  ;;  %v38_v7 = vmul.f32 %v112_v1, %v15_v4  ;;  %v39_v8 = vmul.f32 %v112_v1, %v16_v5  ;;  %v40_v9 = vmul.f32 %v112_v1, %v17_v6  ;;  %v20_v12 = vld [vmem:[%s254_s0 + $0x30] sm:$0xff]  ;;  %v21_v17 = vld [vmem:[%s254_s0 + $0x38] sm:$0xff] }
   0x4   :  { %v18_v10 = vld [vmem:[%s254_s0 + $0x20] sm:$0xff]  ;;  %v42_v15 = vmul.f32 %v112_v1, %v19_v11  ;;  %v43_v16 = vmul.f32 %v112_v1, %v20_v12  ;;  %v44_v21 = vmul.f32 %v112_v1, %v21_v17  ;;  %v23_v27 = vld [vmem:[%s254_s0 + $0x48] sm:$0xff]  ;;  %v24_v28 = vld [vmem:[%s254_s0 + $0x50] sm:$0xff] }
   0x5   :  { %v60_v13 = vadd.f32 %v143_v2, %v37_v3  ;;  %v41_v14 = vmul.f32 %v112_v1, %v18_v10  ;;  %v61_v18 = vadd.f32 %v143_v2, %v38_v7  ;;  %v62_v19 = vadd.f32 %v143_v2, %v39_v8  ;;  %v22_v22 = vld [vmem:[%s254_s0 + $0x40] sm:$0xff]  ;;  %v25_v29 = vld [vmem:[%s254_s0 + $0x58] sm:$0xff]  ;;  %v27_v35 = vld [vmem:[%s254_s0 + $0x68] sm:$0xff] }
   0x6   :  { %v63_v20 = vadd.f32 %v143_v2, %v40_v9  ;;  %v65_v25 = vadd.f32 %v143_v2, %v42_v15  ;;  %v66_v26 = vadd.f32 %v143_v2, %v43_v16  ;;  %v67_v33 = vadd.f32 %v143_v2, %v44_v21  ;;  %v26_v34 = vld [vmem:[%s254_s0 + $0x60] sm:$0xff]  ;;  %v28_v36 = vld [vmem:[%s254_s0 + $0x70] sm:$0xff]  ;;  %v29_v41 = vld [vmem:[%s254_s0 + $0x78] sm:$0xff] }
   0x7   :  { %v76_v23 = vmax.f32 %v60_v13, 0.0  ;;  %v64_v24 = vadd.f32 %v143_v2, %v41_v14  ;;  %v77_v30 = vmax.f32 %v61_v18, 0.0  ;;  %v78_v31 = vmax.f32 %v62_v19, 0.0 }
   0x8   :  { %v79_v32 = vmax.f32 %v63_v20, 0.0  ;;  %v81_v38 = vmax.f32 %v65_v25, 0.0  ;;  %v82_v39 = vmax.f32 %v66_v26, 0.0  ;;  %v45_v40 = vmul.f32 %v112_v1, %v22_v22 }
   0x9   :  { %92 = vst [vmem:[%s257_s3] sm:$0xff] %v76_v23  ;;  %v80_v37 = vmax.f32 %v64_v24, 0.0  ;;  %93 = vst [vmem:[%s257_s3 + $0x8] sm:$0xff] %v77_v30  ;;  %v83_v42 = vmax.f32 %v67_v33, 0.0  ;;  %v46_v43 = vmul.f32 %v112_v1, %v23_v27  ;;  %v47_v44 = vmul.f32 %v112_v1, %v24_v28 }
   0xa   :  { %94 = vst [vmem:[%s257_s3 + $0x10] sm:$0xff] %v78_v31  ;;  %95 = vst [vmem:[%s257_s3 + $0x18] sm:$0xff] %v79_v32  ;;  %v48_v45 = vmul.f32 %v112_v1, %v25_v29  ;;  %v68_v46 = vadd.f32 %v143_v2, %v45_v40  ;;  %v49_v47 = vmul.f32 %v112_v1, %v26_v34 }
   0xb   :  { %96 = vst [vmem:[%s257_s3 + $0x20] sm:$0xff] %v80_v37  ;;  %97 = vst [vmem:[%s257_s3 + $0x28] sm:$0xff] %v81_v38  ;;  %v50_v48 = vmul.f32 %v112_v1, %v27_v35  ;;  %v51_v49 = vmul.f32 %v112_v1, %v28_v36  ;;  %v69_v50 = vadd.f32 %v143_v2, %v46_v43 }
   0xc   :  { %98 = vst [vmem:[%s257_s3 + $0x30] sm:$0xff] %v82_v39  ;;  %99 = vst [vmem:[%s257_s3 + $0x38] sm:$0xff] %v83_v42  ;;  %v70_v51 = vadd.f32 %v143_v2, %v47_v44  ;;  %v71_v52 = vadd.f32 %v143_v2, %v48_v45  ;;  %v52_v53 = vmul.f32 %v112_v1, %v29_v41  ;;  %v84_v54 = vmax.f32 %v68_v46, 0.0 }
   0xd   :  { %v72_v55 = vadd.f32 %v143_v2, %v49_v47  ;;  %v73_v56 = vadd.f32 %v143_v2, %v50_v48  ;;  %v74_v57 = vadd.f32 %v143_v2, %v51_v49  ;;  %v85_v58 = vmax.f32 %v69_v50, 0.0 }
   0xe   :  { %v86_v59 = vmax.f32 %v70_v51, 0.0  ;;  %v87_v60 = vmax.f32 %v71_v52, 0.0  ;;  %v75_v61 = vadd.f32 %v143_v2, %v52_v53  ;;  %100 = vst [vmem:[%s257_s3 + $0x40] sm:$0xff] %v84_v54 }
   0xf   :  { %v88_v62 = vmax.f32 %v72_v55, 0.0  ;;  %v89_v63 = vmax.f32 %v73_v56, 0.0  ;;  %v90_v0 = vmax.f32 %v74_v57, 0.0  ;;  %101 = vst [vmem:[%s257_s3 + $0x48] sm:$0xff] %v85_v58 }
  0x10   :  { %102 = vst [vmem:[%s257_s3 + $0x50] sm:$0xff] %v86_v59  ;;  %103 = vst [vmem:[%s257_s3 + $0x58] sm:$0xff] %v87_v60  ;;  %v91_v1 = vmax.f32 %v75_v61, 0.0 }
  0x11   :  { %104 = vst [vmem:[%s257_s3 + $0x60] sm:$0xff] %v88_v62  ;;  %105 = vst [vmem:[%s257_s3 + $0x68] sm:$0xff] %v89_v63 }
  0x12   :  { %106 = vst [vmem:[%s257_s3 + $0x70] sm:$0xff] %v90_v0  ;;  %107 = vst [vmem:[%s257_s3 + $0x78] sm:$0xff] %v91_v1 }

// kernel: model_forward.15
= control target key start
LH: loop header
LB: loop body
LE: loop exit
PB: predicated region body
PF: predicated region fallthrough
CT: control target
= control target key end

     0   :  { %v191_v0 = vmov 0.0   ;;  %vm192_vm0 = vmmov 0   ;;  %s249_s1 = inlined_call_operand.vmem [shape: bf16[128,128], index: 1, kind: input, shape index: {}]   ;;  %s250_s0 = inlined_call_operand.vmem [shape: bf16[16,128], index: 0, kind: input, shape index: {}]   ;;  %s251_s2 = inlined_call_operand.vmem [shape: f32[1,128], index: 2, kind: input, shape index: {}]   ;;  %s252_s3 = inlined_call_operand.vmem [shape: f32[16,128], index: 3, kind: output, shape index: {}]  }
   0x1   :  { %160 = vmatprep.subr.bf16.mxu0 %v191_v0  ;;  %v182_v1 = vld [vmem:[%s249_s1] sm:$0xff]   ;;  %176 = vmatprep.mubr.msk.bf16.mxu0 %vm192_vm0, %v191_v0  ;;  %v183_v2 = vld [vmem:[%s249_s1 + $0x8] sm:$0xff]   ;;  %v184_v3 = vld [vmem:[%s249_s1 + $0x10] sm:$0xff]  }
   0x2   :  { %161 = vmatpush3.bf16.msra.mxu0 %v182_v1  ;;  %v185_v4 = vld [vmem:[%s249_s1 + $0x18] sm:$0xff]   ;;  %v186_v5 = vld [vmem:[%s249_s1 + $0x20] sm:$0xff]   ;;  %v187_v6 = vld [vmem:[%s249_s1 + $0x28] sm:$0xff]  }
   0x3   :  { %162 = vmatprep.subr.bf16.mxu0 %v191_v0  ;;  %v188_v7 = vld [vmem:[%s249_s1 + $0x30] sm:$0xff]   ;;  %v189_v8 = vld [vmem:[%s249_s1 + $0x38] sm:$0xff]   ;;  %v190_v9 = vld [vmem:[%s250_s0] sm:$0xff]  }
   0x4   :  { %v141_v10 = vld [vmem:[%s251_s2] ss:$0 sm:$0xff] }
   0x6   :  { %163 = vmatpush3.bf16.msra.mxu0 %v183_v2 }
   0x7   :  { %164 = vmatprep.subr.bf16.mxu0 %v191_v0 }
   0xa   :  { %165 = vmatpush3.bf16.msra.mxu0 %v184_v3 }
   0xb   :  { %166 = vmatprep.subr.bf16.mxu0 %v191_v0 }
   0xe   :  { %167 = vmatpush3.bf16.msra.mxu0 %v185_v4 }
   0xf   :  { %168 = vmatprep.subr.bf16.mxu0 %v191_v0 }
  0x12   :  { %169 = vmatpush3.bf16.msra.mxu0 %v186_v5 }
  0x13   :  { %170 = vmatprep.subr.bf16.mxu0 %v191_v0 }
  0x16   :  { %171 = vmatpush3.bf16.msra.mxu0 %v187_v6 }
  0x17   :  { %172 = vmatprep.subr.bf16.mxu0 %v191_v0 }
  0x1a   :  { %173 = vmatpush3.bf16.msra.mxu0 %v188_v7 }
  0x1b   :  { %174 = vmatprep.subr.bf16.mxu0 %v191_v0 }
  0x1e   :  { %175 = vmatpush3.bf16.msra.mxu0 %v189_v8 }
  0x21   :  { %177 = vmatmul.mubr.bf16.vlgmr.msra.gmra.mrb[0].mxu0 %v190_v9 }
  0xf4   :  { %v128_v11 = vpop.f32.mrb[0].mxu0 }
  0xf5   :  { %v129_v12 = vadd.f32 %v141_v10, %v128_v11  ;;  %v178_v13 = vpop.f32.mrb[1].mxu0 }
  0xf6   :  { %v131_v14 = vpop.f32.mrb[2].mxu0 }
  0xf7   :  { %135 = vst [vmem:[%s252_s3] sm:$0xff] %v129_v12  ;;  %v132_v15 = vadd.f32 %v141_v10, %v131_v14  ;;  %v179_v16 = vpop.f32.mrb[3].mxu0 }
  0xf9   :  { %136 = vst [vmem:[%s252_s3 + $0x8] sm:$0xff] %v132_v15 }

// kernel: model_forward.16
= control target key start
LH: loop header
LB: loop body
LE: loop exit
PB: predicated region body
PF: predicated region fallthrough
CT: control target
= control target key end

     0   :  { %s497_s15 = smov 0   ;;  %s542_s0 = inlined_call_operand.vmem [shape: f32[4,4,128], index: 0, kind: input, shape index: {}]   ;;  %s543_s1 = inlined_call_operand.vmem [shape: bf16[32,128], index: 1, kind: input, shape index: {}]   ;;  %s544_s2 = inlined_call_operand.vmem [shape: f32[1,32], index: 2, kind: input, shape index: {}]   ;;  %s545_s3 = inlined_call_operand.vmem [shape: f32[1,32], index: 3, kind: input, shape index: {}]   ;;  %s546_s4 = inlined_call_operand.vmem [shape: f32[4,4,32], index: 4, kind: output, shape index: {}]  }
   0x1 LB: > { %s401_s16 = sadd.s32 4294967295, %s465_s15   ;;  %p405_p0 = scmp.ge.s32.totalorder %s465_s15, 1  ;;  %s465_s15 = sphi %s497_s15, %s14_s15  }
   0x2   : > { %p161_p1 = scmp.lt.s32.totalorder %s465_s15, 5 }
   0x4   : > { %p162_p2 = pnand %p405_p0, %p161_p1 }
   0x5   : > { %p185_p3 = scmp.lt.s32.totalorder (!%p162_p2), %s401_s16, 3  ;;  %p408_p4 = scmp.ne.s32.totalorder (!%p162_p2), %s401_s16, 0 }
   0x6   : > { %165 = sbr.rel (%p162_p2) target bundleno = 931 (0x3a3), region = 36 }
   0xd   : > { %s186_s17 = scalar_select %p185_p3, %s401_s16, 3 }
   0xe   : > { %197 = sbr.rel (%p408_p4) target bundleno = 21 (0x15), region = 40  ;;  %vm198_vm0 = vcmask (!%p408_p4), 257024   ;;  %v467_v0 = vmov (!%p408_p4), 0.0  }
   0xf   : > { %s406_s18 = sshll.u32 %s186_s17, 2  ;;  %199 = vst.msk [vmem:[#allocation2] sm:$0xf] (!%p408_p4), %vm198_vm0, %v467_v0  ;;  %200 = vst.msk [vmem:[#allocation3] sm:$0xf] (!%p408_p4), %vm198_vm0, %v467_v0 }
  0x10   : > { %s188_s21 = scalar_lea.vmem %s542_s0, %s406_s18  ;;  %s511_s24 = scalar_lea.vmem %s546_s4, %s406_s18 }
  0x15 PF: > { %v443_v1 = vld [vmem:[%s543_s1] sm:$0xff]   ;;  %v468_v2 = vmov 0.0   ;;  %v444_v3 = vld [vmem:[%s543_s1 + $0x8] sm:$0xff]   ;;  %vm469_vm1 = vmmov 0   ;;  %vm220_vm2 = vcmask 261120   ;;  %s470_s29 = smov 32  }
  0x16   : > { %422 = vmatprep.subr.bf16.mxu0 %v468_v2  ;;  %426 = vmatprep.mubr.msk.bf16.mxu0 %vm469_vm1, %v468_v2  ;;  %v202_v4 = vld [vmem:[#allocation3] sm:$0xf]  ;;  %v201_v6 = vld [vmem:[%s188_s21] sm:$0xf]  ;;  %s471_s30 = smov 96   ;;  %vm276_vm3 = vcmask 257024  }
  0x17   : > { %423 = vmatpush3.bf16.msra.mxu0 %v443_v1  ;;  %v203_v5 = vpack.c.bf16 %v202_v4, %v202_v4  ;;  %v413_v20 = vld [vmem:[%s544_s2] ss:$0 sm:$0xff] }
  0x18   : > { %424 = vmatprep.subr.bf16.mxu0 %v468_v2  ;;  %v321_v27 = vld [vmem:[#allocation2] sm:$0xf] }
  0x19   : > { %v414_v33 = vld [vmem:[%s545_s3] ss:$0 sm:$0xff] }
  0x1b   : > { %425 = vmatpush3.bf16.msra.mxu0 %v444_v3 }
  0x1e   : > { %427 = vmatmul.mubr.msk.bf16.vlgmr.msra.gmra.mrb[0].mxu0 %vm220_vm2, %v203_v5 }
  0xf1   : > { %v258_v7 = vpop.f32.mrb[0].mxu0 }
  0xf2   : > { %v264_v8 = vadd.f32 %v258_v7, %v201_v6  ;;  %v428_v9 = vpop.f32.mrb[1].mxu0 }
  0xf3   : > { %v261_v10 = vpop.f32.mrb[2].mxu0 }
  0xf4   : > { %445 = vtanh.f32 %v264_v8  ;;  %v429_v11 = vpop.f32.mrb[3].mxu0  ;;  %273 = vrot.lane.b32.xlu0 %v264_v8, %s470_s29  ;;  %v412_v15 = vmul.f32 -1.442695, %v264_v8 }
  0xf6   : > { %447 = vpow2.f32 %v412_v15 }
  0xfe   : > { %v446_v12 = vpop.eup %445 }
  0xff   : > { %324 = vrot.lane.b32.xlu1 %v446_v12, %s471_s30 }
 0x100   : > { %v448_v16 = vpop.eup %447 }
 0x101   : > { %v268_v17 = vadd.f32 1.0, %v448_v16 }
 0x103   : > { %449 = vrcp.f32 %v268_v17 }
 0x10d   : > { %v450_v24 = vpop.eup %449 }
 0x10e   : > { %v322_v29 = vmul.f32 %v450_v24, %v321_v27 }
 0x166   : > { %v274_v13 = vpop.permute.xlu0 %273 }
 0x167   : > { %v277_v14 = vsel %vm276_vm3, %v274_v13, 0.0 }
 0x168   : > { %278 = vadd.xlane.f32.xlu0 %v277_v14 }
 0x171   : > { %v325_v23 = vpop.permute.xlu1 %324 }
 0x172   : > { %v327_v25 = vmul.f32 %v450_v24, %v325_v23 }
 0x17e   : > { %301 = vrot.lane.b32.xlu0 %v413_v20, %s471_s30 }
 0x1f5   : > { %v279_v18 = vpop.xlane.xlu0 %278 }
 0x1f6   : > { %v281_v19 = vmul.f32 0.03125, %v279_v18 }
 0x1f8   : > { %v282_v21 = vsub.f32 %v264_v8, %v281_v19 }
 0x1f9   : > { %v302_v40 = vpop.permute.xlu0 %301 }
 0x1fa   : > { %v283_v22 = vmul.f32 %v282_v21, %v282_v21 }
 0x1fc   : > { %285 = vrot.lane.b32.xlu1 %v283_v22, %s470_s29 }
 0x200   : > { %329 = vrot.lane.b32.xlu1 %v327_v25, %s471_s30 }
 0x26e   : > { %v286_v26 = vpop.permute.xlu1 %285 }
 0x26f   : > { %v288_v28 = vsel %vm276_vm3, %v286_v26, 0.0 }
 0x270   : > { %289 = vadd.xlane.f32.xlu1 %v288_v28 }
 0x272   : > { %v330_v30 = vpop.permute.xlu1 %329 }
 0x273   : > { %v332_v31 = vadd.f32 %v330_v30, %v322_v29 }
 0x275   : > { %v416_v32 = vclamps-f32 %v332_v31, 10.0 }
 0x277   : > { %451 = vtanh.f32 %v416_v32  ;;  %341 = vst.msk [vmem:[#allocation2] sm:$0xf] %vm276_vm3, %v416_v32 }
 0x281   : > { %v452_v34 = vpop.eup %451  ;;  %311 = vrot.lane.b32.xlu1 %v414_v33, %s471_s30 }
 0x282   : > { %337 = vrot.lane.b32.xlu0 %v452_v34, %s471_s30 }
 0x2f4   : > { %v338_v48 = vpop.permute.xlu0 %337 }
 0x2fd   : > { %v290_v35 = vpop.xlane.xlu1 %289 }
 0x2fe   : > { %v291_v36 = vmul.f32 0.03125, %v290_v35 }
 0x300   : > { %v292_v37 = vadd.f32 1e-05, %v291_v36 }
 0x301   : > { %v312_v41 = vpop.permute.xlu1 %311 }
 0x302   : > { %453 = vrsqrt.f32 %v292_v37 }
 0x30c   : > { %v454_v38 = vpop.eup %453 }
 0x30d   : > { %v294_v39 = vmul.f32 %v454_v38, %v282_v21 }
 0x30f   : > { %v304_v42 = vmul.f32 %v302_v40, %v294_v39 }
 0x311   : > { %v314_v43 = vadd.f32 %v312_v41, %v304_v42 }
 0x313   : > { %v415_v44 = vmul.f32 -1.442695, %v314_v43 }
 0x315   : > { %455 = vpow2.f32 %v415_v44 }
 0x31f   : > { %v456_v45 = vpop.eup %455 }
 0x320   : > { %v318_v46 = vadd.f32 1.0, %v456_v45 }
 0x322   : > { %457 = vrcp.f32 %v318_v46 }
 0x32c   : > { %v458_v47 = vpop.eup %457 }
 0x32d   : > { %v340_v49 = vmul.f32 %v458_v47, %v338_v48 }
 0x32f   : > { %343 = vrot.lane.b32.xlu0 %v340_v49, %s470_s29 }
 0x3a1   : > { %v344_v50 = vpop.permute.xlu0 %343 }
 0x3a2   : > { %346 = vst.msk [vmem:[#allocation3] sm:$0xf] %vm276_vm3, %v344_v50  ;;  %347 = vst.msk [vmem:[%s511_s24] sm:$0xf] %vm276_vm3, %v344_v50 }
 0x3a3 PF: > { %s14_s15 = sadd.s32 1, %s465_s15  }
 0x3a4   : > { %p11_p5 = scmp.ge.s32.totalorder %s14_s15, 6  }
 0x3a6   :  { %13 = sbr.rel (!%p11_p5) target bundleno = 1 (0x1), region = 70 }

// kernel: model_forward.17
= control target key start
LH: loop header
LB: loop body
LE: loop exit
PB: predicated region body
PF: predicated region fallthrough
CT: control target
= control target key end

     0   :  { %v183_v1 = vmov 0.0   ;;  %vm184_vm0 = vmmov 0   ;;  %s236_s0 = inlined_call_operand.vmem [shape: bf16[8,64], index: 0, kind: input, shape index: {}]   ;;  %s237_s1 = inlined_call_operand.vmem [shape: bf16[64,128], index: 1, kind: input, shape index: {}]   ;;  %s238_s2 = inlined_call_operand.vmem [shape: f32[1,128], index: 2, kind: input, shape index: {}]   ;;  %s239_s3 = inlined_call_operand.hbm [shape: f32[8,128], index: 3, kind: output, shape index: {}]  }
   0x1   :  { %v151_v0 = vld [vmem:[%s237_s1] sm:$0xff]   ;;  %136 = vmatprep.subr.bf16.mxu0 %v183_v1  ;;  %v152_v2 = vld [vmem:[%s237_s1 + $0x8] sm:$0xff]   ;;  %144 = vmatprep.mubr.msk.bf16.mxu0 %vm184_vm0, %v183_v1 }
   0x2   :  { %137 = vmatpush3.bf16.msra.mxu0 %v151_v0 }
   0x3   :  { %138 = vmatprep.subr.bf16.mxu0 %v183_v1 }
   0x4   :  { %8 = vsyncpa [#allocation3], 0  ;;  %v153_v3 = vld [vmem:[%s237_s1 + $0x10] sm:$0xff]   ;;  %v154_v4 = vld [vmem:[%s237_s1 + $0x18] sm:$0xff]   ;;  %vm56_vm1 = vcmask 523264  }
   0x5   :  { %v16_v5 = vld [vmem:[%s236_s0] sm:$0xf]  ;;  %s185_s0 = smov [#allocation2]  }
   0x6   :  { %139 = vmatpush3.bf16.msra.mxu0 %v152_v2  ;;  %v125_v6 = vld [vmem:[%s238_s2] ss:$0 sm:$0xff]  ;;  %s117_s1 = sshll.u32 %s185_s0, 4  ;;  %s118_s1 = int_to_ptr.vmem [resolvable:$true] %s117_s1 }
   0x7   :  { %140 = vmatprep.subr.bf16.mxu0 %v183_v1  ;;  %s159_s2 = scalar_lea.vmem %s118_s1, 128  ;;  %p164_p1 = scmp.lt.s32.totalorder %s118_s1, %s118_s1 }
   0x8   :  { %p160_p0 = scmp.ne.s32.totalorder %s118_s1, %s159_s2  ;;  %p165_p2 = scmp.lt.s32.totalorder %s159_s2, %s159_s2 }
   0xa   :  { %141 = vmatpush3.bf16.msra.mxu0 %v153_v3  ;;  %p166_p3 = por %p165_p2, %p164_p1 }
   0xb   :  { %142 = vmatprep.subr.bf16.mxu0 %v183_v1 }
   0xc   :  { %p167_p4 = pnand %p166_p3, %p160_p0 }
   0xe   :  { %143 = vmatpush3.bf16.msra.mxu0 %v154_v4 }
  0x11   :  { %145 = vmatmul.mubr.msk.bf16.vlgmr.msra.gmra.mrb[0].mxu0 %vm56_vm1, %v16_v5 }
  0xe4   :  { %v94_v7 = vpop.f32.mrb[0].mxu0 }
  0xe5   :  { %v95_v8 = vadd.f32 %v125_v6, %v94_v7  ;;  %v146_v9 = vpop.f32.mrb[1].mxu0 }
  0xe6   :  { %v97_v10 = vpop.f32.mrb[2].mxu0 }
  0xe7   :  { %100 = vmax.xlane.f32.xlu0 %v95_v8  ;;  %v147_v11 = vpop.f32.mrb[3].mxu0 }
 0x174   :  { %v101_v12 = vpop.xlane.xlu0 %100 }
 0x175   :  { %v102_v13 = vsub.f32 %v95_v8, %v101_v12 }
 0x177   :  { %v103_v14 = vmul.f32 1.442695, %v102_v13 }
 0x179   :  { %155 = vpow2.f32 %v103_v14 }
 0x183   :  { %v156_v15 = vpop.eup %155 }
 0x184   :  { %105 = vadd.xlane.f32.xlu0 %v156_v15 }
 0x211   :  { %v106_v16 = vpop.xlane.xlu0 %105 }
 0x212   :  { %157 = vlog2.f32 %v106_v16 }
 0x21c   :  { %v158_v17 = vpop.eup %157 }
 0x21d   :  { %v108_v18 = vmul.f32 0.6931472, %v158_v17 }
 0x21f   :  { %v109_v19 = vsub.f32 %v102_v13, %v108_v18 }
 0x221   :  { %110 = vst [vmem:[#allocation2] sm:$0xff] %v109_v19 }
 0x222   :  { %170 = shalt.err (!%p167_p4)
}
 0x223   :  { %s171_s26 = scalar_lea.hbm %s239_s3, 128 }
 0x224   :  { %p172_p5 = scmp.ne.s32.totalorder %s239_s3, %s171_s26  ;;  %p175_p6 = scmp.lt.u32.totalorder %s171_s26, %s239_s3 }
 0x226   :  { %p177_p7 = pnand %p175_p6, %p172_p5 }
 0x228   :  { %180 = shalt.err (!%p177_p7)
}
 0x229   :  { %120 = dma.vmem_to_hbm [thread:$0]  %s118_s1, 128, %s239_s3, [#allocation3]  }
 0x22a   :  { %181 = dma.done.wait [#allocation3], 128  }
 0x22b   :  { %182 = vsyncadd [#allocation3], 4294967168 }
 0x22c   :  { %124 = vsyncpa [#allocation3], 1 }

</bundles_post_ra>
